<compile_context>
chip_gen: v6e
topology: v6e:2x2x1
jax: 0.10.0
libtpu: 0.0.40
codegen_flags: <defaults>
</compile_context>

<pallas_src>
import jax
import jax.numpy as jnp
from jax.experimental import pallas as pl
from jax.experimental.pallas import tpu as pltpu


def _round_up(x, m):
    return ((x + m - 1) // m) * m


# ----------------------------------------------------------------------------
# Pallas kernel
# ----------------------------------------------------------------------------
def make_nerf_kernel(D, skips, use_viewdirs, out_dim):
    skips = tuple(skips)

    def mm(a, b):
        # bf16 x bf16 operands, f32 accumulation on the MXU.
        return jnp.dot(a, b, preferred_element_type=jnp.float32)

    def kernel(x_ref, *refs):
        out_ref = refs[-1]
        it = iter(refs[:-1])

        # Layer 0: packed input (tile_m, 8) @ (8, W); views/pad columns hit
        # zero weight rows -> exact pts-only matmul.
        w0 = next(it)[...]
        b0 = next(it)[...]
        h = jnp.maximum(mm(x_ref[...], w0) + b0, 0.0).astype(jnp.bfloat16)

        for j in range(1, D):
            if (j - 1) in skips:
                # PyTorch input of this layer is cat([input_pts, h], -1);
                # expressed as two split matmuls (no in-kernel concat).
                w_in = next(it)[...]
                w_h = next(it)[...]
                b = next(it)[...]
                z = mm(x_ref[...], w_in) + mm(h, w_h) + b
            else:
                w = next(it)[...]
                b = next(it)[...]
                z = mm(h, w) + b
            h = jnp.maximum(z, 0.0).astype(jnp.bfloat16)      # F.relu, bf16 acts

        if use_viewdirs:
            wf = next(it)[...]
            bf = next(it)[...]
            wv_f = next(it)[...]
            wv_in = next(it)[...]
            bv = next(it)[...]
            wr_pad = next(it)[...]     # (W//2, 128): rgb   -> cols 0:3
            wa_pad = next(it)[...]     # (W,    128): alpha -> col  3
            b_out = next(it)[...]      # (1, 128)

            feat = (mm(h, wf) + bf).astype(jnp.bfloat16)
            # views_linears[0] applied to cat([feature, input_views], -1); the
            # views part reads the packed input through zero-padded weight rows.
            hv = jnp.maximum(mm(feat, wv_f) + mm(x_ref[...], wv_in) + bv, 0.0)
            hv = hv.astype(jnp.bfloat16)
            # Lane-aligned N=128 MXU matmuls, then slice to the narrow output
            # block == cat([rgb, alpha], -1) in cols 0:4.
            res = mm(hv, wr_pad) + mm(h, wa_pad) + b_out
            out_ref[...] = res[:, :out_dim]
        else:
            wo_pad = next(it)[...]
            bo_pad = next(it)[...]
            res = mm(h, wo_pad) + bo_pad
            out_ref[...] = res[:, :out_dim]

    return kernel


# ----------------------------------------------------------------------------
# Parameter preparation (hoisted out of the per-call hot path).
# Raw f32 masters -> bf16 weights / f32 biases in kernel consumption order,
# with zero row/column padding so every padded matmul is exact.
# ----------------------------------------------------------------------------
def prepare_nerf_params(params, *, D=8, W=256, input_ch=3, input_ch_views=3,
                        output_ch=4, skips=(4,), use_viewdirs=False):
    skips = tuple(skips)
    in_total = input_ch + input_ch_views
    in_pad = _round_up(in_total, 8)
    out_pad = 128

    w16 = lambda a: a.astype(jnp.bfloat16)
    b32 = lambda a: a.astype(jnp.float32)

    def pad_pts_rows(w):      # (input_ch, n) -> (in_pad, n); pts live at cols 0:input_ch
        return jnp.zeros((in_pad, w.shape[1]), jnp.bfloat16).at[:input_ch].set(w16(w))

    def pad_view_rows(w):     # (input_ch_views, n) -> (in_pad, n); views at cols input_ch:..
        return (jnp.zeros((in_pad, w.shape[1]), jnp.bfloat16)
                .at[input_ch:input_ch + input_ch_views].set(w16(w)))

    it = iter(params)
    flat = []
    for j in range(D):
        if j == 0:
            w, b = next(it), next(it)
            flat += [pad_pts_rows(w), b32(b)]
        elif (j - 1) in skips:
            w_pts, w_h, b = next(it), next(it), next(it)
            flat += [pad_pts_rows(w_pts), w16(w_h), b32(b)]
        else:
            w, b = next(it), next(it)
            flat += [w16(w), b32(b)]

    if use_viewdirs:
        wa, ba, wf, bf, wv_f, wv_v, bv, wr, br = (next(it) for _ in range(9))
        wr_pad = jnp.zeros((W // 2, out_pad), jnp.bfloat16).at[:, 0:3].set(w16(wr))
        wa_pad = jnp.zeros((W, out_pad), jnp.bfloat16).at[:, 3:4].set(w16(wa))
        b_out = (jnp.zeros((1, out_pad), jnp.float32)
                 .at[:, 0:3].set(b32(br)).at[:, 3:4].set(b32(ba)))
        flat += [w16(wf), b32(bf), w16(wv_f), pad_view_rows(wv_v), b32(bv),
                 wr_pad, wa_pad, b_out]
    else:
        wo, bo = next(it), next(it)
        wo_pad = jnp.zeros((W, out_pad), jnp.bfloat16).at[:, :output_ch].set(w16(wo))
        bo_pad = jnp.zeros((1, out_pad), jnp.float32).at[:, :output_ch].set(b32(bo))
        flat += [wo_pad, bo_pad]
    return flat


# ----------------------------------------------------------------------------
# Wrapper
# ----------------------------------------------------------------------------
def nerf_pallas(x, prepared_params, *, D=8, W=256, input_ch=3,
                input_ch_views=3, output_ch=4, skips=(4,), use_viewdirs=False,
                tile_m_max=2048):
    skips = tuple(skips)
    assert (D - 1) not in skips, "skip on last pts layer not supported"
    N, in_dim = x.shape
    in_total = input_ch + input_ch_views
    assert in_dim == in_total
    in_pad = _round_up(in_total, 8)
    out_dim = 4 if use_viewdirs else output_ch
    assert out_dim <= 128

    # tile_m: as large as possible (amortizes per-step pipeline overhead and
    # fills the MXU M dim), but always >= 2 grid steps so the "parallel" axis
    # can shard across v7x's two TensorCores.
    tile_m = min(tile_m_max, max(8, _round_up(pl.cdiv(N, 2), 8)))
    n_tiles = pl.cdiv(N, tile_m)
    n_pad = n_tiles * tile_m

    # Packed narrow input: pts -> cols 0:input_ch, views -> next cols, zeros
    # after (16 B/ray of bf16 instead of a 128-lane padded slab).
    xp = jnp.pad(x.astype(jnp.bfloat16),
                 ((0, n_pad - N), (0, in_pad - in_total)))

    # Weights/biases: constant index_map -> DMA'd once, resident in VMEM.
    def resident(a):
        return pl.BlockSpec(a.shape, lambda i: (0, 0))

    inputs = [xp] + list(prepared_params)
    in_specs = [pl.BlockSpec((tile_m, in_pad), lambda i: (i, 0))]
    in_specs += [resident(a) for a in prepared_params]

    kernel = make_nerf_kernel(D, skips, use_viewdirs, out_dim)

    out = pl.pallas_call(
        kernel,
        out_shape=jax.ShapeDtypeStruct((n_pad, out_dim), jnp.float32),
        grid=(n_tiles,),
        in_specs=in_specs,
        out_specs=pl.BlockSpec((tile_m, out_dim), lambda i: (i, 0)),
        compiler_params=pltpu.CompilerParams(
            dimension_semantics=("parallel",),
            vmem_limit_bytes=48 * 1024 * 1024),
    )(*inputs)
    # Only the padded batch rows are sliced off (16 B/row); no column slice.
    return out[:N] if n_pad != N else out


# ----------------------------------------------------------------------------
# Deterministic parameter init (mimics nn.Linear default: U(-1/sqrt(fan_in),..))
# Flat list of raw f32 masters in exactly the order prepare/reference consume.
# ----------------------------------------------------------------------------
def init_params(key, *, D, W, input_ch, input_ch_views, output_ch, skips,
                use_viewdirs):
    skips = tuple(skips)

    def linear(k, fan_in, fan_out):
        k1, k2 = jax.random.split(k)
        bound = 1.0 / (fan_in ** 0.5)
        w = jax.random.uniform(k1, (fan_in, fan_out), jnp.float32, -bound, bound)
        b = jax.random.uniform(k2, (1, fan_out), jnp.float32, -bound, bound)
        return w, b

    keys = jax.random.split(key, D + 6)
    params = []
    for j in range(D):
        if j == 0:
            w, b = linear(keys[j], input_ch, W)
            params += [w, b]
        elif (j - 1) in skips:
            w, b = linear(keys[j], W + input_ch, W)
            # PyTorch cat order is [input_pts, h]: first input_ch rows -> pts
            params += [w[:input_ch], w[input_ch:], b]
        else:
            w, b = linear(keys[j], W, W)
            params += [w, b]

    if use_viewdirs:
        wa, ba = linear(keys[D + 0], W, 1)
        wf, bf = linear(keys[D + 1], W, W)
        wv, bv = linear(keys[D + 2], W + input_ch_views, W // 2)
        wr, br = linear(keys[D + 3], W // 2, 3)
        # cat order is [feature, input_views]: first W rows -> feature
        params += [wa, ba, wf, bf, wv[:W], wv[W:], bv, wr, br]
    else:
        wo, bo = linear(keys[D + 0], W, output_ch)
        params += [wo, bo]
    return params


# ----------------------------------------------------------------------------
# Pure-JAX reference mirroring the PyTorch forward literally (with concats),
# at the same mixed precision the kernel uses (bf16 operands, f32 accumulate).
# ----------------------------------------------------------------------------
def _mm(a, b):
    return jnp.dot(a.astype(jnp.bfloat16), b.astype(jnp.bfloat16),
                   preferred_element_type=jnp.float32)


def nerf_ref(x, params, *, D, W, input_ch, input_ch_views, output_ch, skips,
             use_viewdirs):
    skips = tuple(skips)
    pts = x[:, :input_ch]
    views = x[:, input_ch:input_ch + input_ch_views]
    it = iter(params)
    h = pts
    for j in range(D):
        if j >= 1 and (j - 1) in skips:
            w = jnp.concatenate([next(it), next(it)], axis=0)
            b = next(it)
        else:
            w, b = next(it), next(it)
        h = jax.nn.relu(_mm(h, w) + b)
        if j in skips:
            h = jnp.concatenate([pts, h], axis=-1)
    if use_viewdirs:
        wa, ba, wf, bf, wv_f, wv_v, bv, wr, br = (next(it) for _ in range(9))
        alpha = _mm(h, wa) + ba
        feature = _mm(h, wf) + bf
        hv = jnp.concatenate([feature, views], axis=-1)
        wv = jnp.concatenate([wv_f, wv_v], axis=0)
        hv = jax.nn.relu(_mm(hv, wv) + bv)
        rgb = _mm(hv, wr) + br
        return jnp.concatenate([rgb, alpha], axis=-1)
    else:
        wo, bo = next(it), next(it)
        return _mm(h, wo) + bo


# ----------------------------------------------------------------------------
if __name__ == "__main__":
    cfg_base = dict(D=8, W=256, input_ch=3, input_ch_views=3, output_ch=4,
                    skips=(4,))
    key = jax.random.PRNGKey(0)
    kx, kp1, kp2 = jax.random.split(key, 3)

    # N deliberately not a tile multiple: exercises pad-and-slice and gives
    # 2 grid steps so the "parallel" axis can shard on a 2-TC chip.
    N = 333
    x = jax.random.normal(
        kx, (N, cfg_base["input_ch"] + cfg_base["input_ch_views"]), jnp.float32)

    ok = True
    for use_viewdirs, kparam in ((False, kp1), (True, kp2)):
        cfg = dict(cfg_base, use_viewdirs=use_viewdirs)
        params = init_params(kparam, **cfg)
        prepared = prepare_nerf_params(params, **cfg)       # once per param set
        out = jax.block_until_ready(nerf_pallas(x, prepared, **cfg))
        ref = nerf_ref(x, params, **cfg)
        if not jnp.allclose(out, ref, rtol=2e-3, atol=1e-3):
            ok = False
            print("MISMATCH (use_viewdirs=%s): max abs err = %e"
                  % (use_viewdirs, float(jnp.max(jnp.abs(out - ref)))))

    if ok:
        print("KERNEL_OK")
</pallas_src>

<mosaic_0001>
module attributes {stable_mosaic.version = 11 : i64} {
  func.func @kernel(%arg0: i32, %arg1: memref<168x8xbf16, #tpu.memory_space<vmem>>, %arg2: memref<8x256xbf16, #tpu.memory_space<vmem>>, %arg3: memref<1x256xf32, #tpu.memory_space<vmem>>, %arg4: memref<256x256xbf16, #tpu.memory_space<vmem>>, %arg5: memref<1x256xf32, #tpu.memory_space<vmem>>, %arg6: memref<256x256xbf16, #tpu.memory_space<vmem>>, %arg7: memref<1x256xf32, #tpu.memory_space<vmem>>, %arg8: memref<256x256xbf16, #tpu.memory_space<vmem>>, %arg9: memref<1x256xf32, #tpu.memory_space<vmem>>, %arg10: memref<256x256xbf16, #tpu.memory_space<vmem>>, %arg11: memref<1x256xf32, #tpu.memory_space<vmem>>, %arg12: memref<8x256xbf16, #tpu.memory_space<vmem>>, %arg13: memref<256x256xbf16, #tpu.memory_space<vmem>>, %arg14: memref<1x256xf32, #tpu.memory_space<vmem>>, %arg15: memref<256x256xbf16, #tpu.memory_space<vmem>>, %arg16: memref<1x256xf32, #tpu.memory_space<vmem>>, %arg17: memref<256x256xbf16, #tpu.memory_space<vmem>>, %arg18: memref<1x256xf32, #tpu.memory_space<vmem>>, %arg19: memref<256x128xbf16, #tpu.memory_space<vmem>>, %arg20: memref<1x128xf32, #tpu.memory_space<vmem>>, %arg21: memref<168x4xf32, #tpu.memory_space<vmem>>) attributes {dimension_semantics = [#tpu.dimension_semantics<parallel>], iteration_bounds = array<i64: 2>, scalar_prefetch = 0 : i64, scratch_operands = 0 : i64, tpu.core_type = #tpu.core_type<tc>, window_params = [{transform_indices = @transform_0, window_bounds = array<i64: 168, 8>}, {pipeline_mode = #tpu.pipeline_mode<synchronous>, transform_indices = @transform_1, window_bounds = array<i64: 8, 256>}, {pipeline_mode = #tpu.pipeline_mode<synchronous>, transform_indices = @transform_2, window_bounds = array<i64: 1, 256>}, {pipeline_mode = #tpu.pipeline_mode<synchronous>, transform_indices = @transform_3, window_bounds = array<i64: 256, 256>}, {pipeline_mode = #tpu.pipeline_mode<synchronous>, transform_indices = @transform_4, window_bounds = array<i64: 1, 256>}, {pipeline_mode = #tpu.pipeline_mode<synchronous>, transform_indices = @transform_5, window_bounds = array<i64: 256, 256>}, {pipeline_mode = #tpu.pipeline_mode<synchronous>, transform_indices = @transform_6, window_bounds = array<i64: 1, 256>}, {pipeline_mode = #tpu.pipeline_mode<synchronous>, transform_indices = @transform_7, window_bounds = array<i64: 256, 256>}, {pipeline_mode = #tpu.pipeline_mode<synchronous>, transform_indices = @transform_8, window_bounds = array<i64: 1, 256>}, {pipeline_mode = #tpu.pipeline_mode<synchronous>, transform_indices = @transform_9, window_bounds = array<i64: 256, 256>}, {pipeline_mode = #tpu.pipeline_mode<synchronous>, transform_indices = @transform_10, window_bounds = array<i64: 1, 256>}, {pipeline_mode = #tpu.pipeline_mode<synchronous>, transform_indices = @transform_11, window_bounds = array<i64: 8, 256>}, {pipeline_mode = #tpu.pipeline_mode<synchronous>, transform_indices = @transform_12, window_bounds = array<i64: 256, 256>}, {pipeline_mode = #tpu.pipeline_mode<synchronous>, transform_indices = @transform_13, window_bounds = array<i64: 1, 256>}, {pipeline_mode = #tpu.pipeline_mode<synchronous>, transform_indices = @transform_14, window_bounds = array<i64: 256, 256>}, {pipeline_mode = #tpu.pipeline_mode<synchronous>, transform_indices = @transform_15, window_bounds = array<i64: 1, 256>}, {pipeline_mode = #tpu.pipeline_mode<synchronous>, transform_indices = @transform_16, window_bounds = array<i64: 256, 256>}, {pipeline_mode = #tpu.pipeline_mode<synchronous>, transform_indices = @transform_17, window_bounds = array<i64: 1, 256>}, {pipeline_mode = #tpu.pipeline_mode<synchronous>, transform_indices = @transform_18, window_bounds = array<i64: 256, 128>}, {pipeline_mode = #tpu.pipeline_mode<synchronous>, transform_indices = @transform_19, window_bounds = array<i64: 1, 128>}, {transform_indices = @transform_20, window_bounds = array<i64: 168, 4>}]} {
    %c0 = arith.constant 0 : index
    %c0_0 = arith.constant 0 : index
    %0 = vector.load %arg2[%c0, %c0_0] : memref<8x256xbf16, #tpu.memory_space<vmem>>, vector<8x256xbf16>
    %c0_1 = arith.constant 0 : index
    %c0_2 = arith.constant 0 : index
    %1 = vector.load %arg3[%c0_1, %c0_2] : memref<1x256xf32, #tpu.memory_space<vmem>>, vector<1x256xf32>
    %c0_3 = arith.constant 0 : index
    %c0_4 = arith.constant 0 : index
    %2 = vector.load %arg1[%c0_3, %c0_4] : memref<168x8xbf16, #tpu.memory_space<vmem>>, vector<168x8xbf16>
    %cst = arith.constant dense<0.000000e+00> : vector<168x256xf32>
    %3 = tpu.matmul %2, %0, %cst {dimension_numbers = #tpu.dot_dimension_numbers<[1], [0], [0], [1], [0, 0, 1, 1], [], []>} : vector<168x8xbf16>, vector<8x256xbf16>, vector<168x256xf32> -> vector<168x256xf32>
    %4 = vector.broadcast %1 : vector<1x256xf32> to vector<168x256xf32>
    %5 = arith.addf %3, %4 : vector<168x256xf32>
    %cst_5 = arith.constant 0.000000e+00 : f32
    %6 = vector.broadcast %cst_5 : f32 to vector<168x256xf32>
    %7 = arith.maximumf %5, %6 : vector<168x256xf32>
    %8 = arith.truncf %7 : vector<168x256xf32> to vector<168x256xbf16>
    %c0_6 = arith.constant 0 : index
    %c0_7 = arith.constant 0 : index
    %9 = vector.load %arg4[%c0_6, %c0_7] : memref<256x256xbf16, #tpu.memory_space<vmem>>, vector<256x256xbf16>
    %c0_8 = arith.constant 0 : index
    %c0_9 = arith.constant 0 : index
    %10 = vector.load %arg5[%c0_8, %c0_9] : memref<1x256xf32, #tpu.memory_space<vmem>>, vector<1x256xf32>
    %cst_10 = arith.constant dense<0.000000e+00> : vector<168x256xf32>
    %11 = tpu.matmul %8, %9, %cst_10 {dimension_numbers = #tpu.dot_dimension_numbers<[1], [0], [0], [1], [0, 0, 1, 1], [], []>} : vector<168x256xbf16>, vector<256x256xbf16>, vector<168x256xf32> -> vector<168x256xf32>
    %12 = vector.broadcast %10 : vector<1x256xf32> to vector<168x256xf32>
    %13 = arith.addf %11, %12 : vector<168x256xf32>
    %cst_11 = arith.constant 0.000000e+00 : f32
    %14 = vector.broadcast %cst_11 : f32 to vector<168x256xf32>
    %15 = arith.maximumf %13, %14 : vector<168x256xf32>
    %16 = arith.truncf %15 : vector<168x256xf32> to vector<168x256xbf16>
    %c0_12 = arith.constant 0 : index
    %c0_13 = arith.constant 0 : index
    %17 = vector.load %arg6[%c0_12, %c0_13] : memref<256x256xbf16, #tpu.memory_space<vmem>>, vector<256x256xbf16>
    %c0_14 = arith.constant 0 : index
    %c0_15 = arith.constant 0 : index
    %18 = vector.load %arg7[%c0_14, %c0_15] : memref<1x256xf32, #tpu.memory_space<vmem>>, vector<1x256xf32>
    %cst_16 = arith.constant dense<0.000000e+00> : vector<168x256xf32>
    %19 = tpu.matmul %16, %17, %cst_16 {dimension_numbers = #tpu.dot_dimension_numbers<[1], [0], [0], [1], [0, 0, 1, 1], [], []>} : vector<168x256xbf16>, vector<256x256xbf16>, vector<168x256xf32> -> vector<168x256xf32>
    %20 = vector.broadcast %18 : vector<1x256xf32> to vector<168x256xf32>
    %21 = arith.addf %19, %20 : vector<168x256xf32>
    %cst_17 = arith.constant 0.000000e+00 : f32
    %22 = vector.broadcast %cst_17 : f32 to vector<168x256xf32>
    %23 = arith.maximumf %21, %22 : vector<168x256xf32>
    %24 = arith.truncf %23 : vector<168x256xf32> to vector<168x256xbf16>
    %c0_18 = arith.constant 0 : index
    %c0_19 = arith.constant 0 : index
    %25 = vector.load %arg8[%c0_18, %c0_19] : memref<256x256xbf16, #tpu.memory_space<vmem>>, vector<256x256xbf16>
    %c0_20 = arith.constant 0 : index
    %c0_21 = arith.constant 0 : index
    %26 = vector.load %arg9[%c0_20, %c0_21] : memref<1x256xf32, #tpu.memory_space<vmem>>, vector<1x256xf32>
    %cst_22 = arith.constant dense<0.000000e+00> : vector<168x256xf32>
    %27 = tpu.matmul %24, %25, %cst_22 {dimension_numbers = #tpu.dot_dimension_numbers<[1], [0], [0], [1], [0, 0, 1, 1], [], []>} : vector<168x256xbf16>, vector<256x256xbf16>, vector<168x256xf32> -> vector<168x256xf32>
    %28 = vector.broadcast %26 : vector<1x256xf32> to vector<168x256xf32>
    %29 = arith.addf %27, %28 : vector<168x256xf32>
    %cst_23 = arith.constant 0.000000e+00 : f32
    %30 = vector.broadcast %cst_23 : f32 to vector<168x256xf32>
    %31 = arith.maximumf %29, %30 : vector<168x256xf32>
    %32 = arith.truncf %31 : vector<168x256xf32> to vector<168x256xbf16>
    %c0_24 = arith.constant 0 : index
    %c0_25 = arith.constant 0 : index
    %33 = vector.load %arg10[%c0_24, %c0_25] : memref<256x256xbf16, #tpu.memory_space<vmem>>, vector<256x256xbf16>
    %c0_26 = arith.constant 0 : index
    %c0_27 = arith.constant 0 : index
    %34 = vector.load %arg11[%c0_26, %c0_27] : memref<1x256xf32, #tpu.memory_space<vmem>>, vector<1x256xf32>
    %cst_28 = arith.constant dense<0.000000e+00> : vector<168x256xf32>
    %35 = tpu.matmul %32, %33, %cst_28 {dimension_numbers = #tpu.dot_dimension_numbers<[1], [0], [0], [1], [0, 0, 1, 1], [], []>} : vector<168x256xbf16>, vector<256x256xbf16>, vector<168x256xf32> -> vector<168x256xf32>
    %36 = vector.broadcast %34 : vector<1x256xf32> to vector<168x256xf32>
    %37 = arith.addf %35, %36 : vector<168x256xf32>
    %cst_29 = arith.constant 0.000000e+00 : f32
    %38 = vector.broadcast %cst_29 : f32 to vector<168x256xf32>
    %39 = arith.maximumf %37, %38 : vector<168x256xf32>
    %40 = arith.truncf %39 : vector<168x256xf32> to vector<168x256xbf16>
    %c0_30 = arith.constant 0 : index
    %c0_31 = arith.constant 0 : index
    %41 = vector.load %arg12[%c0_30, %c0_31] : memref<8x256xbf16, #tpu.memory_space<vmem>>, vector<8x256xbf16>
    %c0_32 = arith.constant 0 : index
    %c0_33 = arith.constant 0 : index
    %42 = vector.load %arg13[%c0_32, %c0_33] : memref<256x256xbf16, #tpu.memory_space<vmem>>, vector<256x256xbf16>
    %c0_34 = arith.constant 0 : index
    %c0_35 = arith.constant 0 : index
    %43 = vector.load %arg14[%c0_34, %c0_35] : memref<1x256xf32, #tpu.memory_space<vmem>>, vector<1x256xf32>
    %c0_36 = arith.constant 0 : index
    %c0_37 = arith.constant 0 : index
    %44 = vector.load %arg1[%c0_36, %c0_37] : memref<168x8xbf16, #tpu.memory_space<vmem>>, vector<168x8xbf16>
    %cst_38 = arith.constant dense<0.000000e+00> : vector<168x256xf32>
    %45 = tpu.matmul %44, %41, %cst_38 {dimension_numbers = #tpu.dot_dimension_numbers<[1], [0], [0], [1], [0, 0, 1, 1], [], []>} : vector<168x8xbf16>, vector<8x256xbf16>, vector<168x256xf32> -> vector<168x256xf32>
    %cst_39 = arith.constant dense<0.000000e+00> : vector<168x256xf32>
    %46 = tpu.matmul %40, %42, %cst_39 {dimension_numbers = #tpu.dot_dimension_numbers<[1], [0], [0], [1], [0, 0, 1, 1], [], []>} : vector<168x256xbf16>, vector<256x256xbf16>, vector<168x256xf32> -> vector<168x256xf32>
    %47 = arith.addf %45, %46 : vector<168x256xf32>
    %48 = vector.broadcast %43 : vector<1x256xf32> to vector<168x256xf32>
    %49 = arith.addf %47, %48 : vector<168x256xf32>
    %cst_40 = arith.constant 0.000000e+00 : f32
    %50 = vector.broadcast %cst_40 : f32 to vector<168x256xf32>
    %51 = arith.maximumf %49, %50 : vector<168x256xf32>
    %52 = arith.truncf %51 : vector<168x256xf32> to vector<168x256xbf16>
    %c0_41 = arith.constant 0 : index
    %c0_42 = arith.constant 0 : index
    %53 = vector.load %arg15[%c0_41, %c0_42] : memref<256x256xbf16, #tpu.memory_space<vmem>>, vector<256x256xbf16>
    %c0_43 = arith.constant 0 : index
    %c0_44 = arith.constant 0 : index
    %54 = vector.load %arg16[%c0_43, %c0_44] : memref<1x256xf32, #tpu.memory_space<vmem>>, vector<1x256xf32>
    %cst_45 = arith.constant dense<0.000000e+00> : vector<168x256xf32>
    %55 = tpu.matmul %52, %53, %cst_45 {dimension_numbers = #tpu.dot_dimension_numbers<[1], [0], [0], [1], [0, 0, 1, 1], [], []>} : vector<168x256xbf16>, vector<256x256xbf16>, vector<168x256xf32> -> vector<168x256xf32>
    %56 = vector.broadcast %54 : vector<1x256xf32> to vector<168x256xf32>
    %57 = arith.addf %55, %56 : vector<168x256xf32>
    %cst_46 = arith.constant 0.000000e+00 : f32
    %58 = vector.broadcast %cst_46 : f32 to vector<168x256xf32>
    %59 = arith.maximumf %57, %58 : vector<168x256xf32>
    %60 = arith.truncf %59 : vector<168x256xf32> to vector<168x256xbf16>
    %c0_47 = arith.constant 0 : index
    %c0_48 = arith.constant 0 : index
    %61 = vector.load %arg17[%c0_47, %c0_48] : memref<256x256xbf16, #tpu.memory_space<vmem>>, vector<256x256xbf16>
    %c0_49 = arith.constant 0 : index
    %c0_50 = arith.constant 0 : index
    %62 = vector.load %arg18[%c0_49, %c0_50] : memref<1x256xf32, #tpu.memory_space<vmem>>, vector<1x256xf32>
    %cst_51 = arith.constant dense<0.000000e+00> : vector<168x256xf32>
    %63 = tpu.matmul %60, %61, %cst_51 {dimension_numbers = #tpu.dot_dimension_numbers<[1], [0], [0], [1], [0, 0, 1, 1], [], []>} : vector<168x256xbf16>, vector<256x256xbf16>, vector<168x256xf32> -> vector<168x256xf32>
    %64 = vector.broadcast %62 : vector<1x256xf32> to vector<168x256xf32>
    %65 = arith.addf %63, %64 : vector<168x256xf32>
    %cst_52 = arith.constant 0.000000e+00 : f32
    %66 = vector.broadcast %cst_52 : f32 to vector<168x256xf32>
    %67 = arith.maximumf %65, %66 : vector<168x256xf32>
    %68 = arith.truncf %67 : vector<168x256xf32> to vector<168x256xbf16>
    %c0_53 = arith.constant 0 : index
    %c0_54 = arith.constant 0 : index
    %69 = vector.load %arg19[%c0_53, %c0_54] : memref<256x128xbf16, #tpu.memory_space<vmem>>, vector<256x128xbf16>
    %c0_55 = arith.constant 0 : index
    %c0_56 = arith.constant 0 : index
    %70 = vector.load %arg20[%c0_55, %c0_56] : memref<1x128xf32, #tpu.memory_space<vmem>>, vector<1x128xf32>
    %cst_57 = arith.constant dense<0.000000e+00> : vector<168x128xf32>
    %71 = tpu.matmul %68, %69, %cst_57 {dimension_numbers = #tpu.dot_dimension_numbers<[1], [0], [0], [1], [0, 0, 1, 1], [], []>} : vector<168x256xbf16>, vector<256x128xbf16>, vector<168x128xf32> -> vector<168x128xf32>
    %72 = vector.broadcast %70 : vector<1x128xf32> to vector<168x128xf32>
    %73 = arith.addf %71, %72 : vector<168x128xf32>
    %74 = vector.extract_strided_slice %73 {offsets = [0, 0], sizes = [168, 4], strides = [1, 1]} : vector<168x128xf32> to vector<168x4xf32>
    %c0_58 = arith.constant 0 : index
    %c0_59 = arith.constant 0 : index
    %75 = vector.load %arg21[%c0_58, %c0_59] : memref<168x4xf32, #tpu.memory_space<vmem>>, vector<168x4xf32>
    tpu.vector_store %arg21[%c0_58, %c0_59], %74 {strides = array<i32>} : memref<168x4xf32, #tpu.memory_space<vmem>>, vector<168x4xf32>,
    return
  }
  func.func @transform_0(%arg0: i32) -> (i32, i32) {
    %c0_i32 = arith.constant 0 : i32
    %c0_i32_0 = arith.constant 0 : i32
    return %arg0, %c0_i32 : i32, i32
  }
  func.func @transform_1(%arg0: i32) -> (i32, i32) {
    %c0_i32 = arith.constant 0 : i32
    %c0_i32_0 = arith.constant 0 : i32
    %c0_i32_1 = arith.constant 0 : i32
    return %c0_i32, %c0_i32_0 : i32, i32
  }
  func.func @transform_2(%arg0: i32) -> (i32, i32) {
    %c0_i32 = arith.constant 0 : i32
    %c0_i32_0 = arith.constant 0 : i32
    %c0_i32_1 = arith.constant 0 : i32
    return %c0_i32, %c0_i32_0 : i32, i32
  }
  func.func @transform_3(%arg0: i32) -> (i32, i32) {
    %c0_i32 = arith.constant 0 : i32
    %c0_i32_0 = arith.constant 0 : i32
    %c0_i32_1 = arith.constant 0 : i32
    return %c0_i32, %c0_i32_0 : i32, i32
  }
  func.func @transform_4(%arg0: i32) -> (i32, i32) {
    %c0_i32 = arith.constant 0 : i32
    %c0_i32_0 = arith.constant 0 : i32
    %c0_i32_1 = arith.constant 0 : i32
    return %c0_i32, %c0_i32_0 : i32, i32
  }
  func.func @transform_5(%arg0: i32) -> (i32, i32) {
    %c0_i32 = arith.constant 0 : i32
    %c0_i32_0 = arith.constant 0 : i32
    %c0_i32_1 = arith.constant 0 : i32
    return %c0_i32, %c0_i32_0 : i32, i32
  }
  func.func @transform_6(%arg0: i32) -> (i32, i32) {
    %c0_i32 = arith.constant 0 : i32
    %c0_i32_0 = arith.constant 0 : i32
    %c0_i32_1 = arith.constant 0 : i32
    return %c0_i32, %c0_i32_0 : i32, i32
  }
  func.func @transform_7(%arg0: i32) -> (i32, i32) {
    %c0_i32 = arith.constant 0 : i32
    %c0_i32_0 = arith.constant 0 : i32
    %c0_i32_1 = arith.constant 0 : i32
    return %c0_i32, %c0_i32_0 : i32, i32
  }
  func.func @transform_8(%arg0: i32) -> (i32, i32) {
    %c0_i32 = arith.constant 0 : i32
    %c0_i32_0 = arith.constant 0 : i32
    %c0_i32_1 = arith.constant 0 : i32
    return %c0_i32, %c0_i32_0 : i32, i32
  }
  func.func @transform_9(%arg0: i32) -> (i32, i32) {
    %c0_i32 = arith.constant 0 : i32
    %c0_i32_0 = arith.constant 0 : i32
    %c0_i32_1 = arith.constant 0 : i32
    return %c0_i32, %c0_i32_0 : i32, i32
  }
  func.func @transform_10(%arg0: i32) -> (i32, i32) {
    %c0_i32 = arith.constant 0 : i32
    %c0_i32_0 = arith.constant 0 : i32
    %c0_i32_1 = arith.constant 0 : i32
    return %c0_i32, %c0_i32_0 : i32, i32
  }
  func.func @transform_11(%arg0: i32) -> (i32, i32) {
    %c0_i32 = arith.constant 0 : i32
    %c0_i32_0 = arith.constant 0 : i32
    %c0_i32_1 = arith.constant 0 : i32
    return %c0_i32, %c0_i32_0 : i32, i32
  }
  func.func @transform_12(%arg0: i32) -> (i32, i32) {
    %c0_i32 = arith.constant 0 : i32
    %c0_i32_0 = arith.constant 0 : i32
    %c0_i32_1 = arith.constant 0 : i32
    return %c0_i32, %c0_i32_0 : i32, i32
  }
  func.func @transform_13(%arg0: i32) -> (i32, i32) {
    %c0_i32 = arith.constant 0 : i32
    %c0_i32_0 = arith.constant 0 : i32
    %c0_i32_1 = arith.constant 0 : i32
    return %c0_i32, %c0_i32_0 : i32, i32
  }
  func.func @transform_14(%arg0: i32) -> (i32, i32) {
    %c0_i32 = arith.constant 0 : i32
    %c0_i32_0 = arith.constant 0 : i32
    %c0_i32_1 = arith.constant 0 : i32
    return %c0_i32, %c0_i32_0 : i32, i32
  }
  func.func @transform_15(%arg0: i32) -> (i32, i32) {
    %c0_i32 = arith.constant 0 : i32
    %c0_i32_0 = arith.constant 0 : i32
    %c0_i32_1 = arith.constant 0 : i32
    return %c0_i32, %c0_i32_0 : i32, i32
  }
  func.func @transform_16(%arg0: i32) -> (i32, i32) {
    %c0_i32 = arith.constant 0 : i32
    %c0_i32_0 = arith.constant 0 : i32
    %c0_i32_1 = arith.constant 0 : i32
    return %c0_i32, %c0_i32_0 : i32, i32
  }
  func.func @transform_17(%arg0: i32) -> (i32, i32) {
    %c0_i32 = arith.constant 0 : i32
    %c0_i32_0 = arith.constant 0 : i32
    %c0_i32_1 = arith.constant 0 : i32
    return %c0_i32, %c0_i32_0 : i32, i32
  }
  func.func @transform_18(%arg0: i32) -> (i32, i32) {
    %c0_i32 = arith.constant 0 : i32
    %c0_i32_0 = arith.constant 0 : i32
    %c0_i32_1 = arith.constant 0 : i32
    return %c0_i32, %c0_i32_0 : i32, i32
  }
  func.func @transform_19(%arg0: i32) -> (i32, i32) {
    %c0_i32 = arith.constant 0 : i32
    %c0_i32_0 = arith.constant 0 : i32
    %c0_i32_1 = arith.constant 0 : i32
    return %c0_i32, %c0_i32_0 : i32, i32
  }
  func.func @transform_20(%arg0: i32) -> (i32, i32) {
    %c0_i32 = arith.constant 0 : i32
    %c0_i32_0 = arith.constant 0 : i32
    return %arg0, %c0_i32 : i32, i32
  }
}

</mosaic_0001>

<bundles_post_ra>
// kernel: tpu_custom_call.1
= control target key start
LH: loop header
LB: loop body
LE: loop exit
PB: predicated region body
PF: predicated region fallthrough
CT: control target
= control target key end

     0   :  { %s6711_s0 = inlined_call_operand.vmem [shape: bf16[336,8], index: 0, kind: input, shape index: {}]   ;;  %s6712_s1 = inlined_call_operand.vmem [shape: bf16[8,256], index: 1, kind: input, shape index: {}]   ;;  %s6713_s2 = inlined_call_operand.vmem [shape: f32[1,256], index: 2, kind: input, shape index: {}]   ;;  %s6714_s3 = inlined_call_operand.hbm [shape: bf16[256,256], index: 3, kind: input, shape index: {}]   ;;  %s6715_s4 = inlined_call_operand.vmem [shape: f32[1,256], index: 4, kind: input, shape index: {}]   ;;  %s6716_s5 = inlined_call_operand.hbm [shape: bf16[256,256], index: 5, kind: input, shape index: {}]   ;;  %s6717_s6 = inlined_call_operand.vmem [shape: f32[1,256], index: 6, kind: input, shape index: {}]   ;;  %s6718_s7 = inlined_call_operand.hbm [shape: bf16[256,256], index: 7, kind: input, shape index: {}]   ;;  %s6719_s8 = inlined_call_operand.vmem [shape: f32[1,256], index: 8, kind: input, shape index: {}]   ;;  %s6720_s9 = inlined_call_operand.hbm [shape: bf16[256,256], index: 9, kind: input, shape index: {}]   ;;  %s6721_s10 = inlined_call_operand.vmem [shape: f32[1,256], index: 10, kind: input, shape index: {}]   ;;  %s6722_s11 = inlined_call_operand.vmem [shape: bf16[8,256], index: 11, kind: input, shape index: {}]   ;;  %s6723_s12 = inlined_call_operand.hbm [shape: bf16[256,256], index: 12, kind: input, shape index: {}]   ;;  %s6724_s13 = inlined_call_operand.vmem [shape: f32[1,256], index: 13, kind: input, shape index: {}]   ;;  %s6725_s14 = inlined_call_operand.hbm [shape: bf16[256,256], index: 14, kind: input, shape index: {}]   ;;  %s6726_s15 = inlined_call_operand.vmem [shape: f32[1,256], index: 15, kind: input, shape index: {}]   ;;  %s6727_s16 = inlined_call_operand.hbm [shape: bf16[256,256], index: 16, kind: input, shape index: {}]   ;;  %s6728_s17 = inlined_call_operand.vmem [shape: f32[1,256], index: 17, kind: input, shape index: {}]   ;;  %s6729_s18 = inlined_call_operand.vmem [shape: bf16[256,128], index: 18, kind: input, shape index: {}]   ;;  %s6730_s19 = inlined_call_operand.vmem [shape: f32[1,128], index: 19, kind: input, shape index: {}]   ;;  %s6731_s20 = inlined_call_operand.vmem [shape: f32[336,4], index: 20, kind: output, shape index: {}]  }
   0x1   :  { %6733 = sst [smem:[#allocation17_spill]] %s6711_s0 }
   0x2   :  { %6734 = sst [smem:[#allocation18_spill]] %s6712_s1 }
   0x3   :  { %6735 = sst [smem:[#allocation19_spill]] %s6713_s2 }
   0x4   :  { %6736 = sst [smem:[#allocation20_spill]] %s6714_s3 }
   0x5   :  { %6737 = sst [smem:[#allocation21_spill]] %s6715_s4 }
   0x6   :  { %6738 = sst [smem:[#allocation22_spill]] %s6716_s5 }
   0x7   :  { %6739 = sst [smem:[#allocation23_spill]] %s6720_s9 }
   0x8   :  { %25 = vsyncpa [#allocation3], 0 }
   0x9   :  { %26 = vsyncpa [#allocation5], 0 }
   0xa   :  { %27 = vsyncpa [#allocation8], 0 }
   0xb   :  { %28 = vsyncpa [#allocation11], 0  ;;  %s5732_s1 = smov 0  }
   0xc LB: > { %s6732_s22 = sadd.s32 4294967295, %s5615_s1   ;;  %p4536_p0 = scmp.ge.s32.totalorder %s5615_s1, 1  ;;  %s5615_s1 = sphi %s5732_s1, %s34_s1  }
   0xd   : > { %p490_p1 = scmp.lt.s32.totalorder %s5615_s1, 3  ;;  %p5742_p2 = scmp.eq.s32.totalorder %s6732_s22, 0 }
   0xe   : > { %s5617_s2 = smov [#allocation4]   ;;  %s5618_s3 = smov [#allocation7]  }
   0xf   : > { %p5746_p3 = pnand %p4536_p0, %p490_p1  ;;  %s524_s25 = sshll.u32 %s5617_s2, 4  ;;  %s525_s25 = int_to_ptr.vmem [resolvable:$true] %s524_s25 }
  0x10   : > { %s556_s26 = sshll.u32 %s5618_s3, 4  ;;  %s5619_s28 = smov [#allocation10]   ;;  %s5752_s26 = int_to_ptr.vmem [resolvable:$true] %s556_s26 }
  0x11   : > { %p4979_p4 = pneg %p5746_p3  ;;  %s591_s4 = sshll.u32 %s5619_s28, 4  ;;  %s5760_s4 = int_to_ptr.vmem [resolvable:$true] %s591_s4 }
  0x12   : > { %s5620_s29 = smov [#allocation2]   ;;  %s5422_s21 = scalar_lea.vmem %s525_s25, 4096 }
  0x13   : > { %p5756_p5 = pnand %p5742_p2, %p4979_p4  ;;  %s5762_s30 = sshll.u32 %s5620_s29, 4  ;;  %s509_s30 = int_to_ptr.vmem [resolvable:$true] %s5762_s30 }
  0x14   : > { %p5423_p7 = scmp.ne.s32.totalorder %s525_s25, %s5422_s21  ;;  %p5430_p10 = scmp.lt.s32.totalorder %s525_s25, %s525_s25 }
  0x15   : > { %p5766_p6 = pneg %p5756_p5  ;;  %p5431_p11 = scmp.lt.s32.totalorder %s5422_s21, %s5422_s21 }
  0x17   : > { %p5425_p8 = pnand %p5423_p7, %p5766_p6  ;;  %p5432_p12 = por %p5431_p11, %p5430_p10 }
  0x19   : > { %p5426_p9 = pneg %p5425_p8 }
  0x1b   : > { %p5433_p13 = pnand %p5432_p12, %p5426_p9 }
  0x1d   : > { %5436 = shalt.err (!%p5433_p13)
}
  0x1e   : > { %s5621_s2 = smov 128   ;;  %s5622_s3 = smov 8  }
  0x1f   : > { %s6744_s5 = sld [smem:[#allocation22_spill]]  ;;  %s5448_s22 = scalar_lea.vmem %s5752_s26, 4096 }
  0x20   : > { %p5449_p0 = scmp.ne.s32.totalorder %s5752_s26, %s5448_s22  ;;  %p5456_p7 = scmp.lt.s32.totalorder %s5752_s26, %s5752_s26 }
  0x21   : > { %p5457_p8 = scmp.lt.s32.totalorder %s5448_s22, %s5448_s22 }
  0x22   : > { %p5451_p1 = pnand %p5449_p0, %p5766_p6 }
  0x23   : > { %p5458_p9 = por %p5457_p8, %p5456_p7 }
  0x24   : > { %p5452_p4 = pneg %p5451_p1 }
  0x25   : > { %4985 = dma.hbm_to_vmem [thread:$0]  (!%p5756_p5), %s6744_s5, 4096, %s525_s25, [#allocation5], %s5621_s2, %s5621_s2, %s5622_s3  }
  0x26   : > { %p5459_p10 = pnand %p5458_p9, %p5452_p4 }
  0x28   : > { %5462 = shalt.err (!%p5459_p10)
}
  0x29   : > { %s6745_s9 = sld [smem:[#allocation23_spill]]  ;;  %s5474_s25 = scalar_lea.vmem %s5760_s4, 4096 }
  0x2a   : > { %p5475_p11 = scmp.ne.s32.totalorder %s5760_s4, %s5474_s25  ;;  %p5482_p0 = scmp.lt.s32.totalorder %s5760_s4, %s5760_s4 }
  0x2b   : > { %p5483_p1 = scmp.lt.s32.totalorder %s5474_s25, %s5474_s25 }
  0x2c   : > { %p5477_p12 = pnand %p5475_p11, %p5766_p6 }
  0x2d   : > { %p5484_p4 = por %p5483_p1, %p5482_p0 }
  0x2e   : > { %p5478_p13 = pneg %p5477_p12 }
  0x2f   : > { %4991 = dma.hbm_to_vmem [thread:$0]  (!%p5756_p5), %s6745_s9, 4096, %s5752_s26, [#allocation8], %s5621_s2, %s5621_s2, %s5622_s3  }
  0x30   : > { %p5485_p7 = pnand %p5484_p4, %p5478_p13 }
  0x32   : > { %5488 = shalt.err (!%p5485_p7)
}
  0x33   : > { %4997 = dma.hbm_to_vmem [thread:$0]  (!%p5756_p5), %s6725_s14, 4096, %s5760_s4, [#allocation11], %s5621_s2, %s5621_s2, %s5622_s3  }
  0x34   : > { %s5500_s26 = scalar_lea.vmem %s509_s30, 4096  ;;  %p5508_p11 = scmp.lt.s32.totalorder %s509_s30, %s509_s30 }
  0x35   : > { %p5501_p8 = scmp.ne.s32.totalorder %s509_s30, %s5500_s26  ;;  %p5509_p12 = scmp.lt.s32.totalorder %s5500_s26, %s5500_s26 }
  0x37   : > { %p5503_p9 = pnand %p5501_p8, %p5766_p6  ;;  %p5510_p13 = por %p5509_p12, %p5508_p11 }
  0x39   : > { %p5504_p10 = pneg %p5503_p9 }
  0x3b   : > { %p5511_p0 = pnand %p5510_p13, %p5504_p10 }
  0x3d   : > { %5514 = shalt.err (!%p5511_p0)
}
  0x3e   : > { %s6746_s25 = sld [smem:[#allocation20_spill]]  ;;  %s5623_s4 = smov [#allocation6]  }
  0x3f   : > { %s540_s22 = sshll.u32 %s5623_s4, 4  ;;  %s5624_s29 = smov [#allocation9]   ;;  %s541_s22 = int_to_ptr.vmem [resolvable:$true] %s540_s22 }
  0x40   : > { %s575_s5 = sshll.u32 %s5624_s29, 4  ;;  %s5526_s9 = scalar_lea.vmem %s541_s22, 4096  ;;  %s576_s5 = int_to_ptr.vmem [resolvable:$true] %s575_s5 }
  0x41   : > { %p5527_p1 = scmp.ne.s32.totalorder %s541_s22, %s5526_s9  ;;  %p5534_p8 = scmp.lt.s32.totalorder %s541_s22, %s541_s22 }
  0x42   : > { %p5535_p9 = scmp.lt.s32.totalorder %s5526_s9, %s5526_s9 }
  0x43   : > { %p5529_p4 = pnand %p5527_p1, %p5766_p6 }
  0x44   : > { %4982 = dma.hbm_to_vmem [thread:$0]  (!%p5756_p5), %s6746_s25, 4096, %s509_s30, [#allocation3], %s5621_s2, %s5621_s2, %s5622_s3  }
  0x45   : > { %p5530_p7 = pneg %p5529_p4  ;;  %p5536_p10 = por %p5535_p9, %p5534_p8 }
  0x47   : > { %p5537_p11 = pnand %p5536_p10, %p5530_p7 }
  0x49   : > { %5540 = shalt.err (!%p5537_p11)
}
  0x4a   : > { %4988 = dma.hbm_to_vmem [thread:$0]  (!%p5756_p5), %s6718_s7, 4096, %s541_s22, [#allocation5], %s5621_s2, %s5621_s2, %s5622_s3  }
  0x4b   : > { %s5552_s21 = scalar_lea.vmem %s576_s5, 4096  ;;  %p5560_p1 = scmp.lt.s32.totalorder %s576_s5, %s576_s5 }
  0x4c   : > { %p5553_p12 = scmp.ne.s32.totalorder %s576_s5, %s5552_s21  ;;  %p5561_p4 = scmp.lt.s32.totalorder %s5552_s21, %s5552_s21 }
  0x4e   : > { %p5555_p13 = pnand %p5553_p12, %p5766_p6  ;;  %p5562_p7 = por %p5561_p4, %p5560_p1 }
  0x50   : > { %p5556_p0 = pneg %p5555_p13 }
  0x52   : > { %p5563_p8 = pnand %p5562_p7, %p5556_p0 }
  0x54   : > { %5566 = shalt.err (!%p5563_p8)
}
  0x55   : > { %4994 = dma.hbm_to_vmem [thread:$0]  (!%p5756_p5), %s6723_s12, 4096, %s576_s5, [#allocation8], %s5621_s2, %s5621_s2, %s5622_s3  }
  0x56   : > { %s5625_s25 = smov [#allocation12]  }
  0x57   : > { %s607_s4 = sshll.u32 %s5625_s25, 4  ;;  %s608_s4 = int_to_ptr.vmem [resolvable:$true] %s607_s4 }
  0x58   : > { %s5578_s22 = scalar_lea.vmem %s608_s4, 4096  ;;  %p5586_p12 = scmp.lt.s32.totalorder %s608_s4, %s608_s4 }
  0x59   : > { %p5579_p9 = scmp.ne.s32.totalorder %s608_s4, %s5578_s22  ;;  %p5587_p13 = scmp.lt.s32.totalorder %s5578_s22, %s5578_s22 }
  0x5b   : > { %p5581_p10 = pnand %p5579_p9, %p5766_p6  ;;  %p5588_p0 = por %p5587_p13, %p5586_p12 }
  0x5d   : > { %p5582_p11 = pneg %p5581_p10 }
  0x5f   : > { %p5589_p1 = pnand %p5588_p0, %p5582_p11 }
  0x61   : > { %5592 = shalt.err (!%p5589_p1)
}
  0x62   : > { %5000 = dma.hbm_to_vmem [thread:$0]  (!%p5756_p5), %s6727_s16, 4096, %s608_s4, [#allocation11], %s5621_s2, %s5621_s2, %s5622_s3  }
  0x63   : > { %641 = sbr.rel (%p5746_p3) target bundleno = 2078 (0x81e), region = 100 }
  0x68   : > { %5598 = dma.done.wait (%p5742_p2), [#allocation3], 4096  }
  0x69   : > { %5600 = vsyncadd (%p5742_p2), [#allocation3], 4294963200 }
  0x6a   : > { %5602 = dma.done.wait (%p5742_p2), [#allocation5], 8192  }
  0x6b   : > { %5604 = vsyncadd (%p5742_p2), [#allocation5], 4294959104 }
  0x6c   : > { %5606 = dma.done.wait (%p5742_p2), [#allocation8], 8192  }
  0x6d   : > { %5608 = vsyncadd (%p5742_p2), [#allocation8], 4294959104 }
  0x6e   : > { %5610 = dma.done.wait (%p5742_p2), [#allocation11], 8192  }
  0x6f   : > { %5612 = vsyncadd (%p5742_p2), [#allocation11], 4294959104  ;;  %s6747_s24 = sadd.s32 4294967295, %s5615_s1   ;;  %v5626_v0 = vmov 0   ;;  %s6748_s30 = sld [smem:[#allocation18_spill]]  ;;  %vm862_vm0 = vcmask 1043456   ;;  %v760_v62 = vlaneseq }
  0x70   : > { %s723_s27 = smul.u32 21, %s6747_s24  ;;  %901 = vmatprep.mubr.bf16.mxu0 %v5626_v0  ;;  %s6749_s23 = sld [smem:[#allocation17_spill]]  ;;  %vm828_vm1 = vcmask 64512   ;;  %v5046_v7 = vld [vmem:[#allocation2 + $0x74] ss:$8 sps:$4 sm:$0xff]   ;;  %vm4387_vm2 = vcmask 31744  }
  0x71   : > { %v5048_v8 = vld [vmem:[#allocation2 + $0x70] ss:$8 sps:$4 sm:$0xff]   ;;  %1278 = vmatprep.subr.bf16.mxu1 %v5046_v7  ;;  %v5049_v9 = vld [vmem:[#allocation2 + $0x64] ss:$8 sps:$4 sm:$0xff]   ;;  %v5051_v10 = vld [vmem:[#allocation2 + $0x60] ss:$8 sps:$4 sm:$0xff]  }
  0x72   : > { %p724_p3 = scmp.lt.s32.totalorder %s723_s27, 41  ;;  %1279 = vmatpush1.bf16.msra.mxu1 %v5048_v8  ;;  %v5052_v11 = vld [vmem:[#allocation2 + $0x54] ss:$8 sps:$4 sm:$0xff]   ;;  %v5054_v13 = vld [vmem:[#allocation2 + $0x50] ss:$8 sps:$4 sm:$0xff]   ;;  %s6750_s4 = sld [smem:[#allocation19_spill]] }
  0x73   : > { %1280 = vmatprep.subr.bf16.mxu1 %v5049_v9  ;;  %v5055_v14 = vld [vmem:[#allocation2 + $0x44] ss:$8 sps:$4 sm:$0xff]   ;;  %v5057_v15 = vld [vmem:[#allocation2 + $0x40] ss:$8 sps:$4 sm:$0xff]   ;;  %v5058_v16 = vld [vmem:[#allocation2 + $0x34] ss:$8 sps:$4 sm:$0xff]  }
  0x74   : > { %s6753_s27 = smov (!%p724_p3, %s723_s27), 41  ;;  %v5060_v18 = vld [vmem:[#allocation2 + $0x30] ss:$8 sps:$4 sm:$0xff]   ;;  %v5061_v19 = vld [vmem:[#allocation2 + $0x24] ss:$8 sps:$4 sm:$0xff]   ;;  %s6751_s5 = sld [smem:[#allocation21_spill]] }
  0x75   : > { %s4553_s0 = sshll.u32 %s6753_s27, 2  ;;  %v736_v1 = vld [vmem:[%s6748_s30] sm:$0xff]  ;;  %v5064_v21 = vld [vmem:[#allocation2 + $0x14] ss:$8 sps:$4 sm:$0xff]   ;;  %v5066_v22 = vld [vmem:[#allocation2 + $0x10] ss:$8 sps:$4 sm:$0xff]  }
  0x76   : > { %s5881_s9 = scalar_lea.vmem %s6749_s23, %s4553_s0  ;;  %v4567_v2 = vcombine.high %v736_v1, %v736_v1  ;;  %v4566_v3 = vcombine.low %v736_v1, %v736_v1  ;;  %1281 = vmatpush1.bf16.msra.mxu1 %v5051_v10  ;;  %v5063_v20 = vld [vmem:[#allocation2 + $0x20] ss:$8 sps:$4 sm:$0xff]   ;;  %v5067_v24 = vld [vmem:[#allocation2 + $0x4] ss:$8 sps:$4 sm:$0xff]   ;;  %v5070_v26 = vld [vmem:[#allocation2 + $0xf4] ss:$8 sps:$4 sm:$0xff]  }
  0x77   : > { %v5035_v5 = vld [vmem:[%s5881_s9] sm:$0xff]   ;;  %v5036_v6 = vld [vmem:[%s5881_s9 + $0x8] sm:$0xff]   ;;  %v5037_v12 = vld [vmem:[%s5881_s9 + $0x10] sm:$0xff]   ;;  %1282 = vmatprep.subr.bf16.mxu1 %v5052_v11  ;;  %s4554_s0 = sshll.u32 %s6753_s27, 3 }
  0x78   : > { %4568 = vmatprep.subr.msk.bf16.mxu0 %vm862_vm0, %v4567_v2  ;;  %v864_v4 = vsel %vm862_vm0, %v4566_v3, 0  ;;  %v5038_v17 = vld [vmem:[%s5881_s9 + $0x18] sm:$0xff]   ;;  %v5039_v23 = vld [vmem:[%s5881_s9 + $0x20] sm:$0xff]   ;;  %v5040_v28 = vld [vmem:[%s5881_s9 + $0x28] sm:$0xff]   ;;  %v761_v2 = vshrl.u32 %v760_v62, 7  ;;  %s6643_s21 = scalar_lea.vmem %s6731_s20, %s4554_s0 }
  0x79   : > { %884 = vmatpush1.bf16.msra.mxu0 %v864_v4  ;;  %v5069_v25 = vld [vmem:[#allocation2] ss:$8 sps:$4 sm:$0xff]   ;;  %v5072_v27 = vld [vmem:[#allocation2 + $0xf0] ss:$8 sps:$4 sm:$0xff]   ;;  %v5073_v29 = vld [vmem:[#allocation2 + $0xe4] ss:$8 sps:$4 sm:$0xff]  }
  0x7a   : > { %1283 = vmatpush1.bf16.msra.mxu1 %v5054_v13  ;;  %v5075_v30 = vld [vmem:[#allocation2 + $0xe0] ss:$8 sps:$4 sm:$0xff]   ;;  %v5076_v31 = vld [vmem:[#allocation2 + $0xd4] ss:$8 sps:$4 sm:$0xff]   ;;  %v5078_v32 = vld [vmem:[#allocation2 + $0xd0] ss:$8 sps:$4 sm:$0xff]  }
  0x7b   : > { %1284 = vmatprep.subr.bf16.mxu1 %v5055_v14  ;;  %v5041_v33 = vld [vmem:[%s5881_s9 + $0x30] sm:$0xff]   ;;  %v5079_v34 = vld [vmem:[#allocation2 + $0xc4] ss:$8 sps:$4 sm:$0xff]   ;;  %v5081_v35 = vld [vmem:[#allocation2 + $0xc0] ss:$8 sps:$4 sm:$0xff]   ;;  %v5917_v4 = vsub.s32 1, %v761_v2 }
  0x7c   : > { %4569 = vmatmul.mubr.msk.bf16.vlgmr.msra.gmra.mxu0 %vm828_vm1, %v5035_v5  ;;  %v5082_v36 = vld [vmem:[#allocation2 + $0xb4] ss:$8 sps:$4 sm:$0xff]   ;;  %v5084_v37 = vld [vmem:[#allocation2 + $0xb0] ss:$8 sps:$4 sm:$0xff]   ;;  %v5043_v39 = vld [vmem:[%s5881_s9 + $0x40] sm:$0xff]  }
  0x7d   : > { %911 = vmatprep.mubr.bf16.mxu0 %v5626_v0  ;;  %v5042_v38 = vld [vmem:[%s5881_s9 + $0x38] sm:$0xff]   ;;  %v5085_v40 = vld [vmem:[#allocation2 + $0xa4] ss:$8 sps:$4 sm:$0xff]   ;;  %v5087_v41 = vld [vmem:[#allocation2 + $0xa0] ss:$8 sps:$4 sm:$0xff]  }
  0x7e   : > { %1285 = vmatpush1.bf16.msra.mxu1 %v5057_v15  ;;  %v5044_v42 = vld [vmem:[%s5881_s9 + $0x48] sm:$0xff]   ;;  %v5088_v43 = vld [vmem:[#allocation2 + $0x94] ss:$8 sps:$4 sm:$0xff]   ;;  %v5090_v44 = vld [vmem:[#allocation2 + $0x90] ss:$8 sps:$4 sm:$0xff]  }
  0x7f   : > { %1286 = vmatprep.subr.bf16.mxu1 %v5058_v16  ;;  %v5091_v45 = vld [vmem:[#allocation2 + $0x84] ss:$8 sps:$4 sm:$0xff]   ;;  %v5093_v46 = vld [vmem:[#allocation2 + $0x80] ss:$8 sps:$4 sm:$0xff]   ;;  %v5045_v47 = vld [vmem:[%s5881_s9 + $0x50] ss:$0 sps:$4 sm:$0xff]  }
  0x80   : > { %v5094_v48 = vld [vmem:[#allocation4 + $0x70] ss:$8 sps:$4 sm:$0xff]   ;;  %v5096_v49 = vld [vmem:[#allocation4 + $0x74] ss:$8 sps:$4 sm:$0xff]   ;;  %v5099_v50 = vld [vmem:[#allocation4 + $0x64] ss:$8 sps:$4 sm:$0xff]  }
  0x81   : > { %1687 = vmatprep.subr.bf16.mxu0 %v5096_v49  ;;  %v5097_v51 = vld [vmem:[#allocation4 + $0x60] ss:$8 sps:$4 sm:$0xff]   ;;  %v5102_v52 = vld [vmem:[#allocation4 + $0x54] ss:$8 sps:$4 sm:$0xff]   ;;  %v5100_v53 = vld [vmem:[#allocation4 + $0x50] ss:$8 sps:$4 sm:$0xff]  }
  0x82   : > { %1287 = vmatpush1.bf16.msra.mxu1 %v5060_v18  ;;  %1688 = vmatpush1.bf16.msra.mxu0 %v5094_v48  ;;  %v5105_v54 = vld [vmem:[#allocation4 + $0x44] ss:$8 sps:$4 sm:$0xff]   ;;  %v5103_v55 = vld [vmem:[#allocation4 + $0x40] ss:$8 sps:$4 sm:$0xff]   ;;  %v5108_v56 = vld [vmem:[#allocation4 + $0x34] ss:$8 sps:$4 sm:$0xff]  }
  0x83   : > { %1288 = vmatprep.subr.bf16.mxu1 %v5061_v19  ;;  %1689 = vmatprep.subr.bf16.mxu0 %v5099_v50  ;;  %v5106_v57 = vld [vmem:[#allocation4 + $0x30] ss:$8 sps:$4 sm:$0xff]   ;;  %v5111_v58 = vld [vmem:[#allocation4 + $0x24] ss:$8 sps:$4 sm:$0xff]   ;;  %v5109_v59 = vld [vmem:[#allocation4 + $0x20] ss:$8 sps:$4 sm:$0xff]  }
  0x84   : > { %4570 = vmatmul.mubr.msk.bf16.gmra.mxu0 %vm828_vm1, %v5036_v6  ;;  %v5114_v60 = vld [vmem:[#allocation4 + $0x14] ss:$8 sps:$4 sm:$0xff]   ;;  %v5112_v61 = vld [vmem:[#allocation4 + $0x10] ss:$8 sps:$4 sm:$0xff]   ;;  %v5117_v63 = vld [vmem:[#allocation4 + $0x4] ss:$8 sps:$4 sm:$0xff]  }
  0x85   : > { %921 = vmatprep.mubr.bf16.mxu0 %v5626_v0  ;;  %v5115_v1 = vld [vmem:[#allocation4] ss:$8 sps:$4 sm:$0xff]   ;;  %v5120_v3 = vld [vmem:[#allocation4 + $0xf4] ss:$8 sps:$4 sm:$0xff]   ;;  %v5118_v5 = vld [vmem:[#allocation4 + $0xf0] ss:$8 sps:$4 sm:$0xff]  }
  0x86   : > { %1289 = vmatpush1.bf16.msra.mxu1 %v5063_v20  ;;  %1690 = vmatpush1.bf16.msra.mxu0 %v5097_v51  ;;  %v5919_v6 = vsub.s32 0, %v761_v2  ;;  %v5123_v7 = vld [vmem:[#allocation4 + $0xe4] ss:$8 sps:$4 sm:$0xff]   ;;  %v737_v8 = vld [vmem:[%s6750_s4] sm:$0x3] }
  0x87   : > { %1290 = vmatprep.subr.bf16.mxu1 %v5064_v21  ;;  %1691 = vmatprep.subr.bf16.mxu0 %v5102_v52  ;;  %v5925_v10 = vrot.slane %v737_v8, %v5917_v4  ;;  %v5121_v11 = vld [vmem:[#allocation4 + $0xe0] ss:$8 sps:$4 sm:$0xff]   ;;  %v5126_v14 = vld [vmem:[#allocation4 + $0xd4] ss:$8 sps:$4 sm:$0xff]   ;;  %v5124_v18 = vld [vmem:[#allocation4 + $0xd0] ss:$8 sps:$4 sm:$0xff]  }
  0x88   : > { %v5129_v21 = vld [vmem:[#allocation4 + $0xc4] ss:$8 sps:$4 sm:$0xff]  }
  0x8a   : > { %1291 = vmatpush1.bf16.msra.mxu1 %v5066_v22  ;;  %1692 = vmatpush1.bf16.msra.mxu0 %v5100_v53 }
  0x8b   : > { %1292 = vmatprep.subr.bf16.mxu1 %v5067_v24  ;;  %1693 = vmatprep.subr.bf16.mxu0 %v5105_v54 }
  0x8c   : > { %4571 = vmatmul.mubr.msk.bf16.gmra.mxu0 %vm828_vm1, %v5037_v12  ;;  %v5928_v12 = vrot.slane %v737_v8, %v5919_v6 }
  0x8d   : > { %931 = vmatprep.mubr.bf16.mxu0 %v5626_v0 }
  0x8e   : > { %1293 = vmatpush1.bf16.msra.mxu1 %v5069_v25  ;;  %1694 = vmatpush1.bf16.msra.mxu0 %v5103_v55 }
  0x8f   : > { %1294 = vmatprep.subr.bf16.mxu1 %v5070_v26  ;;  %1695 = vmatprep.subr.bf16.mxu0 %v5108_v56 }
  0x92   : > { %1295 = vmatpush2.bf16.msra.mxu1 %v5072_v27  ;;  %1696 = vmatpush1.bf16.msra.mxu0 %v5106_v57  ;;  %v5127_v27 = vld [vmem:[#allocation4 + $0xc0] ss:$8 sps:$4 sm:$0xff]  }
  0x93   : > { %1296 = vmatprep.subr.bf16.mxu1 %v5073_v29  ;;  %1697 = vmatprep.subr.bf16.mxu0 %v5111_v58 }
  0x94   : > { %4572 = vmatmul.mubr.msk.bf16.gmra.mxu0 %vm828_vm1, %v5038_v17 }
  0x95   : > { %941 = vmatprep.mubr.bf16.mxu0 %v5626_v0 }
  0x96   : > { %1297 = vmatpush2.bf16.msra.mxu1 %v5075_v30  ;;  %1698 = vmatpush1.bf16.msra.mxu0 %v5109_v59  ;;  %v5132_v30 = vld [vmem:[#allocation4 + $0xb4] ss:$8 sps:$4 sm:$0xff]  }
  0x97   : > { %1298 = vmatprep.subr.bf16.mxu1 %v5076_v31  ;;  %1699 = vmatprep.subr.bf16.mxu0 %v5114_v60 }
  0x9a   : > { %1299 = vmatpush2.bf16.msra.mxu1 %v5078_v32  ;;  %1700 = vmatpush1.bf16.msra.mxu0 %v5112_v61 }
  0x9b   : > { %1300 = vmatprep.subr.bf16.mxu1 %v5079_v34  ;;  %1701 = vmatprep.subr.bf16.mxu0 %v5117_v63 }
  0x9c   : > { %4573 = vmatmul.mubr.msk.bf16.gmra.mxu0 %vm828_vm1, %v5039_v23 }
  0x9d   : > { %951 = vmatprep.mubr.bf16.mxu0 %v5626_v0 }
  0x9e   : > { %1301 = vmatpush2.bf16.msra.mxu1 %v5081_v35  ;;  %1702 = vmatpush1.bf16.msra.mxu0 %v5115_v1 }
  0x9f   : > { %1302 = vmatprep.subr.bf16.mxu1 %v5082_v36  ;;  %1703 = vmatprep.subr.bf16.mxu0 %v5120_v3  ;;  %v5130_v36 = vld [vmem:[#allocation4 + $0xb0] ss:$8 sps:$4 sm:$0xff]  }
  0xa2   : > { %1303 = vmatpush2.bf16.msra.mxu1 %v5084_v37  ;;  %1704 = vmatpush2.bf16.msra.mxu0 %v5118_v5 }
  0xa3   : > { %1304 = vmatprep.subr.bf16.mxu1 %v5085_v40  ;;  %1705 = vmatprep.subr.bf16.mxu0 %v5123_v7 }
  0xa4   : > { %4574 = vmatmul.mubr.msk.bf16.gmra.mxu0 %vm828_vm1, %v5040_v28 }
  0xa5   : > { %961 = vmatprep.mubr.bf16.mxu0 %v5626_v0 }
  0xa6   : > { %1305 = vmatpush2.bf16.msra.mxu1 %v5087_v41  ;;  %1706 = vmatpush2.bf16.msra.mxu0 %v5121_v11 }
  0xa7   : > { %1306 = vmatprep.subr.bf16.mxu1 %v5088_v43  ;;  %1707 = vmatprep.subr.bf16.mxu0 %v5126_v14 }
  0xaa   : > { %1307 = vmatpush2.bf16.msra.mxu1 %v5090_v44  ;;  %1708 = vmatpush2.bf16.msra.mxu0 %v5124_v18 }
  0xab   : > { %1308 = vmatprep.subr.bf16.mxu1 %v5091_v45  ;;  %1709 = vmatprep.subr.bf16.mxu0 %v5129_v21  ;;  %v5133_v45 = vld [vmem:[#allocation4 + $0xa0] ss:$8 sps:$4 sm:$0xff]  }
  0xac   : > { %4575 = vmatmul.mubr.msk.bf16.gmra.mxu0 %vm828_vm1, %v5041_v33 }
  0xad   : > { %971 = vmatprep.mubr.bf16.mxu0 %v5626_v0 }
  0xae   : > { %1309 = vmatpush2.bf16.msra.mxu1 %v5093_v46  ;;  %1710 = vmatpush2.bf16.msra.mxu0 %v5127_v27 }
  0xaf   : > { %1711 = vmatprep.subr.bf16.mxu0 %v5132_v30 }
  0xb2   : > { %1712 = vmatpush2.bf16.msra.mxu0 %v5130_v36 }
  0xb4   : > { %4576 = vmatmul.mubr.msk.bf16.gmra.mxu0 %vm828_vm1, %v5042_v38 }
  0xb5   : > { %981 = vmatprep.mubr.bf16.mxu0 %v5626_v0 }
  0xbc   : > { %4577 = vmatmul.mubr.msk.bf16.gmra.mxu0 %vm828_vm1, %v5043_v39  ;;  %v5135_v39 = vld [vmem:[#allocation4 + $0xa4] ss:$8 sps:$4 sm:$0xff]  }
  0xbd   : > { %991 = vmatprep.mubr.bf16.mxu0 %v5626_v0  ;;  %1713 = vmatprep.subr.bf16.mxu0 %v5135_v39 }
  0xbe   : > { %1714 = vmatpush2.bf16.msra.mxu0 %v5133_v45 }
  0xc4   : > { %4578 = vmatmul.mubr.msk.bf16.gmra.mxu0 %vm828_vm1, %v5044_v42 }
  0xc5   : > { %1001 = vmatprep.mubr.bf16.mxu0 %v5626_v0 }
  0xcc   : > { %4579 = vmatmul.mubr.msk.bf16.gmra.mxu0 %vm828_vm1, %v5045_v47 }
 0x13c   : > { %v903_v9 = vpop.f32.mrf.mxu0 }
 0x13d   : > { %v904_v19 = vadd.f32 %v903_v9, %v5928_v12 }
 0x13e   : > { %v905_v13 = vpop.f32.mrf.mxu0 }
 0x13f   : > { %v906_v16 = vadd.f32 %v905_v13, %v5925_v10  ;;  %v1010_v28 = vmax.f32 %v904_v19, 0.0 }
 0x140   : > { %v907_v15 = vpop.f32.mrf.mxu0 }
 0x141   : > { %v908_v17 = vadd.f32 %v907_v15, %v5928_v12  ;;  %v1011_v25 = vmax.f32 %v906_v16, 0.0 }
 0x142   : > { %v909_v20 = vpop.f32.mrf.mxu0 }
 0x143   : > { %v910_v22 = vadd.f32 %v909_v20, %v5925_v10  ;;  %v1012_v23 = vmax.f32 %v908_v17, 0.0 }
 0x144   : > { %v913_v24 = vpop.f32.mrf.mxu0 }
 0x145   : > { %v1013_v26 = vmax.f32 %v910_v22, 0.0  ;;  %v1052_v32 = vpack.c.bf16 %v1012_v23, %v1010_v28  ;;  %v914_v37 = vadd.f32 %v913_v24, %v5928_v12 }
 0x146   : > { %v915_v29 = vpop.f32.mrf.mxu0 }
 0x147   : > { %v1053_v31 = vpack.c.bf16 %v1013_v26, %v1011_v25  ;;  %v916_v34 = vadd.f32 %v915_v29, %v5925_v10  ;;  %v1014_v46 = vmax.f32 %v914_v37, 0.0 }
 0x148   : > { %v917_v33 = vpop.f32.mrf.mxu0 }
 0x149   : > { %v918_v35 = vadd.f32 %v917_v33, %v5928_v12  ;;  %1310 = vmatprep.mubr.bf16.mxu1 %v1053_v31  ;;  %v1015_v43 = vmax.f32 %v916_v34, 0.0 }
 0x14a   : > { %v919_v38 = vpop.f32.mrf.mxu0  ;;  %1311 = vmatmul.mubr.bf16.vlgmr.msra.gmra.mxu1 %v1052_v32 }
 0x14b   : > { %v920_v40 = vadd.f32 %v919_v38, %v5925_v10  ;;  %v1016_v41 = vmax.f32 %v918_v35, 0.0 }
 0x14c   : > { %v923_v42 = vpop.f32.mrf.mxu0 }
 0x14d   : > { %v1017_v44 = vmax.f32 %v920_v40, 0.0  ;;  %v1054_v49 = vpack.c.bf16 %v1016_v41, %v1014_v46  ;;  %v924_v53 = vadd.f32 %v923_v42, %v5928_v12 }
 0x14e   : > { %v925_v47 = vpop.f32.mrf.mxu0 }
 0x14f   : > { %v1055_v48 = vpack.c.bf16 %v1017_v44, %v1015_v43  ;;  %v926_v51 = vadd.f32 %v925_v47, %v5925_v10  ;;  %v1018_v60 = vmax.f32 %v924_v53, 0.0 }
 0x150   : > { %v927_v50 = vpop.f32.mrf.mxu0 }
 0x151   : > { %v928_v52 = vadd.f32 %v927_v50, %v5928_v12  ;;  %1320 = vmatprep.mubr.bf16.mxu1 %v1055_v48  ;;  %v1019_v58 = vmax.f32 %v926_v51, 0.0 }
 0x152   : > { %v929_v54 = vpop.f32.mrf.mxu0  ;;  %1321 = vmatmul.mubr.bf16.gmra.mxu1 %v1054_v49 }
 0x153   : > { %v930_v55 = vadd.f32 %v929_v54, %v5925_v10  ;;  %v1020_v56 = vmax.f32 %v928_v52, 0.0 }
 0x154   : > { %v933_v57 = vpop.f32.mrf.mxu0 }
 0x155   : > { %v1021_v59 = vmax.f32 %v930_v55, 0.0  ;;  %v934_v61 = vadd.f32 %v933_v57, %v5928_v12  ;;  %v1056_v2 = vpack.c.bf16 %v1020_v56, %v1018_v60 }
 0x156   : > { %v935_v62 = vpop.f32.mrf.mxu0 }
 0x157   : > { %v936_v63 = vadd.f32 %v935_v62, %v5925_v10  ;;  %v1057_v1 = vpack.c.bf16 %v1021_v59, %v1019_v58  ;;  %v1022_v7 = vmax.f32 %v934_v61, 0.0 }
 0x158   : > { %v937_v3 = vpop.f32.mrf.mxu0 }
 0x159   : > { %v938_v5 = vadd.f32 %v937_v3, %v5928_v12  ;;  %1330 = vmatprep.mubr.bf16.mxu1 %v1057_v1  ;;  %v1023_v9 = vmax.f32 %v936_v63, 0.0 }
 0x15a   : > { %v939_v8 = vpop.f32.mrf.mxu0  ;;  %1331 = vmatmul.mubr.bf16.gmra.mxu1 %v1056_v2 }
 0x15b   : > { %v1024_v11 = vmax.f32 %v938_v5, 0.0  ;;  %v940_v13 = vadd.f32 %v939_v8, %v5925_v10 }
 0x15c   : > { %v943_v14 = vpop.f32.mrf.mxu0 }
 0x15d   : > { %v1025_v15 = vmax.f32 %v940_v13, 0.0  ;;  %v1058_v16 = vpack.c.bf16 %v1024_v11, %v1022_v7  ;;  %v944_v17 = vadd.f32 %v943_v14, %v5928_v12 }
 0x15e   : > { %v945_v18 = vpop.f32.mrf.mxu0 }
 0x15f   : > { %v946_v19 = vadd.f32 %v945_v18, %v5925_v10  ;;  %v1059_v20 = vpack.c.bf16 %v1025_v15, %v1023_v9  ;;  %v1026_v23 = vmax.f32 %v944_v17, 0.0 }
 0x160   : > { %v947_v21 = vpop.f32.mrf.mxu0 }
 0x161   : > { %v948_v22 = vadd.f32 %v947_v21, %v5928_v12  ;;  %1340 = vmatprep.mubr.bf16.mxu1 %v1059_v20  ;;  %v1027_v25 = vmax.f32 %v946_v19, 0.0 }
 0x162   : > { %v949_v24 = vpop.f32.mrf.mxu0  ;;  %1341 = vmatmul.mubr.bf16.gmra.mxu1 %v1058_v16 }
 0x163   : > { %v1028_v26 = vmax.f32 %v948_v22, 0.0  ;;  %v950_v27 = vadd.f32 %v949_v24, %v5925_v10 }
 0x164   : > { %v953_v28 = vpop.f32.mrf.mxu0 }
 0x165   : > { %v1029_v29 = vmax.f32 %v950_v27, 0.0  ;;  %v1060_v30 = vpack.c.bf16 %v1028_v26, %v1026_v23  ;;  %v954_v31 = vadd.f32 %v953_v28, %v5928_v12 }
 0x166   : > { %v955_v32 = vpop.f32.mrf.mxu0 }
 0x167   : > { %v956_v33 = vadd.f32 %v955_v32, %v5925_v10  ;;  %v1061_v34 = vpack.c.bf16 %v1029_v29, %v1027_v25  ;;  %v1030_v37 = vmax.f32 %v954_v31, 0.0 }
 0x168   : > { %v957_v35 = vpop.f32.mrf.mxu0 }
 0x169   : > { %v958_v36 = vadd.f32 %v957_v35, %v5928_v12  ;;  %1350 = vmatprep.mubr.bf16.mxu1 %v1061_v34  ;;  %v1031_v39 = vmax.f32 %v956_v33, 0.0 }
 0x16a   : > { %v959_v38 = vpop.f32.mrf.mxu0  ;;  %1351 = vmatmul.mubr.bf16.gmra.mxu1 %v1060_v30 }
 0x16b   : > { %v1032_v40 = vmax.f32 %v958_v36, 0.0  ;;  %v960_v41 = vadd.f32 %v959_v38, %v5925_v10 }
 0x16c   : > { %v963_v42 = vpop.f32.mrf.mxu0 }
 0x16d   : > { %v1033_v43 = vmax.f32 %v960_v41, 0.0  ;;  %v1062_v44 = vpack.c.bf16 %v1032_v40, %v1030_v37  ;;  %v964_v45 = vadd.f32 %v963_v42, %v5928_v12 }
 0x16e   : > { %v965_v46 = vpop.f32.mrf.mxu0 }
 0x16f   : > { %v966_v47 = vadd.f32 %v965_v46, %v5925_v10  ;;  %v1063_v48 = vpack.c.bf16 %v1033_v43, %v1031_v39  ;;  %v1034_v51 = vmax.f32 %v964_v45, 0.0 }
 0x170   : > { %v967_v49 = vpop.f32.mrf.mxu0 }
 0x171   : > { %v968_v50 = vadd.f32 %v967_v49, %v5928_v12  ;;  %1360 = vmatprep.mubr.bf16.mxu1 %v1063_v48  ;;  %v1035_v53 = vmax.f32 %v966_v47, 0.0  ;;  %v5136_v47 = vld [vmem:[#allocation4 + $0x90] ss:$8 sps:$4 sm:$0xff]  }
 0x172   : > { %v969_v52 = vpop.f32.mrf.mxu0  ;;  %1361 = vmatmul.mubr.bf16.gmra.mxu1 %v1062_v44  ;;  %v5138_v44 = vld [vmem:[#allocation4 + $0x94] ss:$8 sps:$4 sm:$0xff]  }
 0x173   : > { %v1036_v54 = vmax.f32 %v968_v50, 0.0  ;;  %v970_v55 = vadd.f32 %v969_v52, %v5925_v10  ;;  %1715 = vmatprep.subr.bf16.mxu0 %v5138_v44  ;;  %v5141_v52 = vld [vmem:[#allocation4 + $0x84] ss:$8 sps:$4 sm:$0xff]  }
 0x174   : > { %v973_v56 = vpop.f32.mrf.mxu0  ;;  %1716 = vmatpush2.bf16.msra.mxu0 %v5136_v47 }
 0x175   : > { %v1037_v57 = vmax.f32 %v970_v55, 0.0  ;;  %v1064_v58 = vpack.c.bf16 %v1036_v54, %v1034_v51  ;;  %v974_v59 = vadd.f32 %v973_v56, %v5928_v12  ;;  %v5139_v54 = vld [vmem:[#allocation4 + $0x80] ss:$8 sps:$4 sm:$0xff]   ;;  %1717 = vmatprep.subr.bf16.mxu0 %v5141_v52  ;;  %v5142_v55 = vld [vmem:[#allocation6 + $0x70] ss:$8 sps:$4 sm:$0xff]  }
 0x176   : > { %v975_v60 = vpop.f32.mrf.mxu0  ;;  %v5144_v56 = vld [vmem:[#allocation6 + $0x74] ss:$8 sps:$4 sm:$0xff]  }
 0x177   : > { %v976_v61 = vadd.f32 %v975_v60, %v5925_v10  ;;  %v1065_v62 = vpack.c.bf16 %v1037_v57, %v1035_v53  ;;  %v1038_v2 = vmax.f32 %v974_v59, 0.0  ;;  %2096 = vmatprep.subr.bf16.mxu1 %v5144_v56  ;;  %v5145_v57 = vld [vmem:[#allocation6 + $0x60] ss:$8 sps:$4 sm:$0xff]   ;;  %v5148_v59 = vld [vmem:[#allocation6 + $0x50] ss:$8 sps:$4 sm:$0xff]  }
 0x178   : > { %v977_v63 = vpop.f32.mrf.mxu0  ;;  %1718 = vmatpush2.bf16.msra.mxu0 %v5139_v54  ;;  %2097 = vmatpush1.bf16.msra.mxu1 %v5142_v55  ;;  %v5153_v60 = vld [vmem:[#allocation6 + $0x44] ss:$8 sps:$4 sm:$0xff]  }
 0x179   : > { %v978_v1 = vadd.f32 %v977_v63, %v5928_v12  ;;  %1370 = vmatprep.mubr.bf16.mxu1 %v1065_v62  ;;  %v1039_v5 = vmax.f32 %v976_v61, 0.0  ;;  %v5151_v61 = vld [vmem:[#allocation6 + $0x40] ss:$8 sps:$4 sm:$0xff]   ;;  %v5156_v62 = vld [vmem:[#allocation6 + $0x34] ss:$8 sps:$4 sm:$0xff]  }
 0x17a   : > { %v979_v3 = vpop.f32.mrf.mxu0  ;;  %1371 = vmatmul.mubr.bf16.gmra.mxu1 %v1064_v58  ;;  %v5150_v58 = vld [vmem:[#allocation6 + $0x54] ss:$8 sps:$4 sm:$0xff]   ;;  %v5154_v63 = vld [vmem:[#allocation6 + $0x30] ss:$8 sps:$4 sm:$0xff]  }
 0x17b   : > { %v1040_v7 = vmax.f32 %v978_v1, 0.0  ;;  %v980_v8 = vadd.f32 %v979_v3, %v5925_v10  ;;  %v5159_v1 = vld [vmem:[#allocation6 + $0x24] ss:$8 sps:$4 sm:$0xff]   ;;  %v5162_v3 = vld [vmem:[#allocation6 + $0x14] ss:$8 sps:$4 sm:$0xff]  }
 0x17c   : > { %v983_v9 = vpop.f32.mrf.mxu0 }
 0x17d   : > { %v1041_v11 = vmax.f32 %v980_v8, 0.0  ;;  %v1066_v13 = vpack.c.bf16 %v1040_v7, %v1038_v2  ;;  %v984_v14 = vadd.f32 %v983_v9, %v5928_v12  ;;  %v5157_v2 = vld [vmem:[#allocation6 + $0x20] ss:$8 sps:$4 sm:$0xff]   ;;  %v5165_v7 = vld [vmem:[#allocation6 + $0x4] ss:$8 sps:$4 sm:$0xff]  }
 0x17e   : > { %v985_v15 = vpop.f32.mrf.mxu0  ;;  %v5163_v8 = vld [vmem:[#allocation6] ss:$8 sps:$4 sm:$0xff]   ;;  %v5168_v9 = vld [vmem:[#allocation6 + $0xf4] ss:$8 sps:$4 sm:$0xff]  }
 0x17f   : > { %v986_v16 = vadd.f32 %v985_v15, %v5925_v10  ;;  %v1067_v17 = vpack.c.bf16 %v1041_v11, %v1039_v5  ;;  %v1042_v20 = vmax.f32 %v984_v14, 0.0  ;;  %v5160_v5 = vld [vmem:[#allocation6 + $0x10] ss:$8 sps:$4 sm:$0xff]   ;;  %v1106_v14 = vld [vmem:[%s6751_s5] sm:$0x3] }
 0x180   : > { %v987_v18 = vpop.f32.mrf.mxu0  ;;  %v5166_v11 = vld [vmem:[#allocation6 + $0xf0] ss:$8 sps:$4 sm:$0xff]  }
 0x181   : > { %v988_v19 = vadd.f32 %v987_v18, %v5928_v12  ;;  %1380 = vmatprep.mubr.bf16.mxu1 %v1067_v17  ;;  %v1043_v22 = vmax.f32 %v986_v16, 0.0  ;;  %v5976_v16 = vrot.slane %v1106_v14, %v5917_v4  ;;  %v5169_v17 = vld [vmem:[#allocation6 + $0xe0] ss:$8 sps:$4 sm:$0xff]   ;;  %v5979_v18 = vrot.slane %v1106_v14, %v5919_v6 }
 0x182   : > { %v989_v21 = vpop.f32.mrf.mxu0  ;;  %1381 = vmatmul.mubr.bf16.gmra.mxu1 %v1066_v13  ;;  %v5171_v13 = vld [vmem:[#allocation6 + $0xe4] ss:$8 sps:$4 sm:$0xff]  }
 0x183   : > { %v1044_v23 = vmax.f32 %v988_v19, 0.0  ;;  %v990_v24 = vadd.f32 %v989_v21, %v5925_v10 }
 0x184   : > { %v993_v25 = vpop.f32.mrf.mxu0 }
 0x185   : > { %v1045_v26 = vmax.f32 %v990_v24, 0.0  ;;  %v1068_v27 = vpack.c.bf16 %v1044_v23, %v1042_v20  ;;  %v994_v28 = vadd.f32 %v993_v25, %v5928_v12  ;;  %v5174_v20 = vld [vmem:[#allocation6 + $0xd4] ss:$8 sps:$4 sm:$0xff]   ;;  %v5172_v24 = vld [vmem:[#allocation6 + $0xd0] ss:$8 sps:$4 sm:$0xff]  }
 0x186   : > { %v995_v29 = vpop.f32.mrf.mxu0 }
 0x187   : > { %v996_v30 = vadd.f32 %v995_v29, %v5925_v10  ;;  %v1069_v31 = vpack.c.bf16 %v1045_v26, %v1043_v22  ;;  %v1046_v34 = vmax.f32 %v994_v28, 0.0 }
 0x188   : > { %v997_v32 = vpop.f32.mrf.mxu0 }
 0x189   : > { %v998_v33 = vadd.f32 %v997_v32, %v5928_v12  ;;  %1390 = vmatprep.mubr.bf16.mxu1 %v1069_v31  ;;  %v1047_v36 = vmax.f32 %v996_v30, 0.0 }
 0x18a   : > { %v999_v35 = vpop.f32.mrf.mxu0  ;;  %1391 = vmatmul.mubr.bf16.gmra.mxu1 %v1068_v27  ;;  %v5177_v27 = vld [vmem:[#allocation6 + $0xc4] ss:$8 sps:$4 sm:$0xff]  }
 0x18b   : > { %v1048_v37 = vmax.f32 %v998_v33, 0.0  ;;  %v1000_v38 = vadd.f32 %v999_v35, %v5925_v10  ;;  %v5175_v33 = vld [vmem:[#allocation6 + $0xc0] ss:$8 sps:$4 sm:$0xff]  }
 0x18c   : > { %v1003_v39 = vpop.f32.mrf.mxu0 }
 0x18d   : > { %v1049_v40 = vmax.f32 %v1000_v38, 0.0  ;;  %v1070_v41 = vpack.c.bf16 %v1048_v37, %v1046_v34  ;;  %v1004_v42 = vadd.f32 %v1003_v39, %v5928_v12 }
 0x18e   : > { %v1005_v43 = vpop.f32.mrf.mxu0 }
 0x18f   : > { %v1071_v45 = vpack.c.bf16 %v1049_v40, %v1047_v36  ;;  %v1006_v46 = vadd.f32 %v1005_v43, %v5925_v10  ;;  %v1050_v50 = vmax.f32 %v1004_v42, 0.0  ;;  %v5147_v10 = vld [vmem:[#allocation6 + $0x64] ss:$8 sps:$4 sm:$0xff]   ;;  %v5180_v36 = vld [vmem:[#allocation6 + $0xb4] ss:$8 sps:$4 sm:$0xff]  }
 0x190   : > { %v1007_v48 = vpop.f32.mrf.mxu0  ;;  %2098 = vmatprep.subr.bf16.mxu1 %v5147_v10  ;;  %v5178_v42 = vld [vmem:[#allocation6 + $0xb0] ss:$8 sps:$4 sm:$0xff]  }
 0x191   : > { %1400 = vmatprep.mubr.bf16.mxu1 %v1071_v45  ;;  %v1051_v49 = vmax.f32 %v1006_v46, 0.0  ;;  %v1072_v12 = vpack.c.bf16 %v1050_v50, %v1050_v50  ;;  %2099 = vmatpush1.bf16.msra.mxu1 %v5145_v57  ;;  %v5183_v45 = vld [vmem:[#allocation6 + $0xa4] ss:$8 sps:$4 sm:$0xff]  }
 0x192   : > { %1401 = vmatmul.mubr.bf16.gmra.mxu1 %v1070_v41  ;;  %v1008_v51 = vpop.f32.mrf.mxu0  ;;  %2100 = vmatprep.subr.bf16.mxu1 %v5150_v58 }
 0x193   : > { %v1073_v53 = vpack.c.bf16 %v1051_v49, %v1051_v49  ;;  %v5181_v51 = vld [vmem:[#allocation6 + $0xa0] ss:$8 sps:$4 sm:$0xff]  }
 0x195   : > { %1410 = vmatprep.mubr.bf16.mxu1 %v1073_v53  ;;  %2101 = vmatpush1.bf16.msra.mxu1 %v5148_v59 }
 0x196   : > { %2102 = vmatprep.subr.bf16.mxu1 %v5153_v60 }
 0x199   : > { %2103 = vmatpush1.bf16.msra.mxu1 %v5151_v61 }
 0x19a   : > { %1411 = vmatmul.mubr.bf16.gmra.mxu1 %v1072_v12  ;;  %2104 = vmatprep.subr.bf16.mxu1 %v5156_v62 }
 0x19d   : > { %2105 = vmatpush1.bf16.msra.mxu1 %v5154_v63 }
 0x19e   : > { %2106 = vmatprep.subr.bf16.mxu1 %v5159_v1 }
 0x1a1   : > { %2107 = vmatpush1.bf16.msra.mxu1 %v5157_v2 }
 0x1a2   : > { %2108 = vmatprep.subr.bf16.mxu1 %v5162_v3 }
 0x1a5   : > { %2109 = vmatpush1.bf16.msra.mxu1 %v5160_v5 }
 0x1a6   : > { %2110 = vmatprep.subr.bf16.mxu1 %v5165_v7 }
 0x1a9   : > { %2111 = vmatpush1.bf16.msra.mxu1 %v5163_v8 }
 0x1aa   : > { %2112 = vmatprep.subr.bf16.mxu1 %v5168_v9 }
 0x1ad   : > { %2113 = vmatpush2.bf16.msra.mxu1 %v5166_v11 }
 0x1ae   : > { %2114 = vmatprep.subr.bf16.mxu1 %v5171_v13 }
 0x1b1   : > { %2115 = vmatpush2.bf16.msra.mxu1 %v5169_v17 }
 0x1b2   : > { %2116 = vmatprep.subr.bf16.mxu1 %v5174_v20 }
 0x1b5   : > { %2117 = vmatpush2.bf16.msra.mxu1 %v5172_v24 }
 0x1b6   : > { %2118 = vmatprep.subr.bf16.mxu1 %v5177_v27 }
 0x1b9   : > { %2119 = vmatpush2.bf16.msra.mxu1 %v5175_v33 }
 0x1ba   : > { %2120 = vmatprep.subr.bf16.mxu1 %v5180_v36 }
 0x1bd   : > { %2121 = vmatpush2.bf16.msra.mxu1 %v5178_v42 }
 0x1be   : > { %2122 = vmatprep.subr.bf16.mxu1 %v5183_v45 }
 0x1c1   : > { %2123 = vmatpush2.bf16.msra.mxu1 %v5181_v51 }
 0x20a   : > { %v1312_v15 = vpop.f32.mrf.mxu1 }
 0x20b   : > { %v1313_v25 = vadd.f32 %v1312_v15, %v5979_v18 }
 0x20c   : > { %v1314_v19 = vpop.f32.mrf.mxu1 }
 0x20d   : > { %v1315_v22 = vadd.f32 %v1314_v19, %v5976_v16  ;;  %v1419_v34 = vmax.f32 %v1313_v25, 0.0 }
 0x20e   : > { %v1316_v21 = vpop.f32.mrf.mxu1 }
 0x20f   : > { %v1317_v23 = vadd.f32 %v1316_v21, %v5979_v18  ;;  %v1420_v31 = vmax.f32 %v1315_v22, 0.0 }
 0x210   : > { %v1318_v26 = vpop.f32.mrf.mxu1 }
 0x211   : > { %v1319_v28 = vadd.f32 %v1318_v26, %v5976_v16  ;;  %v1421_v29 = vmax.f32 %v1317_v23, 0.0 }
 0x212   : > { %v1322_v30 = vpop.f32.mrf.mxu1 }
 0x213   : > { %v1422_v32 = vmax.f32 %v1319_v28, 0.0  ;;  %v1461_v38 = vpack.c.bf16 %v1421_v29, %v1419_v34  ;;  %v1323_v43 = vadd.f32 %v1322_v30, %v5979_v18 }
 0x214   : > { %v1324_v35 = vpop.f32.mrf.mxu1 }
 0x215   : > { %v1462_v37 = vpack.c.bf16 %v1422_v32, %v1420_v31  ;;  %v1325_v40 = vadd.f32 %v1324_v35, %v5976_v16  ;;  %v1423_v52 = vmax.f32 %v1323_v43, 0.0 }
 0x216   : > { %v1326_v39 = vpop.f32.mrf.mxu1 }
 0x217   : > { %v1327_v41 = vadd.f32 %v1326_v39, %v5979_v18  ;;  %1719 = vmatprep.mubr.bf16.mxu0 %v1462_v37  ;;  %v1424_v49 = vmax.f32 %v1325_v40, 0.0 }
 0x218   : > { %v1328_v44 = vpop.f32.mrf.mxu1  ;;  %1720 = vmatmul.mubr.bf16.vlgmr.msra.gmra.mxu0 %v1461_v38 }
 0x219   : > { %v1329_v46 = vadd.f32 %v1328_v44, %v5976_v16  ;;  %v1425_v47 = vmax.f32 %v1327_v41, 0.0 }
 0x21a   : > { %v1332_v48 = vpop.f32.mrf.mxu1 }
 0x21b   : > { %v1426_v50 = vmax.f32 %v1329_v46, 0.0  ;;  %v1463_v12 = vpack.c.bf16 %v1425_v47, %v1423_v52  ;;  %v1333_v57 = vadd.f32 %v1332_v48, %v5979_v18 }
 0x21c   : > { %v1334_v53 = vpop.f32.mrf.mxu1 }
 0x21d   : > { %v1464_v54 = vpack.c.bf16 %v1426_v50, %v1424_v49  ;;  %v1335_v56 = vadd.f32 %v1334_v53, %v5976_v16  ;;  %v1427_v1 = vmax.f32 %v1333_v57, 0.0 }
 0x21e   : > { %v1336_v55 = vpop.f32.mrf.mxu1 }
 0x21f   : > { %v1337_v10 = vadd.f32 %v1336_v55, %v5979_v18  ;;  %1729 = vmatprep.mubr.bf16.mxu0 %v1464_v54  ;;  %v1428_v62 = vmax.f32 %v1335_v56, 0.0 }
 0x220   : > { %v1338_v58 = vpop.f32.mrf.mxu1  ;;  %1730 = vmatmul.mubr.bf16.gmra.mxu0 %v1463_v12 }
 0x221   : > { %v1339_v59 = vadd.f32 %v1338_v58, %v5976_v16  ;;  %v1429_v60 = vmax.f32 %v1337_v10, 0.0 }
 0x222   : > { %v1342_v61 = vpop.f32.mrf.mxu1 }
 0x223   : > { %v1430_v63 = vmax.f32 %v1339_v59, 0.0  ;;  %v1343_v2 = vadd.f32 %v1342_v61, %v5979_v18  ;;  %v1465_v8 = vpack.c.bf16 %v1429_v60, %v1427_v1 }
 0x224   : > { %v1344_v3 = vpop.f32.mrf.mxu1 }
 0x225   : > { %v1345_v5 = vadd.f32 %v1344_v3, %v5976_v16  ;;  %v1466_v7 = vpack.c.bf16 %v1430_v63, %v1428_v62  ;;  %v1431_v13 = vmax.f32 %v1343_v2, 0.0 }
 0x226   : > { %v1346_v9 = vpop.f32.mrf.mxu1 }
 0x227   : > { %v1347_v11 = vadd.f32 %v1346_v9, %v5979_v18  ;;  %1739 = vmatprep.mubr.bf16.mxu0 %v1466_v7  ;;  %v1432_v15 = vmax.f32 %v1345_v5, 0.0 }
 0x228   : > { %v1348_v14 = vpop.f32.mrf.mxu1  ;;  %1740 = vmatmul.mubr.bf16.gmra.mxu0 %v1465_v8 }
 0x229   : > { %v1433_v17 = vmax.f32 %v1347_v11, 0.0  ;;  %v1349_v19 = vadd.f32 %v1348_v14, %v5976_v16 }
 0x22a   : > { %v1352_v20 = vpop.f32.mrf.mxu1 }
 0x22b   : > { %v1434_v21 = vmax.f32 %v1349_v19, 0.0  ;;  %v1467_v22 = vpack.c.bf16 %v1433_v17, %v1431_v13  ;;  %v1353_v23 = vadd.f32 %v1352_v20, %v5979_v18 }
 0x22c   : > { %v1354_v24 = vpop.f32.mrf.mxu1 }
 0x22d   : > { %v1355_v25 = vadd.f32 %v1354_v24, %v5976_v16  ;;  %v1468_v26 = vpack.c.bf16 %v1434_v21, %v1432_v15  ;;  %v1435_v29 = vmax.f32 %v1353_v23, 0.0 }
 0x22e   : > { %v1356_v27 = vpop.f32.mrf.mxu1 }
 0x22f   : > { %v1357_v28 = vadd.f32 %v1356_v27, %v5979_v18  ;;  %1749 = vmatprep.mubr.bf16.mxu0 %v1468_v26  ;;  %v1436_v31 = vmax.f32 %v1355_v25, 0.0 }
 0x230   : > { %v1358_v30 = vpop.f32.mrf.mxu1  ;;  %1750 = vmatmul.mubr.bf16.gmra.mxu0 %v1467_v22 }
 0x231   : > { %v1437_v32 = vmax.f32 %v1357_v28, 0.0  ;;  %v1359_v33 = vadd.f32 %v1358_v30, %v5976_v16 }
 0x232   : > { %v1362_v34 = vpop.f32.mrf.mxu1 }
 0x233   : > { %v1438_v35 = vmax.f32 %v1359_v33, 0.0  ;;  %v1469_v36 = vpack.c.bf16 %v1437_v32, %v1435_v29  ;;  %v1363_v37 = vadd.f32 %v1362_v34, %v5979_v18 }
 0x234   : > { %v1364_v38 = vpop.f32.mrf.mxu1 }
 0x235   : > { %v1365_v39 = vadd.f32 %v1364_v38, %v5976_v16  ;;  %v1470_v40 = vpack.c.bf16 %v1438_v35, %v1436_v31  ;;  %v1439_v43 = vmax.f32 %v1363_v37, 0.0 }
 0x236   : > { %v1366_v41 = vpop.f32.mrf.mxu1 }
 0x237   : > { %v1367_v42 = vadd.f32 %v1366_v41, %v5979_v18  ;;  %1759 = vmatprep.mubr.bf16.mxu0 %v1470_v40  ;;  %v1440_v45 = vmax.f32 %v1365_v39, 0.0 }
 0x238   : > { %v1368_v44 = vpop.f32.mrf.mxu1  ;;  %1760 = vmatmul.mubr.bf16.gmra.mxu0 %v1469_v36 }
 0x239   : > { %v1441_v46 = vmax.f32 %v1367_v42, 0.0  ;;  %v1369_v47 = vadd.f32 %v1368_v44, %v5976_v16 }
 0x23a   : > { %v1372_v48 = vpop.f32.mrf.mxu1 }
 0x23b   : > { %v1442_v49 = vmax.f32 %v1369_v47, 0.0  ;;  %v1471_v50 = vpack.c.bf16 %v1441_v46, %v1439_v43  ;;  %v1373_v51 = vadd.f32 %v1372_v48, %v5979_v18 }
 0x23c   : > { %v1374_v52 = vpop.f32.mrf.mxu1 }
 0x23d   : > { %v1375_v53 = vadd.f32 %v1374_v52, %v5976_v16  ;;  %v1472_v54 = vpack.c.bf16 %v1442_v49, %v1440_v45  ;;  %v1443_v56 = vmax.f32 %v1373_v51, 0.0 }
 0x23e   : > { %v1376_v12 = vpop.f32.mrf.mxu1 }
 0x23f   : > { %v1377_v55 = vadd.f32 %v1376_v12, %v5979_v18  ;;  %1769 = vmatprep.mubr.bf16.mxu0 %v1472_v54  ;;  %v1444_v57 = vmax.f32 %v1375_v53, 0.0  ;;  %v5184_v53 = vld [vmem:[#allocation6 + $0x90] ss:$8 sps:$4 sm:$0xff]  }
 0x240   : > { %v1378_v10 = vpop.f32.mrf.mxu1  ;;  %1770 = vmatmul.mubr.bf16.gmra.mxu0 %v1471_v50  ;;  %v5186_v50 = vld [vmem:[#allocation6 + $0x94] ss:$8 sps:$4 sm:$0xff]  }
 0x241   : > { %v1445_v58 = vmax.f32 %v1377_v55, 0.0  ;;  %v1379_v59 = vadd.f32 %v1378_v10, %v5976_v16  ;;  %2124 = vmatprep.subr.bf16.mxu1 %v5186_v50  ;;  %v5189_v10 = vld [vmem:[#allocation6 + $0x84] ss:$8 sps:$4 sm:$0xff]  }
 0x242   : > { %v1382_v60 = vpop.f32.mrf.mxu1  ;;  %2125 = vmatpush2.bf16.msra.mxu1 %v5184_v53 }
 0x243   : > { %v1446_v61 = vmax.f32 %v1379_v59, 0.0  ;;  %v1473_v62 = vpack.c.bf16 %v1445_v58, %v1443_v56  ;;  %v1383_v63 = vadd.f32 %v1382_v60, %v5979_v18  ;;  %v5187_v58 = vld [vmem:[#allocation6 + $0x80] ss:$8 sps:$4 sm:$0xff]   ;;  %2126 = vmatprep.subr.bf16.mxu1 %v5189_v10  ;;  %v5190_v59 = vld [vmem:[#allocation7 + $0x70] ss:$8 sps:$4 sm:$0xff]  }
 0x244   : > { %v1384_v1 = vpop.f32.mrf.mxu1  ;;  %v5192_v60 = vld [vmem:[#allocation7 + $0x74] ss:$8 sps:$4 sm:$0xff]  }
 0x245   : > { %v1385_v2 = vadd.f32 %v1384_v1, %v5976_v16  ;;  %v1474_v3 = vpack.c.bf16 %v1446_v61, %v1444_v57  ;;  %v1447_v8 = vmax.f32 %v1383_v63, 0.0  ;;  %2505 = vmatprep.subr.bf16.mxu0 %v5192_v60  ;;  %v5193_v61 = vld [vmem:[#allocation7 + $0x60] ss:$8 sps:$4 sm:$0xff]   ;;  %v5196_v63 = vld [vmem:[#allocation7 + $0x50] ss:$8 sps:$4 sm:$0xff]  }
 0x246   : > { %v1386_v5 = vpop.f32.mrf.mxu1  ;;  %2127 = vmatpush2.bf16.msra.mxu1 %v5187_v58  ;;  %2506 = vmatpush1.bf16.msra.mxu0 %v5190_v59  ;;  %v5201_v1 = vld [vmem:[#allocation7 + $0x44] ss:$8 sps:$4 sm:$0xff]  }
 0x247   : > { %v1387_v7 = vadd.f32 %v1386_v5, %v5979_v18  ;;  %1779 = vmatprep.mubr.bf16.mxu0 %v1474_v3  ;;  %v1448_v11 = vmax.f32 %v1385_v2, 0.0  ;;  %v5199_v2 = vld [vmem:[#allocation7 + $0x40] ss:$8 sps:$4 sm:$0xff]   ;;  %v5204_v3 = vld [vmem:[#allocation7 + $0x34] ss:$8 sps:$4 sm:$0xff]  }
 0x248   : > { %v1388_v9 = vpop.f32.mrf.mxu1  ;;  %1780 = vmatmul.mubr.bf16.gmra.mxu0 %v1473_v62  ;;  %v5198_v62 = vld [vmem:[#allocation7 + $0x54] ss:$8 sps:$4 sm:$0xff]   ;;  %v5202_v5 = vld [vmem:[#allocation7 + $0x30] ss:$8 sps:$4 sm:$0xff]  }
 0x249   : > { %v1449_v13 = vmax.f32 %v1387_v7, 0.0  ;;  %v1389_v14 = vadd.f32 %v1388_v9, %v5976_v16  ;;  %v5207_v7 = vld [vmem:[#allocation7 + $0x24] ss:$8 sps:$4 sm:$0xff]   ;;  %v5210_v9 = vld [vmem:[#allocation7 + $0x14] ss:$8 sps:$4 sm:$0xff]  }
 0x24a   : > { %v1392_v15 = vpop.f32.mrf.mxu1 }
 0x24b   : > { %v1450_v17 = vmax.f32 %v1389_v14, 0.0  ;;  %v1475_v19 = vpack.c.bf16 %v1449_v13, %v1447_v8  ;;  %v1393_v20 = vadd.f32 %v1392_v15, %v5979_v18  ;;  %v5205_v8 = vld [vmem:[#allocation7 + $0x20] ss:$8 sps:$4 sm:$0xff]   ;;  %v5213_v13 = vld [vmem:[#allocation7 + $0x4] ss:$8 sps:$4 sm:$0xff]  }
 0x24c   : > { %v1394_v21 = vpop.f32.mrf.mxu1  ;;  %v5211_v14 = vld [vmem:[#allocation7] ss:$8 sps:$4 sm:$0xff]   ;;  %v5216_v15 = vld [vmem:[#allocation7 + $0xf4] ss:$8 sps:$4 sm:$0xff]  }
 0x24d   : > { %v1395_v22 = vadd.f32 %v1394_v21, %v5976_v16  ;;  %v1476_v23 = vpack.c.bf16 %v1450_v17, %v1448_v11  ;;  %v1451_v26 = vmax.f32 %v1393_v20, 0.0  ;;  %v5208_v11 = vld [vmem:[#allocation7 + $0x10] ss:$8 sps:$4 sm:$0xff]   ;;  %v1515_v20 = vld [vmem:[%s6717_s6] sm:$0x3] }
 0x24e   : > { %v1396_v24 = vpop.f32.mrf.mxu1  ;;  %v5214_v17 = vld [vmem:[#allocation7 + $0xf0] ss:$8 sps:$4 sm:$0xff]  }
 0x24f   : > { %v1397_v25 = vadd.f32 %v1396_v24, %v5979_v18  ;;  %1789 = vmatprep.mubr.bf16.mxu0 %v1476_v23  ;;  %v1452_v28 = vmax.f32 %v1395_v22, 0.0  ;;  %v6027_v22 = vrot.slane %v1515_v20, %v5917_v4  ;;  %v5217_v23 = vld [vmem:[#allocation7 + $0xe0] ss:$8 sps:$4 sm:$0xff]   ;;  %v6030_v24 = vrot.slane %v1515_v20, %v5919_v6 }
 0x250   : > { %v1398_v27 = vpop.f32.mrf.mxu1  ;;  %1790 = vmatmul.mubr.bf16.gmra.mxu0 %v1475_v19  ;;  %v5219_v19 = vld [vmem:[#allocation7 + $0xe4] ss:$8 sps:$4 sm:$0xff]  }
 0x251   : > { %v1453_v29 = vmax.f32 %v1397_v25, 0.0  ;;  %v1399_v30 = vadd.f32 %v1398_v27, %v5976_v16 }
 0x252   : > { %v1402_v31 = vpop.f32.mrf.mxu1 }
 0x253   : > { %v1454_v32 = vmax.f32 %v1399_v30, 0.0  ;;  %v1477_v33 = vpack.c.bf16 %v1453_v29, %v1451_v26  ;;  %v1403_v34 = vadd.f32 %v1402_v31, %v5979_v18  ;;  %v5222_v26 = vld [vmem:[#allocation7 + $0xd4] ss:$8 sps:$4 sm:$0xff]   ;;  %v5220_v30 = vld [vmem:[#allocation7 + $0xd0] ss:$8 sps:$4 sm:$0xff]  }
 0x254   : > { %v1404_v35 = vpop.f32.mrf.mxu1 }
 0x255   : > { %v1405_v36 = vadd.f32 %v1404_v35, %v5976_v16  ;;  %v1478_v37 = vpack.c.bf16 %v1454_v32, %v1452_v28  ;;  %v1455_v40 = vmax.f32 %v1403_v34, 0.0 }
 0x256   : > { %v1406_v38 = vpop.f32.mrf.mxu1 }
 0x257   : > { %v1407_v39 = vadd.f32 %v1406_v38, %v5979_v18  ;;  %1799 = vmatprep.mubr.bf16.mxu0 %v1478_v37  ;;  %v1456_v42 = vmax.f32 %v1405_v36, 0.0 }
 0x258   : > { %v1408_v41 = vpop.f32.mrf.mxu1  ;;  %1800 = vmatmul.mubr.bf16.gmra.mxu0 %v1477_v33  ;;  %v5225_v33 = vld [vmem:[#allocation7 + $0xc4] ss:$8 sps:$4 sm:$0xff]  }
 0x259   : > { %v1457_v43 = vmax.f32 %v1407_v39, 0.0  ;;  %v1409_v44 = vadd.f32 %v1408_v41, %v5976_v16  ;;  %v5223_v39 = vld [vmem:[#allocation7 + $0xc0] ss:$8 sps:$4 sm:$0xff]  }
 0x25a   : > { %v1412_v45 = vpop.f32.mrf.mxu1 }
 0x25b   : > { %v1458_v46 = vmax.f32 %v1409_v44, 0.0  ;;  %v1479_v47 = vpack.c.bf16 %v1457_v43, %v1455_v40  ;;  %v1413_v48 = vadd.f32 %v1412_v45, %v5979_v18 }
 0x25c   : > { %v1414_v49 = vpop.f32.mrf.mxu1 }
 0x25d   : > { %v1480_v51 = vpack.c.bf16 %v1458_v46, %v1456_v42  ;;  %v1415_v52 = vadd.f32 %v1414_v49, %v5976_v16  ;;  %v1459_v55 = vmax.f32 %v1413_v48, 0.0  ;;  %v5195_v16 = vld [vmem:[#allocation7 + $0x64] ss:$8 sps:$4 sm:$0xff]   ;;  %v5228_v42 = vld [vmem:[#allocation7 + $0xb4] ss:$8 sps:$4 sm:$0xff]  }
 0x25e   : > { %v1416_v54 = vpop.f32.mrf.mxu1  ;;  %2507 = vmatprep.subr.bf16.mxu0 %v5195_v16  ;;  %v5226_v48 = vld [vmem:[#allocation7 + $0xb0] ss:$8 sps:$4 sm:$0xff]  }
 0x25f   : > { %1809 = vmatprep.mubr.bf16.mxu0 %v1480_v51  ;;  %v1460_v12 = vmax.f32 %v1415_v52, 0.0  ;;  %v1481_v18 = vpack.c.bf16 %v1459_v55, %v1459_v55  ;;  %2508 = vmatpush1.bf16.msra.mxu0 %v5193_v61  ;;  %v5231_v51 = vld [vmem:[#allocation7 + $0xa4] ss:$8 sps:$4 sm:$0xff]  }
 0x260   : > { %1810 = vmatmul.mubr.bf16.gmra.mxu0 %v1479_v47  ;;  %v1417_v56 = vpop.f32.mrf.mxu1  ;;  %2509 = vmatprep.subr.bf16.mxu0 %v5198_v62 }
 0x261   : > { %v1482_v57 = vpack.c.bf16 %v1460_v12, %v1460_v12  ;;  %v5229_v56 = vld [vmem:[#allocation7 + $0xa0] ss:$8 sps:$4 sm:$0xff]  }
 0x263   : > { %1819 = vmatprep.mubr.bf16.mxu0 %v1482_v57  ;;  %2510 = vmatpush1.bf16.msra.mxu0 %v5196_v63 }
 0x264   : > { %2511 = vmatprep.subr.bf16.mxu0 %v5201_v1 }
 0x267   : > { %2512 = vmatpush1.bf16.msra.mxu0 %v5199_v2 }
 0x268   : > { %1820 = vmatmul.mubr.bf16.gmra.mxu0 %v1481_v18  ;;  %2513 = vmatprep.subr.bf16.mxu0 %v5204_v3 }
 0x26b   : > { %2514 = vmatpush1.bf16.msra.mxu0 %v5202_v5 }
 0x26c   : > { %2515 = vmatprep.subr.bf16.mxu0 %v5207_v7 }
 0x26f   : > { %2516 = vmatpush1.bf16.msra.mxu0 %v5205_v8 }
 0x270   : > { %2517 = vmatprep.subr.bf16.mxu0 %v5210_v9 }
 0x273   : > { %2518 = vmatpush1.bf16.msra.mxu0 %v5208_v11 }
 0x274   : > { %2519 = vmatprep.subr.bf16.mxu0 %v5213_v13 }
 0x277   : > { %2520 = vmatpush1.bf16.msra.mxu0 %v5211_v14 }
 0x278   : > { %2521 = vmatprep.subr.bf16.mxu0 %v5216_v15 }
 0x27b   : > { %2522 = vmatpush2.bf16.msra.mxu0 %v5214_v17 }
 0x27c   : > { %2523 = vmatprep.subr.bf16.mxu0 %v5219_v19 }
 0x27f   : > { %2524 = vmatpush2.bf16.msra.mxu0 %v5217_v23 }
 0x280   : > { %2525 = vmatprep.subr.bf16.mxu0 %v5222_v26 }
 0x283   : > { %2526 = vmatpush2.bf16.msra.mxu0 %v5220_v30 }
 0x284   : > { %2527 = vmatprep.subr.bf16.mxu0 %v5225_v33 }
 0x287   : > { %2528 = vmatpush2.bf16.msra.mxu0 %v5223_v39 }
 0x288   : > { %2529 = vmatprep.subr.bf16.mxu0 %v5228_v42 }
 0x28b   : > { %2530 = vmatpush2.bf16.msra.mxu0 %v5226_v48 }
 0x28c   : > { %2531 = vmatprep.subr.bf16.mxu0 %v5231_v51 }
 0x28f   : > { %2532 = vmatpush2.bf16.msra.mxu0 %v5229_v56 }
 0x2d8   : > { %v1721_v21 = vpop.f32.mrf.mxu0 }
 0x2d9   : > { %v1722_v31 = vadd.f32 %v1721_v21, %v6030_v24 }
 0x2da   : > { %v1723_v25 = vpop.f32.mrf.mxu0 }
 0x2db   : > { %v1724_v28 = vadd.f32 %v1723_v25, %v6027_v22  ;;  %v1828_v40 = vmax.f32 %v1722_v31, 0.0 }
 0x2dc   : > { %v1725_v27 = vpop.f32.mrf.mxu0 }
 0x2dd   : > { %v1726_v29 = vadd.f32 %v1725_v27, %v6030_v24  ;;  %v1829_v37 = vmax.f32 %v1724_v28, 0.0 }
 0x2de   : > { %v1727_v32 = vpop.f32.mrf.mxu0 }
 0x2df   : > { %v1728_v34 = vadd.f32 %v1727_v32, %v6027_v22  ;;  %v1830_v35 = vmax.f32 %v1726_v29, 0.0 }
 0x2e0   : > { %v1731_v36 = vpop.f32.mrf.mxu0 }
 0x2e1   : > { %v1831_v38 = vmax.f32 %v1728_v34, 0.0  ;;  %v1870_v44 = vpack.c.bf16 %v1830_v35, %v1828_v40  ;;  %v1732_v49 = vadd.f32 %v1731_v36, %v6030_v24 }
 0x2e2   : > { %v1733_v41 = vpop.f32.mrf.mxu0 }
 0x2e3   : > { %v1871_v43 = vpack.c.bf16 %v1831_v38, %v1829_v37  ;;  %v1734_v46 = vadd.f32 %v1733_v41, %v6027_v22  ;;  %v1832_v10 = vmax.f32 %v1732_v49, 0.0 }
 0x2e4   : > { %v1735_v45 = vpop.f32.mrf.mxu0 }
 0x2e5   : > { %v1736_v47 = vadd.f32 %v1735_v45, %v6030_v24  ;;  %2128 = vmatprep.mubr.bf16.mxu1 %v1871_v43  ;;  %v1833_v12 = vmax.f32 %v1734_v46, 0.0 }
 0x2e6   : > { %v1737_v50 = vpop.f32.mrf.mxu0  ;;  %2129 = vmatmul.mubr.bf16.vlgmr.msra.gmra.mxu1 %v1870_v44 }
 0x2e7   : > { %v1738_v52 = vadd.f32 %v1737_v50, %v6027_v22  ;;  %v1834_v53 = vmax.f32 %v1736_v47, 0.0 }
 0x2e8   : > { %v1741_v54 = vpop.f32.mrf.mxu0 }
 0x2e9   : > { %v1835_v55 = vmax.f32 %v1738_v52, 0.0  ;;  %v1872_v18 = vpack.c.bf16 %v1834_v53, %v1832_v10  ;;  %v1742_v61 = vadd.f32 %v1741_v54, %v6030_v24 }
 0x2ea   : > { %v1743_v57 = vpop.f32.mrf.mxu0 }
 0x2eb   : > { %v1873_v58 = vpack.c.bf16 %v1835_v55, %v1833_v12  ;;  %v1744_v60 = vadd.f32 %v1743_v57, %v6027_v22  ;;  %v1836_v7 = vmax.f32 %v1742_v61, 0.0 }
 0x2ec   : > { %v1745_v59 = vpop.f32.mrf.mxu0 }
 0x2ed   : > { %v1746_v16 = vadd.f32 %v1745_v59, %v6030_v24  ;;  %2138 = vmatprep.mubr.bf16.mxu1 %v1873_v58  ;;  %v1837_v3 = vmax.f32 %v1744_v60, 0.0 }
 0x2ee   : > { %v1747_v62 = vpop.f32.mrf.mxu0  ;;  %2139 = vmatmul.mubr.bf16.gmra.mxu1 %v1872_v18 }
 0x2ef   : > { %v1748_v63 = vadd.f32 %v1747_v62, %v6027_v22  ;;  %v1838_v1 = vmax.f32 %v1746_v16, 0.0 }
 0x2f0   : > { %v1751_v2 = vpop.f32.mrf.mxu0 }
 0x2f1   : > { %v1839_v5 = vmax.f32 %v1748_v63, 0.0  ;;  %v1752_v8 = vadd.f32 %v1751_v2, %v6030_v24  ;;  %v1874_v14 = vpack.c.bf16 %v1838_v1, %v1836_v7 }
 0x2f2   : > { %v1753_v9 = vpop.f32.mrf.mxu0 }
 0x2f3   : > { %v1754_v11 = vadd.f32 %v1753_v9, %v6027_v22  ;;  %v1875_v13 = vpack.c.bf16 %v1839_v5, %v1837_v3  ;;  %v1840_v19 = vmax.f32 %v1752_v8, 0.0 }
 0x2f4   : > { %v1755_v15 = vpop.f32.mrf.mxu0 }
 0x2f5   : > { %v1756_v17 = vadd.f32 %v1755_v15, %v6030_v24  ;;  %2148 = vmatprep.mubr.bf16.mxu1 %v1875_v13  ;;  %v1841_v21 = vmax.f32 %v1754_v11, 0.0 }
 0x2f6   : > { %v1757_v20 = vpop.f32.mrf.mxu0  ;;  %2149 = vmatmul.mubr.bf16.gmra.mxu1 %v1874_v14 }
 0x2f7   : > { %v1842_v23 = vmax.f32 %v1756_v17, 0.0  ;;  %v1758_v25 = vadd.f32 %v1757_v20, %v6027_v22 }
 0x2f8   : > { %v1761_v26 = vpop.f32.mrf.mxu0 }
 0x2f9   : > { %v1843_v27 = vmax.f32 %v1758_v25, 0.0  ;;  %v1876_v28 = vpack.c.bf16 %v1842_v23, %v1840_v19  ;;  %v1762_v29 = vadd.f32 %v1761_v26, %v6030_v24 }
 0x2fa   : > { %v1763_v30 = vpop.f32.mrf.mxu0 }
 0x2fb   : > { %v1764_v31 = vadd.f32 %v1763_v30, %v6027_v22  ;;  %v1877_v32 = vpack.c.bf16 %v1843_v27, %v1841_v21  ;;  %v1844_v35 = vmax.f32 %v1762_v29, 0.0 }
 0x2fc   : > { %v1765_v33 = vpop.f32.mrf.mxu0 }
 0x2fd   : > { %v1766_v34 = vadd.f32 %v1765_v33, %v6030_v24  ;;  %2158 = vmatprep.mubr.bf16.mxu1 %v1877_v32  ;;  %v1845_v37 = vmax.f32 %v1764_v31, 0.0 }
 0x2fe   : > { %v1767_v36 = vpop.f32.mrf.mxu0  ;;  %2159 = vmatmul.mubr.bf16.gmra.mxu1 %v1876_v28 }
 0x2ff   : > { %v1846_v38 = vmax.f32 %v1766_v34, 0.0  ;;  %v1768_v39 = vadd.f32 %v1767_v36, %v6027_v22 }
 0x300   : > { %v1771_v40 = vpop.f32.mrf.mxu0 }
 0x301   : > { %v1847_v41 = vmax.f32 %v1768_v39, 0.0  ;;  %v1878_v42 = vpack.c.bf16 %v1846_v38, %v1844_v35  ;;  %v1772_v43 = vadd.f32 %v1771_v40, %v6030_v24 }
 0x302   : > { %v1773_v44 = vpop.f32.mrf.mxu0 }
 0x303   : > { %v1774_v45 = vadd.f32 %v1773_v44, %v6027_v22  ;;  %v1879_v46 = vpack.c.bf16 %v1847_v41, %v1845_v37  ;;  %v1848_v49 = vmax.f32 %v1772_v43, 0.0 }
 0x304   : > { %v1775_v47 = vpop.f32.mrf.mxu0 }
 0x305   : > { %v1776_v48 = vadd.f32 %v1775_v47, %v6030_v24  ;;  %2168 = vmatprep.mubr.bf16.mxu1 %v1879_v46  ;;  %v1849_v51 = vmax.f32 %v1774_v45, 0.0 }
 0x306   : > { %v1777_v50 = vpop.f32.mrf.mxu0  ;;  %2169 = vmatmul.mubr.bf16.gmra.mxu1 %v1878_v42 }
 0x307   : > { %v1850_v52 = vmax.f32 %v1776_v48, 0.0  ;;  %v1778_v53 = vadd.f32 %v1777_v50, %v6027_v22 }
 0x308   : > { %v1781_v54 = vpop.f32.mrf.mxu0 }
 0x309   : > { %v1851_v12 = vmax.f32 %v1778_v53, 0.0  ;;  %v1880_v55 = vpack.c.bf16 %v1850_v52, %v1848_v49  ;;  %v1782_v56 = vadd.f32 %v1781_v54, %v6030_v24 }
 0x30a   : > { %v1783_v10 = vpop.f32.mrf.mxu0 }
 0x30b   : > { %v1784_v57 = vadd.f32 %v1783_v10, %v6027_v22  ;;  %v1881_v58 = vpack.c.bf16 %v1851_v12, %v1849_v51  ;;  %v1852_v60 = vmax.f32 %v1782_v56, 0.0 }
 0x30c   : > { %v1785_v18 = vpop.f32.mrf.mxu0 }
 0x30d   : > { %v1786_v59 = vadd.f32 %v1785_v18, %v6030_v24  ;;  %2178 = vmatprep.mubr.bf16.mxu1 %v1881_v58  ;;  %v1853_v61 = vmax.f32 %v1784_v57, 0.0  ;;  %v5232_v57 = vld [vmem:[#allocation7 + $0x90] ss:$8 sps:$4 sm:$0xff]  }
 0x30e   : > { %v1787_v16 = vpop.f32.mrf.mxu0  ;;  %2179 = vmatmul.mubr.bf16.gmra.mxu1 %v1880_v55  ;;  %v5234_v55 = vld [vmem:[#allocation7 + $0x94] ss:$8 sps:$4 sm:$0xff]  }
 0x30f   : > { %v1854_v62 = vmax.f32 %v1786_v59, 0.0  ;;  %v1788_v63 = vadd.f32 %v1787_v16, %v6027_v22  ;;  %2533 = vmatprep.subr.bf16.mxu0 %v5234_v55  ;;  %v5237_v16 = vld [vmem:[#allocation7 + $0x84] ss:$8 sps:$4 sm:$0xff]  }
 0x310   : > { %v1791_v1 = vpop.f32.mrf.mxu0  ;;  %2534 = vmatpush2.bf16.msra.mxu0 %v5232_v57 }
 0x311   : > { %v1855_v2 = vmax.f32 %v1788_v63, 0.0  ;;  %v1882_v3 = vpack.c.bf16 %v1854_v62, %v1852_v60  ;;  %v1792_v5 = vadd.f32 %v1791_v1, %v6030_v24  ;;  %v5235_v62 = vld [vmem:[#allocation7 + $0x80] ss:$8 sps:$4 sm:$0xff]   ;;  %2535 = vmatprep.subr.bf16.mxu0 %v5237_v16  ;;  %v5240_v63 = vld [vmem:[#allocation9 + $0x74] ss:$8 sps:$4 sm:$0xff]  }
 0x312   : > { %v1793_v7 = vpop.f32.mrf.mxu0  ;;  %v6074_v1 = vld [vmem:[#allocation9 + $0x70] ss:$8 sps:$4 sm:$0xff]   ;;  %4919 = vmatprep.subr.bf16.mxu1 %v5240_v63 }
 0x313   : > { %v1794_v8 = vadd.f32 %v1793_v7, %v6027_v22  ;;  %v1883_v9 = vpack.c.bf16 %v1855_v2, %v1853_v61  ;;  %v1856_v14 = vmax.f32 %v1792_v5, 0.0  ;;  %4935 = vmatpush1.bf16.msra.mxu1 %v6074_v1  ;;  %v6080_v2 = vld [vmem:[#allocation9 + $0x60] ss:$8 sps:$4 sm:$0xff]   ;;  %v6086_v5 = vld [vmem:[#allocation9 + $0x50] ss:$8 sps:$4 sm:$0xff]  }
 0x314   : > { %v1795_v11 = vpop.f32.mrf.mxu0  ;;  %2536 = vmatpush2.bf16.msra.mxu0 %v5235_v62  ;;  %v6088_v7 = vld [vmem:[#allocation9 + $0x44] ss:$8 sps:$4 sm:$0xff]   ;;  %v6172_v62 = vld [vmem:[#allocation9 + $0xa0] ss:$8 sps:$4 sm:$0xff]  }
 0x315   : > { %v1796_v13 = vadd.f32 %v1795_v11, %v6030_v24  ;;  %2188 = vmatprep.mubr.bf16.mxu1 %v1883_v9  ;;  %v1857_v17 = vmax.f32 %v1794_v8, 0.0  ;;  %2904 = vmatprep.subr.bf16.mxu0 %v5240_v63  ;;  %v6092_v8 = vld [vmem:[#allocation9 + $0x40] ss:$8 sps:$4 sm:$0xff]   ;;  %v6094_v9 = vld [vmem:[#allocation9 + $0x34] ss:$8 sps:$4 sm:$0xff]  }
 0x316   : > { %v1797_v15 = vpop.f32.mrf.mxu0  ;;  %2189 = vmatmul.mubr.bf16.gmra.mxu1 %v1882_v3  ;;  %v6082_v3 = vld [vmem:[#allocation9 + $0x54] ss:$8 sps:$4 sm:$0xff]   ;;  %v6098_v11 = vld [vmem:[#allocation9 + $0x30] ss:$8 sps:$4 sm:$0xff]  }
 0x317   : > { %v1858_v19 = vmax.f32 %v1796_v13, 0.0  ;;  %v1798_v20 = vadd.f32 %v1797_v15, %v6027_v22  ;;  %v6100_v13 = vld [vmem:[#allocation9 + $0x24] ss:$8 sps:$4 sm:$0xff]   ;;  %v6106_v15 = vld [vmem:[#allocation9 + $0x14] ss:$8 sps:$4 sm:$0xff]  }
 0x318   : > { %v1801_v21 = vpop.f32.mrf.mxu0 }
 0x319   : > { %v1859_v23 = vmax.f32 %v1798_v20, 0.0  ;;  %v1884_v25 = vpack.c.bf16 %v1858_v19, %v1856_v14  ;;  %v1802_v26 = vadd.f32 %v1801_v21, %v6030_v24  ;;  %v6104_v14 = vld [vmem:[#allocation9 + $0x20] ss:$8 sps:$4 sm:$0xff]   ;;  %v6112_v19 = vld [vmem:[#allocation9 + $0x4] ss:$8 sps:$4 sm:$0xff]  }
 0x31a   : > { %v1803_v27 = vpop.f32.mrf.mxu0  ;;  %v6116_v20 = vld [vmem:[#allocation9] ss:$8 sps:$4 sm:$0xff]   ;;  %v6118_v21 = vld [vmem:[#allocation9 + $0xf4] ss:$8 sps:$4 sm:$0xff]  }
 0x31b   : > { %v1804_v28 = vadd.f32 %v1803_v27, %v6027_v22  ;;  %v1885_v29 = vpack.c.bf16 %v1859_v23, %v1857_v17  ;;  %v1860_v32 = vmax.f32 %v1802_v26, 0.0  ;;  %v6110_v17 = vld [vmem:[#allocation9 + $0x10] ss:$8 sps:$4 sm:$0xff]   ;;  %v1924_v23 = vld [vmem:[%s6719_s8] sm:$0x3] }
 0x31c   : > { %v1805_v30 = vpop.f32.mrf.mxu0  ;;  %v6127_v27 = vld [vmem:[#allocation9 + $0xe4] ss:$8 sps:$4 sm:$0xff]  }
 0x31d   : > { %v1806_v31 = vadd.f32 %v1805_v30, %v6030_v24  ;;  %2198 = vmatprep.mubr.bf16.mxu1 %v1885_v29  ;;  %v1861_v34 = vmax.f32 %v1804_v28, 0.0  ;;  %v6130_v28 = vrot.slane %v1924_v23, %v5917_v4  ;;  %v6134_v29 = vrot.slane %v1924_v23, %v5919_v6 }
 0x31e   : > { %v1807_v33 = vpop.f32.mrf.mxu0  ;;  %2199 = vmatmul.mubr.bf16.gmra.mxu1 %v1884_v25  ;;  %v6125_v25 = vld [vmem:[#allocation9 + $0xf0] ss:$8 sps:$4 sm:$0xff]  }
 0x31f   : > { %v1862_v35 = vmax.f32 %v1806_v31, 0.0  ;;  %v1808_v36 = vadd.f32 %v1807_v33, %v6027_v22  ;;  %v6137_v31 = vld [vmem:[#allocation9 + $0xe0] ss:$8 sps:$4 sm:$0xff]   ;;  %v6139_v33 = vld [vmem:[#allocation9 + $0xd4] ss:$8 sps:$4 sm:$0xff]  }
 0x320   : > { %v1811_v37 = vpop.f32.mrf.mxu0 }
 0x321   : > { %v1863_v38 = vmax.f32 %v1808_v36, 0.0  ;;  %v1886_v39 = vpack.c.bf16 %v1862_v35, %v1860_v32  ;;  %v1812_v40 = vadd.f32 %v1811_v37, %v6030_v24 }
 0x322   : > { %v1813_v41 = vpop.f32.mrf.mxu0 }
 0x323   : > { %v1814_v42 = vadd.f32 %v1813_v41, %v6027_v22  ;;  %v1887_v43 = vpack.c.bf16 %v1863_v38, %v1861_v34  ;;  %v1864_v46 = vmax.f32 %v1812_v40, 0.0 }
 0x324   : > { %v1815_v44 = vpop.f32.mrf.mxu0 }
 0x325   : > { %v1816_v45 = vadd.f32 %v1815_v44, %v6030_v24  ;;  %2208 = vmatprep.mubr.bf16.mxu1 %v1887_v43  ;;  %v1865_v48 = vmax.f32 %v1814_v42, 0.0  ;;  %v6149_v42 = vld [vmem:[#allocation9 + $0xc4] ss:$8 sps:$4 sm:$0xff]  }
 0x326   : > { %v1817_v47 = vpop.f32.mrf.mxu0  ;;  %2209 = vmatmul.mubr.bf16.gmra.mxu1 %v1886_v39  ;;  %v6147_v39 = vld [vmem:[#allocation9 + $0xd0] ss:$8 sps:$4 sm:$0xff]  }
 0x327   : > { %v1866_v49 = vmax.f32 %v1816_v45, 0.0  ;;  %v1818_v50 = vadd.f32 %v1817_v47, %v6027_v22 }
 0x328   : > { %v1821_v51 = vpop.f32.mrf.mxu0 }
 0x329   : > { %v1867_v52 = vmax.f32 %v1818_v50, 0.0  ;;  %v1888_v53 = vpack.c.bf16 %v1866_v49, %v1864_v46  ;;  %v1822_v54 = vadd.f32 %v1821_v51, %v6030_v24  ;;  %v6155_v51 = vld [vmem:[#allocation9 + $0xb4] ss:$8 sps:$4 sm:$0xff]  }
 0x32a   : > { %v1823_v12 = vpop.f32.mrf.mxu0 }
 0x32b   : > { %v1889_v56 = vpack.c.bf16 %v1867_v52, %v1865_v48  ;;  %v1824_v10 = vadd.f32 %v1823_v12, %v6027_v22  ;;  %v1868_v59 = vmax.f32 %v1822_v54, 0.0  ;;  %v6076_v22 = vld [vmem:[#allocation9 + $0x64] ss:$8 sps:$4 sm:$0xff]   ;;  %v6153_v48 = vld [vmem:[#allocation9 + $0xc0] ss:$8 sps:$4 sm:$0xff]  }
 0x32c   : > { %v1825_v58 = vpop.f32.mrf.mxu0  ;;  %4920 = vmatprep.subr.bf16.mxu1 %v6076_v22 }
 0x32d   : > { %2218 = vmatprep.mubr.bf16.mxu1 %v1889_v56  ;;  %v1869_v18 = vmax.f32 %v1824_v10, 0.0  ;;  %v1890_v24 = vpack.c.bf16 %v1868_v59, %v1868_v59  ;;  %4936 = vmatpush1.bf16.msra.mxu1 %v6080_v2  ;;  %v6164_v56 = vld [vmem:[#allocation9 + $0xb0] ss:$8 sps:$4 sm:$0xff]   ;;  %v6167_v58 = vld [vmem:[#allocation9 + $0xa4] ss:$8 sps:$4 sm:$0xff]  }
 0x32e   : > { %2219 = vmatmul.mubr.bf16.gmra.mxu1 %v1888_v53  ;;  %v1826_v60 = vpop.f32.mrf.mxu0  ;;  %4921 = vmatprep.subr.bf16.mxu1 %v6082_v3 }
 0x32f   : > { %v1891_v61 = vpack.c.bf16 %v1869_v18, %v1869_v18 }
 0x331   : > { %2228 = vmatprep.mubr.bf16.mxu1 %v1891_v61  ;;  %4937 = vmatpush1.bf16.msra.mxu1 %v6086_v5 }
 0x332   : > { %4922 = vmatprep.subr.bf16.mxu1 %v6088_v7 }
 0x335   : > { %4938 = vmatpush1.bf16.msra.mxu1 %v6092_v8 }
 0x336   : > { %2229 = vmatmul.mubr.bf16.gmra.mxu1 %v1890_v24  ;;  %4923 = vmatprep.subr.bf16.mxu1 %v6094_v9 }
 0x339   : > { %4939 = vmatpush1.bf16.msra.mxu1 %v6098_v11 }
 0x33a   : > { %4924 = vmatprep.subr.bf16.mxu1 %v6100_v13 }
 0x33d   : > { %4940 = vmatpush1.bf16.msra.mxu1 %v6104_v14 }
 0x33e   : > { %4925 = vmatprep.subr.bf16.mxu1 %v6106_v15 }
 0x341   : > { %4941 = vmatpush1.bf16.msra.mxu1 %v6110_v17 }
 0x342   : > { %4926 = vmatprep.subr.bf16.mxu1 %v6112_v19 }
 0x345   : > { %4942 = vmatpush1.bf16.msra.mxu1 %v6116_v20 }
 0x346   : > { %4927 = vmatprep.subr.bf16.mxu1 %v6118_v21 }
 0x349   : > { %4943 = vmatpush2.bf16.msra.mxu1 %v6125_v25 }
 0x34a   : > { %4928 = vmatprep.subr.bf16.mxu1 %v6127_v27 }
 0x34d   : > { %4944 = vmatpush2.bf16.msra.mxu1 %v6137_v31 }
 0x34e   : > { %4929 = vmatprep.subr.bf16.mxu1 %v6139_v33 }
 0x351   : > { %4945 = vmatpush2.bf16.msra.mxu1 %v6147_v39 }
 0x352   : > { %4930 = vmatprep.subr.bf16.mxu1 %v6149_v42 }
 0x355   : > { %4946 = vmatpush2.bf16.msra.mxu1 %v6153_v48 }
 0x356   : > { %4931 = vmatprep.subr.bf16.mxu1 %v6155_v51 }
 0x359   : > { %4947 = vmatpush2.bf16.msra.mxu1 %v6164_v56 }
 0x35a   : > { %4932 = vmatprep.subr.bf16.mxu1 %v6167_v58 }
 0x35d   : > { %4948 = vmatpush2.bf16.msra.mxu1 %v6172_v62 }
 0x3a6   : > { %v2130_v26 = vpop.f32.mrf.mxu1 }
 0x3a7   : > { %v2131_v36 = vadd.f32 %v2130_v26, %v6134_v29 }
 0x3a8   : > { %v2132_v30 = vpop.f32.mrf.mxu1 }
 0x3a9   : > { %v2133_v34 = vadd.f32 %v2132_v30, %v6130_v28  ;;  %v2237_v45 = vmax.f32 %v2131_v36, 0.0 }
 0x3aa   : > { %v2134_v32 = vpop.f32.mrf.mxu1 }
 0x3ab   : > { %v2135_v35 = vadd.f32 %v2134_v32, %v6134_v29  ;;  %v2238_v43 = vmax.f32 %v2133_v34, 0.0 }
 0x3ac   : > { %v2136_v37 = vpop.f32.mrf.mxu1 }
 0x3ad   : > { %v2137_v38 = vadd.f32 %v2136_v37, %v6130_v28  ;;  %v2239_v40 = vmax.f32 %v2135_v35, 0.0 }
 0x3ae   : > { %v2140_v41 = vpop.f32.mrf.mxu1 }
 0x3af   : > { %v2240_v44 = vmax.f32 %v2137_v38, 0.0  ;;  %v2279_v49 = vpack.c.bf16 %v2239_v40, %v2237_v45  ;;  %v2141_v54 = vadd.f32 %v2140_v41, %v6134_v29 }
 0x3b0   : > { %v2142_v46 = vpop.f32.mrf.mxu1 }
 0x3b1   : > { %v2280_v47 = vpack.c.bf16 %v2240_v44, %v2238_v43  ;;  %v2143_v52 = vadd.f32 %v2142_v46, %v6130_v28  ;;  %v2241_v60 = vmax.f32 %v2141_v54, 0.0 }
 0x3b2   : > { %v2144_v50 = vpop.f32.mrf.mxu1 }
 0x3b3   : > { %v2145_v53 = vadd.f32 %v2144_v50, %v6134_v29  ;;  %2537 = vmatprep.mubr.bf16.mxu0 %v2280_v47  ;;  %v2242_v18 = vmax.f32 %v2143_v52, 0.0 }
 0x3b4   : > { %v2146_v12 = vpop.f32.mrf.mxu1  ;;  %2538 = vmatmul.mubr.bf16.vlgmr.msra.gmra.mxu0 %v2279_v49 }
 0x3b5   : > { %v2147_v55 = vadd.f32 %v2146_v12, %v6130_v28  ;;  %2905 = vmatpush1.bf16.msra.mxu0 %v6074_v1  ;;  %v2243_v10 = vmax.f32 %v2145_v53, 0.0 }
 0x3b6   : > { %v2150_v57 = vpop.f32.mrf.mxu1  ;;  %2906 = vmatprep.subr.bf16.mxu0 %v6076_v22 }
 0x3b7   : > { %v2244_v59 = vmax.f32 %v2147_v55, 0.0  ;;  %v2281_v24 = vpack.c.bf16 %v2243_v10, %v2241_v60  ;;  %v2151_v23 = vadd.f32 %v2150_v57, %v6134_v29 }
 0x3b8   : > { %v2152_v16 = vpop.f32.mrf.mxu1 }
 0x3b9   : > { %v2282_v61 = vpack.c.bf16 %v2244_v59, %v2242_v18  ;;  %2907 = vmatpush1.bf16.msra.mxu0 %v6080_v2  ;;  %v2153_v1 = vadd.f32 %v2152_v16, %v6130_v28  ;;  %v2245_v35 = vmax.f32 %v2151_v23, 0.0 }
 0x3ba   : > { %v2154_v63 = vpop.f32.mrf.mxu1  ;;  %2908 = vmatprep.subr.bf16.mxu0 %v6082_v3 }
 0x3bb   : > { %v2155_v22 = vadd.f32 %v2154_v63, %v6134_v29  ;;  %2547 = vmatprep.mubr.bf16.mxu0 %v2282_v61  ;;  %v2246_v3 = vmax.f32 %v2153_v1, 0.0 }
 0x3bc   : > { %v2156_v26 = vpop.f32.mrf.mxu1  ;;  %2548 = vmatmul.mubr.bf16.gmra.mxu0 %v2281_v24 }
 0x3bd   : > { %v2157_v30 = vadd.f32 %v2156_v26, %v6130_v28  ;;  %2909 = vmatpush1.bf16.msra.mxu0 %v6086_v5  ;;  %v2247_v2 = vmax.f32 %v2155_v22, 0.0 }
 0x3be   : > { %v2160_v32 = vpop.f32.mrf.mxu1  ;;  %2910 = vmatprep.subr.bf16.mxu0 %v6088_v7 }
 0x3bf   : > { %v2248_v34 = vmax.f32 %v2157_v30, 0.0  ;;  %v2283_v38 = vpack.c.bf16 %v2247_v2, %v2245_v35  ;;  %v2161_v40 = vadd.f32 %v2160_v32, %v6134_v29 }
 0x3c0   : > { %v2162_v36 = vpop.f32.mrf.mxu1 }
 0x3c1   : > { %v2284_v37 = vpack.c.bf16 %v2248_v34, %v2246_v3  ;;  %2911 = vmatpush1.bf16.msra.mxu0 %v6092_v8  ;;  %v2163_v43 = vadd.f32 %v2162_v36, %v6130_v28  ;;  %v2249_v45 = vmax.f32 %v2161_v40, 0.0 }
 0x3c2   : > { %v2164_v41 = vpop.f32.mrf.mxu1  ;;  %2912 = vmatprep.subr.bf16.mxu0 %v6094_v9 }
 0x3c3   : > { %v2165_v5 = vadd.f32 %v2164_v41, %v6134_v29  ;;  %2557 = vmatprep.mubr.bf16.mxu0 %v2284_v37  ;;  %v2250_v47 = vmax.f32 %v2163_v43, 0.0 }
 0x3c4   : > { %v2166_v44 = vpop.f32.mrf.mxu1  ;;  %2558 = vmatmul.mubr.bf16.gmra.mxu0 %v2283_v38 }
 0x3c5   : > { %v2167_v7 = vadd.f32 %v2166_v44, %v6130_v28  ;;  %2913 = vmatpush1.bf16.msra.mxu0 %v6098_v11  ;;  %v2251_v46 = vmax.f32 %v2165_v5, 0.0 }
 0x3c6   : > { %v2170_v8 = vpop.f32.mrf.mxu1  ;;  %2914 = vmatprep.subr.bf16.mxu0 %v6100_v13 }
 0x3c7   : > { %v2252_v49 = vmax.f32 %v2167_v7, 0.0  ;;  %v2285_v52 = vpack.c.bf16 %v2251_v46, %v2249_v45  ;;  %v2171_v53 = vadd.f32 %v2170_v8, %v6134_v29 }
 0x3c8   : > { %v2172_v50 = vpop.f32.mrf.mxu1 }
 0x3c9   : > { %v2286_v9 = vpack.c.bf16 %v2252_v49, %v2250_v47  ;;  %2915 = vmatpush1.bf16.msra.mxu0 %v6104_v14  ;;  %v2173_v12 = vadd.f32 %v2172_v50, %v6130_v28  ;;  %v2253_v10 = vmax.f32 %v2171_v53, 0.0 }
 0x3ca   : > { %v2174_v54 = vpop.f32.mrf.mxu1  ;;  %2916 = vmatprep.subr.bf16.mxu0 %v6106_v15 }
 0x3cb   : > { %v2175_v11 = vadd.f32 %v2174_v54, %v6134_v29  ;;  %2567 = vmatprep.mubr.bf16.mxu0 %v2286_v9  ;;  %v2254_v18 = vmax.f32 %v2173_v12, 0.0 }
 0x3cc   : > { %v2176_v55 = vpop.f32.mrf.mxu1  ;;  %2568 = vmatmul.mubr.bf16.gmra.mxu0 %v2285_v52 }
 0x3cd   : > { %v2177_v13 = vadd.f32 %v2176_v55, %v6130_v28  ;;  %2917 = vmatpush1.bf16.msra.mxu0 %v6110_v17  ;;  %v2255_v57 = vmax.f32 %v2175_v11, 0.0 }
 0x3ce   : > { %v2180_v14 = vpop.f32.mrf.mxu1  ;;  %2918 = vmatprep.subr.bf16.mxu0 %v6112_v19 }
 0x3cf   : > { %v2256_v59 = vmax.f32 %v2177_v13, 0.0  ;;  %v2287_v16 = vpack.c.bf16 %v2255_v57, %v2253_v10  ;;  %v2181_v61 = vadd.f32 %v2180_v14, %v6134_v29 }
 0x3d0   : > { %v2182_v60 = vpop.f32.mrf.mxu1 }
 0x3d1   : > { %v2288_v15 = vpack.c.bf16 %v2256_v59, %v2254_v18  ;;  %2919 = vmatpush1.bf16.msra.mxu0 %v6116_v20  ;;  %v2183_v63 = vadd.f32 %v2182_v60, %v6130_v28  ;;  %v2257_v22 = vmax.f32 %v2181_v61, 0.0 }
 0x3d2   : > { %v2184_v24 = vpop.f32.mrf.mxu1  ;;  %2920 = vmatprep.subr.bf16.mxu0 %v6118_v21 }
 0x3d3   : > { %v2185_v17 = vadd.f32 %v2184_v24, %v6134_v29  ;;  %2577 = vmatprep.mubr.bf16.mxu0 %v2288_v15  ;;  %v2258_v26 = vmax.f32 %v2183_v63, 0.0 }
 0x3d4   : > { %v2186_v1 = vpop.f32.mrf.mxu1  ;;  %2578 = vmatmul.mubr.bf16.gmra.mxu0 %v2287_v16 }
 0x3d5   : > { %v2187_v19 = vadd.f32 %v2186_v1, %v6130_v28  ;;  %2921 = vmatpush2.bf16.msra.mxu0 %v6125_v25  ;;  %v2259_v23 = vmax.f32 %v2185_v17, 0.0 }
 0x3d6   : > { %v2190_v20 = vpop.f32.mrf.mxu1  ;;  %2922 = vmatprep.subr.bf16.mxu0 %v6127_v27 }
 0x3d7   : > { %v2260_v30 = vmax.f32 %v2187_v19, 0.0  ;;  %v2289_v32 = vpack.c.bf16 %v2259_v23, %v2257_v22  ;;  %v2191_v3 = vadd.f32 %v2190_v20, %v6134_v29 }
 0x3d8   : > { %v2192_v2 = vpop.f32.mrf.mxu1 }
 0x3d9   : > { %v2290_v21 = vpack.c.bf16 %v2260_v30, %v2258_v26  ;;  %2923 = vmatpush2.bf16.msra.mxu0 %v6137_v31  ;;  %v2193_v35 = vadd.f32 %v2192_v2, %v6130_v28  ;;  %v2261_v37 = vmax.f32 %v2191_v3, 0.0  ;;  %v5282_v30 = vld [vmem:[#allocation9 + $0x94] ss:$8 sps:$4 sm:$0xff]  }
 0x3da   : > { %v2194_v34 = vpop.f32.mrf.mxu1  ;;  %2924 = vmatprep.subr.bf16.mxu0 %v6139_v33  ;;  %4933 = vmatprep.subr.bf16.mxu1 %v5282_v30 }
 0x3db   : > { %v2195_v25 = vadd.f32 %v2194_v34, %v6134_v29  ;;  %2587 = vmatprep.mubr.bf16.mxu0 %v2290_v21  ;;  %v2262_v40 = vmax.f32 %v2193_v35, 0.0 }
 0x3dc   : > { %v2196_v36 = vpop.f32.mrf.mxu1  ;;  %2588 = vmatmul.mubr.bf16.gmra.mxu0 %v2289_v32  ;;  %v5280_v32 = vld [vmem:[#allocation9 + $0x90] ss:$8 sps:$4 sm:$0xff]  }
 0x3dd   : > { %v2197_v27 = vadd.f32 %v2196_v36, %v6130_v28  ;;  %2925 = vmatpush2.bf16.msra.mxu0 %v6147_v39  ;;  %v2263_v38 = vmax.f32 %v2195_v25, 0.0  ;;  %4949 = vmatpush2.bf16.msra.mxu1 %v5280_v32 }
 0x3de   : > { %v2200_v31 = vpop.f32.mrf.mxu1  ;;  %2926 = vmatprep.subr.bf16.mxu0 %v6149_v42 }
 0x3df   : > { %v2264_v41 = vmax.f32 %v2197_v27, 0.0  ;;  %v2291_v5 = vpack.c.bf16 %v2263_v38, %v2261_v37  ;;  %v2201_v44 = vadd.f32 %v2200_v31, %v6134_v29  ;;  %v5285_v27 = vld [vmem:[#allocation9 + $0x84] ss:$8 sps:$4 sm:$0xff]  }
 0x3e0   : > { %v2202_v43 = vpop.f32.mrf.mxu1  ;;  %4934 = vmatprep.subr.bf16.mxu1 %v5285_v27  ;;  %v2710_v38 = vld [vmem:[%s6722_s11] sm:$0xff] }
 0x3e1   : > { %v2292_v33 = vpack.c.bf16 %v2264_v41, %v2262_v40  ;;  %2927 = vmatpush2.bf16.msra.mxu0 %v6153_v48  ;;  %v2203_v45 = vadd.f32 %v2202_v43, %v6130_v28  ;;  %v2265_v8 = vmax.f32 %v2201_v44, 0.0  ;;  %v4741_v31 = vcombine.high %v2710_v38, %v2710_v38  ;;  %v5290_v40 = vld [vmem:[#allocation10 + $0x74] ss:$8 sps:$4 sm:$0xff]   ;;  %v2333_v41 = vld [vmem:[%s6721_s10] sm:$0x3] }
 0x3e2   : > { %v2204_v7 = vpop.f32.mrf.mxu1  ;;  %2928 = vmatprep.subr.bf16.mxu0 %v6155_v51 }
 0x3e3   : > { %v2205_v39 = vadd.f32 %v2204_v7, %v6134_v29  ;;  %2597 = vmatprep.mubr.bf16.mxu0 %v2292_v33  ;;  %v2266_v49 = vmax.f32 %v2203_v45, 0.0  ;;  %v6241_v33 = vrot.slane %v2333_v41, %v5917_v4 }
 0x3e4   : > { %v2206_v46 = vpop.f32.mrf.mxu1  ;;  %2598 = vmatmul.mubr.bf16.gmra.mxu0 %v2291_v5  ;;  %v6244_v5 = vrot.slane %v2333_v41, %v5919_v6 }
 0x3e5   : > { %v2207_v42 = vadd.f32 %v2206_v46, %v6130_v28  ;;  %2929 = vmatpush2.bf16.msra.mxu0 %v6164_v56  ;;  %v2267_v47 = vmax.f32 %v2205_v39, 0.0 }
 0x3e6   : > { %v2210_v48 = vpop.f32.mrf.mxu1  ;;  %2930 = vmatprep.subr.bf16.mxu0 %v6167_v58 }
 0x3e7   : > { %v2268_v50 = vmax.f32 %v2207_v42, 0.0  ;;  %v2293_v52 = vpack.c.bf16 %v2267_v47, %v2265_v8  ;;  %v2211_v53 = vadd.f32 %v2210_v48, %v6134_v29 }
 0x3e8   : > { %v2212_v9 = vpop.f32.mrf.mxu1 }
 0x3e9   : > { %v2294_v51 = vpack.c.bf16 %v2268_v50, %v2266_v49  ;;  %2931 = vmatpush2.bf16.msra.mxu0 %v6172_v62  ;;  %v2213_v12 = vadd.f32 %v2212_v9, %v6130_v28  ;;  %v2269_v58 = vmax.f32 %v2211_v53, 0.0  ;;  %v4740_v49 = vcombine.low %v2710_v38, %v2710_v38 }
 0x3ea   : > { %v2214_v54 = vpop.f32.mrf.mxu1  ;;  %2932 = vmatprep.subr.bf16.mxu0 %v5282_v30 }
 0x3eb   : > { %v2215_v11 = vadd.f32 %v2214_v54, %v6134_v29  ;;  %2607 = vmatprep.mubr.bf16.mxu0 %v2294_v51  ;;  %v2270_v57 = vmax.f32 %v2213_v12, 0.0 }
 0x3ec   : > { %v2216_v56 = vpop.f32.mrf.mxu1  ;;  %2608 = vmatmul.mubr.bf16.gmra.mxu0 %v2293_v52 }
 0x3ed   : > { %v2217_v55 = vadd.f32 %v2216_v56, %v6130_v28  ;;  %v2271_v13 = vmax.f32 %v2215_v11, 0.0  ;;  %2933 = vmatpush2.bf16.msra.mxu0 %v5280_v32  ;;  %v3051_v11 = vsel %vm862_vm0, %v4740_v49, 0  ;;  %v5291_v49 = vld [vmem:[#allocation10 + $0x60] ss:$8 sps:$4 sm:$0xff]  }
 0x3ee   : > { %v2220_v10 = vpop.f32.mrf.mxu1  ;;  %2934 = vmatprep.subr.bf16.mxu0 %v5285_v27 }
 0x3ef   : > { %v2272_v14 = vmax.f32 %v2217_v55, 0.0  ;;  %v2295_v59 = vpack.c.bf16 %v2271_v13, %v2269_v58  ;;  %v2221_v60 = vadd.f32 %v2220_v10, %v6134_v29 }
 0x3f0   : > { %v2222_v18 = vpop.f32.mrf.mxu1 }
 0x3f1   : > { %v2296_v62 = vpack.c.bf16 %v2272_v14, %v2270_v57  ;;  %v2223_v16 = vadd.f32 %v2222_v18, %v6130_v28  ;;  %v2273_v17 = vmax.f32 %v2221_v60, 0.0 }
 0x3f2   : > { %v2224_v15 = vpop.f32.mrf.mxu1 }
 0x3f3   : > { %v2225_v61 = vadd.f32 %v2224_v15, %v6134_v29  ;;  %2617 = vmatprep.mubr.bf16.mxu0 %v2296_v62  ;;  %v2274_v22 = vmax.f32 %v2223_v16, 0.0 }
 0x3f4   : > { %v2226_v24 = vpop.f32.mrf.mxu1  ;;  %2618 = vmatmul.mubr.bf16.gmra.mxu0 %v2295_v59 }
 0x3f5   : > { %v2227_v63 = vadd.f32 %v2226_v24, %v6130_v28  ;;  %v2275_v1 = vmax.f32 %v2225_v61, 0.0 }
 0x3f6   : > { %v2230_v19 = vpop.f32.mrf.mxu1 }
 0x3f7   : > { %v2276_v23 = vmax.f32 %v2227_v63, 0.0  ;;  %v2231_v20 = vadd.f32 %v2230_v19, %v6134_v29  ;;  %v2297_v3 = vpack.c.bf16 %v2275_v1, %v2273_v17  ;;  %v5283_v29 = vld [vmem:[#allocation9 + $0x80] ss:$8 sps:$4 sm:$0xff]  }
 0x3f8   : > { %v2232_v26 = vpop.f32.mrf.mxu1  ;;  %2935 = vmatpush2.bf16.msra.mxu0 %v5283_v29  ;;  %4950 = vmatpush2.bf16.msra.mxu1 %v5283_v29 }
 0x3f9   : > { %v2298_v2 = vpack.c.bf16 %v2276_v23, %v2274_v22  ;;  %v2233_v21 = vadd.f32 %v2232_v26, %v6130_v28  ;;  %v2277_v25 = vmax.f32 %v2231_v20, 0.0  ;;  %4742 = vmatprep.subr.msk.bf16.mxu0 %vm862_vm0, %v4741_v31  ;;  %3518 = vmatprep.subr.bf16.mxu1 %v5290_v40 }
 0x3fa   : > { %v2234_v34 = vpop.f32.mrf.mxu1 }
 0x3fb   : > { %2627 = vmatprep.mubr.bf16.mxu0 %v2298_v2  ;;  %v2278_v35 = vmax.f32 %v2233_v21, 0.0  ;;  %v2299_v28 = vpack.c.bf16 %v2277_v25, %v2277_v25 }
 0x3fc   : > { %2628 = vmatmul.mubr.bf16.gmra.mxu0 %v2297_v3  ;;  %v2235_v36 = vpop.f32.mrf.mxu1 }
 0x3fd   : > { %v2300_v37 = vpack.c.bf16 %v2278_v35, %v2278_v35 }
 0x3ff   : > { %2637 = vmatprep.mubr.bf16.mxu0 %v2300_v37 }
 0x404   : > { %2638 = vmatmul.mubr.bf16.gmra.mxu0 %v2299_v28 }
 0x474   : > { %v2539_v43 = vpop.f32.mrf.mxu0 }
 0x475   : > { %v2540_v46 = vadd.f32 %v2539_v43, %v6244_v5  ;;  %v5288_v43 = vld [vmem:[#allocation10 + $0x70] ss:$8 sps:$4 sm:$0xff]  }
 0x476   : > { %v2541_v44 = vpop.f32.mrf.mxu0 }
 0x477   : > { %v2542_v45 = vadd.f32 %v2541_v44, %v6241_v33  ;;  %v2646_v51 = vmax.f32 %v2540_v46, 0.0 }
 0x478   : > { %v2543_v7 = vpop.f32.mrf.mxu0 }
 0x479   : > { %v2544_v39 = vadd.f32 %v2543_v7, %v6244_v5  ;;  %v2647_v50 = vmax.f32 %v2542_v45, 0.0  ;;  %v5293_v45 = vld [vmem:[#allocation10 + $0x64] ss:$8 sps:$4 sm:$0xff]  }
 0x47a   : > { %v2545_v42 = vpop.f32.mrf.mxu0 }
 0x47b   : > { %v2546_v8 = vadd.f32 %v2545_v42, %v6241_v33  ;;  %v2648_v47 = vmax.f32 %v2544_v39, 0.0 }
 0x47c   : > { %v2549_v48 = vpop.f32.mrf.mxu0 }
 0x47d   : > { %v2649_v9 = vmax.f32 %v2546_v8, 0.0  ;;  %v2688_v54 = vpack.c.bf16 %v2648_v47, %v2646_v51  ;;  %v2550_v58 = vadd.f32 %v2549_v48, %v6244_v5  ;;  %v5400_v47 = vld [vmem:[%s5881_s9] sm:$0xff]   ;;  %v5296_v51 = vld [vmem:[#allocation10 + $0x54] ss:$8 sps:$4 sm:$0xff]  }
 0x47e   : > { %v2551_v52 = vpop.f32.mrf.mxu0 }
 0x47f   : > { %v2689_v53 = vpack.c.bf16 %v2649_v9, %v2647_v50  ;;  %v2552_v56 = vadd.f32 %v2551_v52, %v6241_v33  ;;  %v2650_v59 = vmax.f32 %v2550_v58, 0.0 }
 0x480   : > { %v2553_v12 = vpop.f32.mrf.mxu0 }
 0x481   : > { %v2554_v55 = vadd.f32 %v2553_v12, %v6244_v5  ;;  %2936 = vmatprep.mubr.bf16.mxu0 %v2689_v53  ;;  %v2651_v18 = vmax.f32 %v2552_v56, 0.0  ;;  %v5294_v56 = vld [vmem:[#allocation10 + $0x50] ss:$8 sps:$4 sm:$0xff]  }
 0x482   : > { %v2555_v13 = vpop.f32.mrf.mxu0  ;;  %2937 = vmatmul.mubr.bf16.vlgmr.msra.gmra.mxu0 %v2688_v54 }
 0x483   : > { %v2556_v10 = vadd.f32 %v2555_v13, %v6241_v33  ;;  %3071 = vmatpush1.bf16.msra.mxu0 %v3051_v11  ;;  %v2652_v57 = vmax.f32 %v2554_v55, 0.0  ;;  %v5299_v13 = vld [vmem:[#allocation10 + $0x44] ss:$8 sps:$4 sm:$0xff]  }
 0x484   : > { %v2559_v14 = vpop.f32.mrf.mxu0 }
 0x485   : > { %v2653_v62 = vmax.f32 %v2556_v10, 0.0  ;;  %v2690_v16 = vpack.c.bf16 %v2652_v57, %v2650_v59  ;;  %v2560_v17 = vadd.f32 %v2559_v14, %v6244_v5 }
 0x486   : > { %v2561_v60 = vpop.f32.mrf.mxu0 }
 0x487   : > { %v2691_v15 = vpack.c.bf16 %v2653_v62, %v2651_v18  ;;  %v2562_v24 = vadd.f32 %v2561_v60, %v6241_v33  ;;  %v2654_v30 = vmax.f32 %v2560_v17, 0.0  ;;  %v5401_v62 = vld [vmem:[%s5881_s9 + $0x8] sm:$0xff]  }
 0x488   : > { %v2563_v61 = vpop.f32.mrf.mxu0  ;;  %v5297_v60 = vld [vmem:[#allocation10 + $0x40] ss:$8 sps:$4 sm:$0xff]  }
 0x489   : > { %v2564_v63 = vadd.f32 %v2563_v61, %v6244_v5  ;;  %2946 = vmatprep.mubr.bf16.mxu0 %v2691_v15  ;;  %v2655_v20 = vmax.f32 %v2562_v24, 0.0  ;;  %v5302_v61 = vld [vmem:[#allocation10 + $0x34] ss:$8 sps:$4 sm:$0xff]  }
 0x48a   : > { %v2565_v1 = vpop.f32.mrf.mxu0  ;;  %2947 = vmatmul.mubr.bf16.gmra.mxu0 %v2690_v16 }
 0x48b   : > { %v2566_v19 = vadd.f32 %v2565_v1, %v6241_v33  ;;  %v2656_v22 = vmax.f32 %v2564_v63, 0.0 }
 0x48c   : > { %v2569_v23 = vpop.f32.mrf.mxu0 }
 0x48d   : > { %v2657_v26 = vmax.f32 %v2566_v19, 0.0  ;;  %v2692_v32 = vpack.c.bf16 %v2656_v22, %v2654_v30  ;;  %v2570_v25 = vadd.f32 %v2569_v23, %v6244_v5  ;;  %v5300_v22 = vld [vmem:[#allocation10 + $0x30] ss:$8 sps:$4 sm:$0xff]  }
 0x48e   : > { %v2571_v2 = vpop.f32.mrf.mxu0 }
 0x48f   : > { %v2693_v21 = vpack.c.bf16 %v2657_v26, %v2655_v20  ;;  %v2572_v34 = vadd.f32 %v2571_v2, %v6241_v33  ;;  %v2658_v31 = vmax.f32 %v2570_v25, 0.0  ;;  %v5305_v26 = vld [vmem:[#allocation10 + $0x24] ss:$8 sps:$4 sm:$0xff]  }
 0x490   : > { %v2573_v3 = vpop.f32.mrf.mxu0 }
 0x491   : > { %v2574_v35 = vadd.f32 %v2573_v3, %v6244_v5  ;;  %2956 = vmatprep.mubr.bf16.mxu0 %v2693_v21  ;;  %v2659_v28 = vmax.f32 %v2572_v34, 0.0  ;;  %v5402_v3 = vld [vmem:[%s5881_s9 + $0x10] sm:$0xff]  }
 0x492   : > { %v2575_v36 = vpop.f32.mrf.mxu0  ;;  %2957 = vmatmul.mubr.bf16.gmra.mxu0 %v2692_v32 }
 0x493   : > { %v2576_v27 = vadd.f32 %v2575_v36, %v6241_v33  ;;  %3088 = vmatprep.mubr.bf16.mxu0 %v5626_v0  ;;  %v2660_v37 = vmax.f32 %v2574_v35, 0.0  ;;  %v5303_v35 = vld [vmem:[#allocation10 + $0x20] ss:$8 sps:$4 sm:$0xff]  }
 0x494   : > { %v2579_v29 = vpop.f32.mrf.mxu0 }
 0x495   : > { %v2661_v38 = vmax.f32 %v2576_v27, 0.0  ;;  %v2694_v44 = vpack.c.bf16 %v2660_v37, %v2658_v31  ;;  %v2580_v42 = vadd.f32 %v2579_v29, %v6244_v5  ;;  %v5308_v27 = vld [vmem:[#allocation10 + $0x14] ss:$8 sps:$4 sm:$0xff]  }
 0x496   : > { %v2581_v40 = vpop.f32.mrf.mxu0 }
 0x497   : > { %v2695_v41 = vpack.c.bf16 %v2661_v38, %v2659_v28  ;;  %v2582_v39 = vadd.f32 %v2581_v40, %v6241_v33  ;;  %v2662_v54 = vmax.f32 %v2580_v42, 0.0  ;;  %v5306_v40 = vld [vmem:[#allocation10 + $0x10] ss:$8 sps:$4 sm:$0xff]  }
 0x498   : > { %v2583_v7 = vpop.f32.mrf.mxu0 }
 0x499   : > { %v2584_v46 = vadd.f32 %v2583_v7, %v6244_v5  ;;  %2966 = vmatprep.mubr.bf16.mxu1 %v2695_v41  ;;  %v2663_v52 = vmax.f32 %v2582_v39, 0.0 }
 0x49a   : > { %v2585_v8 = vpop.f32.mrf.mxu0  ;;  %2967 = vmatmul.mubr.bf16.vlgmr.msra.gmra.mxu1 %v2694_v44  ;;  %4743 = vmatmul.mubr.msk.bf16.vlgmr.msra.gmra.mxu0 %vm828_vm1, %v5400_v47 }
 0x49b   : > { %v2586_v48 = vadd.f32 %v2585_v8, %v6241_v33  ;;  %3098 = vmatprep.mubr.bf16.mxu0 %v5626_v0  ;;  %3519 = vmatpush1.bf16.msra.mxu1 %v5288_v43  ;;  %v2664_v50 = vmax.f32 %v2584_v46, 0.0  ;;  %v5403_v46 = vld [vmem:[%s5881_s9 + $0x18] sm:$0xff]  }
 0x49c   : > { %v2589_v9 = vpop.f32.mrf.mxu0  ;;  %3520 = vmatprep.subr.bf16.mxu1 %v5293_v45 }
 0x49d   : > { %v2665_v53 = vmax.f32 %v2586_v48, 0.0  ;;  %v2696_v55 = vpack.c.bf16 %v2664_v50, %v2662_v54  ;;  %v2590_v14 = vadd.f32 %v2589_v9, %v6244_v5 }
 0x49e   : > { %v2591_v12 = vpop.f32.mrf.mxu0 }
 0x49f   : > { %v2697_v11 = vpack.c.bf16 %v2665_v53, %v2663_v52  ;;  %3521 = vmatpush1.bf16.msra.mxu1 %v5291_v49  ;;  %v2592_v10 = vadd.f32 %v2591_v12, %v6241_v33  ;;  %v2666_v17 = vmax.f32 %v2590_v14, 0.0 }
 0x4a0   : > { %v2593_v58 = vpop.f32.mrf.mxu0  ;;  %3522 = vmatprep.subr.bf16.mxu1 %v5296_v51 }
 0x4a1   : > { %v2594_v57 = vadd.f32 %v2593_v58, %v6244_v5  ;;  %2976 = vmatprep.mubr.bf16.mxu1 %v2697_v11  ;;  %v2667_v24 = vmax.f32 %v2592_v10, 0.0 }
 0x4a2   : > { %v2595_v18 = vpop.f32.mrf.mxu0  ;;  %2977 = vmatmul.mubr.bf16.gmra.mxu1 %v2696_v55  ;;  %4744 = vmatmul.mubr.msk.bf16.gmra.mxu0 %vm828_vm1, %v5401_v62  ;;  %v5404_v55 = vld [vmem:[%s5881_s9 + $0x20] sm:$0xff]  }
 0x4a3   : > { %v2596_v59 = vadd.f32 %v2595_v18, %v6241_v33  ;;  %3108 = vmatprep.mubr.bf16.mxu0 %v5626_v0  ;;  %3523 = vmatpush1.bf16.msra.mxu1 %v5294_v56  ;;  %v2668_v15 = vmax.f32 %v2594_v57, 0.0 }
 0x4a4   : > { %v2599_v16 = vpop.f32.mrf.mxu0  ;;  %3524 = vmatprep.subr.bf16.mxu1 %v5299_v13 }
 0x4a5   : > { %v2669_v63 = vmax.f32 %v2596_v59, 0.0  ;;  %v2698_v23 = vpack.c.bf16 %v2668_v15, %v2666_v17  ;;  %v2600_v21 = vadd.f32 %v2599_v16, %v6244_v5  ;;  %v5405_v17 = vld [vmem:[%s5881_s9 + $0x28] sm:$0xff]  }
 0x4a6   : > { %v2601_v1 = vpop.f32.mrf.mxu0 }
 0x4a7   : > { %v2699_v19 = vpack.c.bf16 %v2669_v63, %v2667_v24  ;;  %3525 = vmatpush1.bf16.msra.mxu1 %v5297_v60  ;;  %v2602_v30 = vadd.f32 %v2601_v1, %v6241_v33  ;;  %v2670_v28 = vmax.f32 %v2600_v21, 0.0 }
 0x4a8   : > { %v2603_v20 = vpop.f32.mrf.mxu0  ;;  %3526 = vmatprep.subr.bf16.mxu1 %v5302_v61 }
 0x4a9   : > { %v2604_v2 = vadd.f32 %v2603_v20, %v6244_v5  ;;  %2986 = vmatprep.mubr.bf16.mxu1 %v2699_v19  ;;  %v2671_v37 = vmax.f32 %v2602_v30, 0.0  ;;  %v5311_v20 = vld [vmem:[#allocation10 + $0x4] ss:$8 sps:$4 sm:$0xff]  }
 0x4aa   : > { %v2605_v32 = vpop.f32.mrf.mxu0  ;;  %2987 = vmatmul.mubr.bf16.gmra.mxu1 %v2698_v23  ;;  %4745 = vmatmul.mubr.msk.bf16.gmra.mxu0 %vm828_vm1, %v5402_v3  ;;  %v5309_v23 = vld [vmem:[#allocation10] ss:$8 sps:$4 sm:$0xff]  }
 0x4ab   : > { %v2606_v34 = vadd.f32 %v2605_v32, %v6241_v33  ;;  %3118 = vmatprep.mubr.bf16.mxu0 %v5626_v0  ;;  %3527 = vmatpush1.bf16.msra.mxu1 %v5300_v22  ;;  %v2672_v25 = vmax.f32 %v2604_v2, 0.0 }
 0x4ac   : > { %v2609_v36 = vpop.f32.mrf.mxu0  ;;  %3528 = vmatprep.subr.bf16.mxu1 %v5305_v26 }
 0x4ad   : > { %v2673_v29 = vmax.f32 %v2606_v34, 0.0  ;;  %v2700_v41 = vpack.c.bf16 %v2672_v25, %v2670_v28  ;;  %v2610_v45 = vadd.f32 %v2609_v36, %v6244_v5  ;;  %v5312_v36 = vld [vmem:[#allocation10 + $0xf0] ss:$8 sps:$4 sm:$0xff]  }
 0x4ae   : > { %v2611_v38 = vpop.f32.mrf.mxu0 }
 0x4af   : > { %v2701_v31 = vpack.c.bf16 %v2673_v29, %v2671_v37  ;;  %3529 = vmatpush1.bf16.msra.mxu1 %v5303_v35  ;;  %v2612_v44 = vadd.f32 %v2611_v38, %v6241_v33  ;;  %v2674_v50 = vmax.f32 %v2610_v45, 0.0  ;;  %v5406_v29 = vld [vmem:[%s5881_s9 + $0x30] sm:$0xff]   ;;  %v5323_v45 = vld [vmem:[#allocation10 + $0xc4] ss:$8 sps:$4 sm:$0xff]  }
 0x4b0   : > { %v2613_v43 = vpop.f32.mrf.mxu0  ;;  %3530 = vmatprep.subr.bf16.mxu1 %v5308_v27  ;;  %v5314_v27 = vld [vmem:[#allocation10 + $0xf4] ss:$8 sps:$4 sm:$0xff]  }
 0x4b1   : > { %v2614_v7 = vadd.f32 %v2613_v43, %v6244_v5  ;;  %2996 = vmatprep.mubr.bf16.mxu1 %v2701_v31  ;;  %v2675_v48 = vmax.f32 %v2612_v44, 0.0  ;;  %v5317_v31 = vld [vmem:[#allocation10 + $0xe4] ss:$8 sps:$4 sm:$0xff]   ;;  %v5320_v43 = vld [vmem:[#allocation10 + $0xd4] ss:$8 sps:$4 sm:$0xff]  }
 0x4b2   : > { %v2615_v39 = vpop.f32.mrf.mxu0  ;;  %2997 = vmatmul.mubr.bf16.gmra.mxu1 %v2700_v41  ;;  %4746 = vmatmul.mubr.msk.bf16.gmra.mxu0 %vm828_vm1, %v5403_v46  ;;  %v5318_v41 = vld [vmem:[#allocation10 + $0xd0] ss:$8 sps:$4 sm:$0xff]   ;;  %v5326_v46 = vld [vmem:[#allocation10 + $0xb4] ss:$8 sps:$4 sm:$0xff]  }
 0x4b3   : > { %v2616_v42 = vadd.f32 %v2615_v39, %v6241_v33  ;;  %3128 = vmatprep.mubr.bf16.mxu0 %v5626_v0  ;;  %3531 = vmatpush1.bf16.msra.mxu1 %v5306_v40  ;;  %v2676_v8 = vmax.f32 %v2614_v7, 0.0  ;;  %v5407_v44 = vld [vmem:[%s5881_s9 + $0x38] sm:$0xff]   ;;  %v5321_v7 = vld [vmem:[#allocation10 + $0xc0] ss:$8 sps:$4 sm:$0xff]  }
 0x4b4   : > { %v2619_v47 = vpop.f32.mrf.mxu0  ;;  %3532 = vmatprep.subr.bf16.mxu1 %v5311_v20  ;;  %v5324_v39 = vld [vmem:[#allocation10 + $0xb0] ss:$8 sps:$4 sm:$0xff]  }
 0x4b5   : > { %v2677_v49 = vmax.f32 %v2616_v42, 0.0  ;;  %v2702_v52 = vpack.c.bf16 %v2676_v8, %v2674_v50  ;;  %v2620_v11 = vadd.f32 %v2619_v47, %v6244_v5  ;;  %v5408_v42 = vld [vmem:[%s5881_s9 + $0x40] sm:$0xff]   ;;  %v5409_v50 = vld [vmem:[%s5881_s9 + $0x48] sm:$0xff]  }
 0x4b6   : > { %v2621_v9 = vpop.f32.mrf.mxu0  ;;  %v5329_v8 = vld [vmem:[#allocation10 + $0xa4] ss:$8 sps:$4 sm:$0xff]   ;;  %v5327_v47 = vld [vmem:[#allocation10 + $0xa0] ss:$8 sps:$4 sm:$0xff]  }
 0x4b7   : > { %v2703_v51 = vpack.c.bf16 %v2677_v49, %v2675_v48  ;;  %v2622_v54 = vadd.f32 %v2621_v9, %v6241_v33  ;;  %v2678_v18 = vmax.f32 %v2620_v11, 0.0  ;;  %3533 = vmatpush1.bf16.msra.mxu1 %v5309_v23  ;;  %v5332_v48 = vld [vmem:[#allocation10 + $0x94] ss:$8 sps:$4 sm:$0xff]   ;;  %v5330_v49 = vld [vmem:[#allocation10 + $0x90] ss:$8 sps:$4 sm:$0xff]  }
 0x4b8   : > { %v2623_v53 = vpop.f32.mrf.mxu0  ;;  %3534 = vmatprep.subr.bf16.mxu1 %v5314_v27  ;;  %v5335_v9 = vld [vmem:[#allocation10 + $0x84] ss:$8 sps:$4 sm:$0xff]   ;;  %v5339_v11 = vld [vmem:[#allocation12 + $0x60] ss:$8 sps:$4 sm:$0xff]  }
 0x4b9   : > { %v2624_v12 = vadd.f32 %v2623_v53, %v6244_v5  ;;  %3006 = vmatprep.mubr.bf16.mxu1 %v2703_v51  ;;  %v2679_v57 = vmax.f32 %v2622_v54, 0.0  ;;  %v5333_v51 = vld [vmem:[#allocation10 + $0x80] ss:$8 sps:$4 sm:$0xff]   ;;  %v5336_v53 = vld [vmem:[#allocation12 + $0x70] ss:$8 sps:$4 sm:$0xff]  }
 0x4ba   : > { %v2625_v56 = vpop.f32.mrf.mxu0  ;;  %3007 = vmatmul.mubr.bf16.gmra.mxu1 %v2702_v52  ;;  %4747 = vmatmul.mubr.msk.bf16.gmra.mxu0 %vm828_vm1, %v5404_v55  ;;  %v5410_v52 = vld [vmem:[%s5881_s9 + $0x50] ss:$0 sps:$4 sm:$0xff]   ;;  %v5338_v54 = vld [vmem:[#allocation12 + $0x74] ss:$8 sps:$4 sm:$0xff]   ;;  %v5357_v23 = vld [vmem:[#allocation12] ss:$8 sps:$4 sm:$0xff]  }
 0x4bb   : > { %v2626_v58 = vadd.f32 %v2625_v56, %v6241_v33  ;;  %3138 = vmatprep.mubr.bf16.mxu0 %v5626_v0  ;;  %v2680_v13 = vmax.f32 %v2624_v12, 0.0  ;;  %3535 = vmatpush2.bf16.msra.mxu1 %v5312_v36  ;;  %v5341_v12 = vld [vmem:[#allocation12 + $0x64] ss:$8 sps:$4 sm:$0xff]   ;;  %v5344_v56 = vld [vmem:[#allocation12 + $0x54] ss:$8 sps:$4 sm:$0xff]  }
 0x4bc   : > { %v2629_v10 = vpop.f32.mrf.mxu0  ;;  %3536 = vmatprep.subr.bf16.mxu1 %v5317_v31  ;;  %3927 = vmatprep.subr.bf16.mxu0 %v5338_v54  ;;  %v5342_v55 = vld [vmem:[#allocation12 + $0x50] ss:$8 sps:$4 sm:$0xff]  }
 0x4bd   : > { %v2681_v14 = vmax.f32 %v2626_v58, 0.0  ;;  %v2704_v60 = vpack.c.bf16 %v2680_v13, %v2678_v18  ;;  %v2630_v24 = vadd.f32 %v2629_v10, %v6244_v5  ;;  %3928 = vmatpush1.bf16.msra.mxu0 %v5336_v53  ;;  %v5345_v10 = vld [vmem:[#allocation12 + $0x40] ss:$8 sps:$4 sm:$0xff]  }
 0x4be   : > { %v2631_v62 = vpop.f32.mrf.mxu0  ;;  %3929 = vmatprep.subr.bf16.mxu0 %v5341_v12  ;;  %v5369_v53 = vld [vmem:[#allocation12 + $0xc0] ss:$8 sps:$4 sm:$0xff]  }
 0x4bf   : > { %v2705_v59 = vpack.c.bf16 %v2681_v14, %v2679_v57  ;;  %v2632_v16 = vadd.f32 %v2631_v62, %v6241_v33  ;;  %v2682_v2 = vmax.f32 %v2630_v24, 0.0  ;;  %v5350_v14 = vld [vmem:[#allocation12 + $0x34] ss:$8 sps:$4 sm:$0xff]   ;;  %v5348_v62 = vld [vmem:[#allocation12 + $0x30] ss:$8 sps:$4 sm:$0xff]  }
 0x4c0   : > { %v2633_v15 = vpop.f32.mrf.mxu0  ;;  %v5356_v24 = vld [vmem:[#allocation12 + $0x14] ss:$8 sps:$4 sm:$0xff]  }
 0x4c1   : > { %v2634_v61 = vadd.f32 %v2633_v15, %v6244_v5  ;;  %3016 = vmatprep.mubr.bf16.mxu1 %v2705_v59  ;;  %v2683_v26 = vmax.f32 %v2632_v16, 0.0  ;;  %3930 = vmatpush1.bf16.msra.mxu0 %v5339_v11  ;;  %v5351_v16 = vld [vmem:[#allocation12 + $0x20] ss:$8 sps:$4 sm:$0xff]  }
 0x4c2   : > { %v2635_v63 = vpop.f32.mrf.mxu0  ;;  %3017 = vmatmul.mubr.bf16.gmra.mxu1 %v2704_v60  ;;  %4748 = vmatmul.mubr.msk.bf16.gmra.mxu0 %vm828_vm1, %v5405_v17  ;;  %v5353_v60 = vld [vmem:[#allocation12 + $0x24] ss:$8 sps:$4 sm:$0xff]   ;;  %v5354_v17 = vld [vmem:[#allocation12 + $0x10] ss:$8 sps:$4 sm:$0xff]  }
 0x4c3   : > { %v2636_v1 = vadd.f32 %v2635_v63, %v6241_v33  ;;  %3148 = vmatprep.mubr.bf16.mxu0 %v5626_v0  ;;  %v2684_v19 = vmax.f32 %v2634_v61, 0.0  ;;  %3931 = vmatprep.subr.bf16.mxu0 %v5344_v56 }
 0x4c4   : > { %v2639_v22 = vpop.f32.mrf.mxu0 }
 0x4c5   : > { %v2685_v30 = vmax.f32 %v2636_v1, 0.0  ;;  %v2640_v21 = vadd.f32 %v2639_v22, %v6244_v5  ;;  %v2706_v35 = vpack.c.bf16 %v2684_v19, %v2682_v2  ;;  %3932 = vmatpush1.bf16.msra.mxu0 %v5342_v55  ;;  %v5359_v19 = vld [vmem:[#allocation12 + $0x4] ss:$8 sps:$4 sm:$0xff]   ;;  %v5360_v2 = vld [vmem:[#allocation12 + $0xf0] ss:$8 sps:$4 sm:$0xff]  }
 0x4c6   : > { %v2641_v32 = vpop.f32.mrf.mxu0  ;;  %v5374_v55 = vld [vmem:[#allocation12 + $0xb4] ss:$8 sps:$4 sm:$0xff]  }
 0x4c7   : > { %v2707_v3 = vpack.c.bf16 %v2685_v30, %v2683_v26  ;;  %v2642_v34 = vadd.f32 %v2641_v32, %v6241_v33  ;;  %v2686_v28 = vmax.f32 %v2640_v21, 0.0  ;;  %v5315_v33 = vld [vmem:[#allocation10 + $0xe0] ss:$8 sps:$4 sm:$0xff]   ;;  %v5362_v26 = vld [vmem:[#allocation12 + $0xf4] ss:$8 sps:$4 sm:$0xff]  }
 0x4c8   : > { %v2643_v25 = vpop.f32.mrf.mxu0  ;;  %3537 = vmatpush2.bf16.msra.mxu1 %v5315_v33  ;;  %v5368_v33 = vld [vmem:[#allocation12 + $0xd4] ss:$8 sps:$4 sm:$0xff]  }
 0x4c9   : > { %3026 = vmatprep.mubr.bf16.mxu1 %v2707_v3  ;;  %v2687_v37 = vmax.f32 %v2642_v34, 0.0  ;;  %v2708_v40 = vpack.c.bf16 %v2686_v28, %v2686_v28  ;;  %3538 = vmatprep.subr.bf16.mxu1 %v5320_v43  ;;  %v5365_v3 = vld [vmem:[#allocation12 + $0xe4] ss:$8 sps:$4 sm:$0xff]   ;;  %v2743_v34 = vld [vmem:[%s6724_s13] sm:$0x3] }
 0x4ca   : > { %3027 = vmatmul.mubr.bf16.gmra.mxu1 %v2706_v35  ;;  %4749 = vmatmul.mubr.msk.bf16.gmra.mxu0 %vm828_vm1, %v5406_v29  ;;  %v2644_v38 = vpop.f32.mrf.mxu0  ;;  %v6344_v27 = vrot.slane %v2743_v34, %v5917_v4  ;;  %v6347_v28 = vrot.slane %v2743_v34, %v5919_v6 }
 0x4cb   : > { %3158 = vmatprep.mubr.bf16.mxu0 %v5626_v0  ;;  %v2709_v5 = vpack.c.bf16 %v2687_v37, %v2687_v37  ;;  %v5363_v37 = vld [vmem:[#allocation12 + $0xe0] ss:$8 sps:$4 sm:$0xff]  }
 0x4cc   : > { %3539 = vmatpush2.bf16.msra.mxu1 %v5318_v41 }
 0x4cd   : > { %3036 = vmatprep.mubr.bf16.mxu1 %v2709_v5  ;;  %3540 = vmatprep.subr.bf16.mxu1 %v5323_v45  ;;  %v5366_v45 = vld [vmem:[#allocation12 + $0xd0] ss:$8 sps:$4 sm:$0xff]  }
 0x4d0   : > { %3541 = vmatpush2.bf16.msra.mxu1 %v5321_v7 }
 0x4d1   : > { %3542 = vmatprep.subr.bf16.mxu1 %v5326_v46 }
 0x4d2   : > { %4750 = vmatmul.mubr.msk.bf16.gmra.mxu0 %vm828_vm1, %v5407_v44  ;;  %3037 = vmatmul.mubr.bf16.gmra.mxu1 %v2708_v40 }
 0x4d3   : > { %3168 = vmatprep.mubr.bf16.mxu0 %v5626_v0 }
 0x4d4   : > { %3543 = vmatpush2.bf16.msra.mxu1 %v5324_v39 }
 0x4d5   : > { %3544 = vmatprep.subr.bf16.mxu1 %v5329_v8  ;;  %v5371_v8 = vld [vmem:[#allocation12 + $0xc4] ss:$8 sps:$4 sm:$0xff]  }
 0x4d8   : > { %3545 = vmatpush2.bf16.msra.mxu1 %v5327_v47 }
 0x4d9   : > { %3546 = vmatprep.subr.bf16.mxu1 %v5332_v48 }
 0x4da   : > { %4751 = vmatmul.mubr.msk.bf16.gmra.mxu0 %vm828_vm1, %v5408_v42 }
 0x4db   : > { %3178 = vmatprep.mubr.bf16.mxu0 %v5626_v0 }
 0x4dc   : > { %3547 = vmatpush2.bf16.msra.mxu1 %v5330_v49 }
 0x4dd   : > { %3548 = vmatprep.subr.bf16.mxu1 %v5335_v9 }
 0x4e0   : > { %3549 = vmatpush2.bf16.msra.mxu1 %v5333_v51 }
 0x4e2   : > { %4752 = vmatmul.mubr.msk.bf16.gmra.mxu0 %vm828_vm1, %v5409_v50 }
 0x4e3   : > { %3188 = vmatprep.mubr.bf16.mxu0 %v5626_v0  ;;  %v5347_v0 = vld [vmem:[#allocation12 + $0x44] ss:$8 sps:$4 sm:$0xff]  }
 0x4e4   : > { %3933 = vmatprep.subr.bf16.mxu0 %v5347_v0 }
 0x4e5   : > { %3934 = vmatpush1.bf16.msra.mxu0 %v5345_v10 }
 0x4e6   : > { %3935 = vmatprep.subr.bf16.mxu0 %v5350_v14 }
 0x4e9   : > { %3936 = vmatpush1.bf16.msra.mxu0 %v5348_v62 }
 0x4ea   : > { %4753 = vmatmul.mubr.msk.bf16.gmra.mxu0 %vm828_vm1, %v5410_v52  ;;  %3937 = vmatprep.subr.bf16.mxu0 %v5353_v60 }
 0x4ed   : > { %3938 = vmatpush1.bf16.msra.mxu0 %v5351_v16 }
 0x4ee   : > { %3939 = vmatprep.subr.bf16.mxu0 %v5356_v24 }
 0x4f1   : > { %3940 = vmatpush1.bf16.msra.mxu0 %v5354_v17 }
 0x4f2   : > { %3941 = vmatprep.subr.bf16.mxu0 %v5359_v19 }
 0x4f5   : > { %3942 = vmatpush1.bf16.msra.mxu0 %v5357_v23 }
 0x4f6   : > { %3943 = vmatprep.subr.bf16.mxu0 %v5362_v26 }
 0x4f9   : > { %3944 = vmatpush2.bf16.msra.mxu0 %v5360_v2 }
 0x4fa   : > { %3945 = vmatprep.subr.bf16.mxu0 %v5365_v3 }
 0x4fd   : > { %3946 = vmatpush2.bf16.msra.mxu0 %v5363_v37 }
 0x4fe   : > { %3947 = vmatprep.subr.bf16.mxu0 %v5368_v33 }
 0x501   : > { %3948 = vmatpush2.bf16.msra.mxu0 %v5366_v45 }
 0x502   : > { %3949 = vmatprep.subr.bf16.mxu0 %v5371_v8 }
 0x505   : > { %3950 = vmatpush2.bf16.msra.mxu0 %v5369_v53 }
 0x506   : > { %3951 = vmatprep.subr.bf16.mxu0 %v5374_v55 }
 0x542   : > { %v2938_v58 = vpop.f32.mrf.mxu0 }
 0x544   : > { %v2940_v13 = vpop.f32.mrf.mxu0 }
 0x546   : > { %v2942_v57 = vpop.f32.mrf.mxu0 }
 0x548   : > { %v2944_v18 = vpop.f32.mrf.mxu0 }
 0x54a   : > { %v6322_v59 = vpop.f32.mrf.mxu0 }
 0x54c   : > { %v2950_v15 = vpop.f32.mrf.mxu0 }
 0x54e   : > { %v6324_v61 = vpop.f32.mrf.mxu0 }
 0x550   : > { %v6326_v63 = vpop.f32.mrf.mxu0 }
 0x552   : > { %v6328_v1 = vpop.f32.mrf.mxu0 }
 0x554   : > { %v6330_v22 = vpop.f32.mrf.mxu0 }
 0x556   : > { %v6332_v20 = vpop.f32.mrf.mxu0 }
 0x558   : > { %v6334_v30 = vpop.f32.mrf.mxu0 }
 0x55a   : > { %v6336_v21 = vpop.f32.mrf.mxu1  ;;  %v3090_v32 = vpop.f32.mrf.mxu0 }
 0x55b   : > { %v3091_v29 = vadd.f32 %v3090_v32, %v2938_v58  ;;  %v5375_v32 = vld [vmem:[#allocation12 + $0xa0] ss:$8 sps:$4 sm:$0xff]  }
 0x55c   : > { %v6341_v35 = vpop.f32.mrf.mxu1  ;;  %v3092_v25 = vpop.f32.mrf.mxu0 }
 0x55d   : > { %v3093_v36 = vadd.f32 %v3092_v25, %v2940_v13  ;;  %v3208_v39 = vadd.f32 %v6347_v28, %v3091_v29 }
 0x55e   : > { %v6349_v38 = vpop.f32.mrf.mxu1  ;;  %v3094_v5 = vpop.f32.mrf.mxu0 }
 0x55f   : > { %v3095_v31 = vadd.f32 %v3094_v5, %v2942_v57  ;;  %v3209_v43 = vadd.f32 %v6344_v27, %v3093_v36  ;;  %v3250_v54 = vmax.f32 %v3208_v39, 0.0 }
 0x560   : > { %v6351_v40 = vpop.f32.mrf.mxu1  ;;  %v3096_v41 = vpop.f32.mrf.mxu0 }
 0x561   : > { %v3210_v44 = vadd.f32 %v6347_v28, %v3095_v31  ;;  %v3097_v7 = vadd.f32 %v3096_v41, %v2944_v18  ;;  %v3251_v9 = vmax.f32 %v3209_v43, 0.0 }
 0x562   : > { %v6356_v46 = vpop.f32.mrf.mxu1  ;;  %v3100_v42 = vpop.f32.mrf.mxu0 }
 0x563   : > { %v3211_v47 = vadd.f32 %v6344_v27, %v3097_v7  ;;  %v3252_v48 = vmax.f32 %v3210_v44, 0.0  ;;  %v3101_v12 = vadd.f32 %v3100_v42, %v6322_v59  ;;  %v5372_v59 = vld [vmem:[#allocation12 + $0xb0] ss:$8 sps:$4 sm:$0xff]  }
 0x564   : > { %v6359_v49 = vpop.f32.mrf.mxu1  ;;  %v3102_v50 = vpop.f32.mrf.mxu0  ;;  %3952 = vmatpush2.bf16.msra.mxu0 %v5372_v59 }
 0x565   : > { %v3253_v51 = vmax.f32 %v3211_v47, 0.0  ;;  %v3103_v52 = vadd.f32 %v3102_v50, %v2950_v15  ;;  %v3292_v13 = vpack.c.bf16 %v3252_v48, %v3250_v54  ;;  %v3212_v60 = vadd.f32 %v6347_v28, %v3101_v12 }
 0x566   : > { %v6362_v11 = vpop.f32.mrf.mxu1  ;;  %v3104_v56 = vpop.f32.mrf.mxu0 }
 0x567   : > { %v3105_v58 = vadd.f32 %v3104_v56, %v6324_v61  ;;  %v3293_v0 = vpack.c.bf16 %v3253_v51, %v3251_v9  ;;  %v3213_v14 = vadd.f32 %v6344_v27, %v3103_v52  ;;  %v5377_v61 = vld [vmem:[#allocation12 + $0xa4] ss:$8 sps:$4 sm:$0xff]   ;;  %v3254_v3 = vmax.f32 %v3212_v60, 0.0 }
 0x568   : > { %v6365_v10 = vpop.f32.mrf.mxu1  ;;  %v3106_v57 = vpop.f32.mrf.mxu0  ;;  %3953 = vmatprep.subr.bf16.mxu0 %v5377_v61 }
 0x569   : > { %v3214_v18 = vadd.f32 %v6347_v28, %v3105_v58  ;;  %v3107_v62 = vadd.f32 %v3106_v57, %v6326_v63  ;;  %3550 = vmatprep.mubr.bf16.mxu1 %v3293_v0  ;;  %v3255_v26 = vmax.f32 %v3213_v14, 0.0  ;;  %3954 = vmatpush2.bf16.msra.mxu0 %v5375_v32 }
 0x56a   : > { %v6371_v15 = vpop.f32.mrf.mxu1  ;;  %v3110_v16 = vpop.f32.mrf.mxu0  ;;  %3551 = vmatmul.mubr.bf16.vlgmr.msra.gmra.mxu1 %v3292_v13 }
 0x56b   : > { %v3215_v24 = vadd.f32 %v6344_v27, %v3107_v62  ;;  %v3256_v17 = vmax.f32 %v3214_v18, 0.0  ;;  %v3111_v34 = vadd.f32 %v3110_v16, %v6328_v1 }
 0x56c   : > { %v6374_v19 = vpop.f32.mrf.mxu1  ;;  %v3112_v23 = vpop.f32.mrf.mxu0 }
 0x56d   : > { %v3257_v2 = vmax.f32 %v3215_v24, 0.0  ;;  %v3113_v63 = vadd.f32 %v3112_v23, %v6330_v22  ;;  %v3294_v5 = vpack.c.bf16 %v3256_v17, %v3254_v3  ;;  %v3216_v1 = vadd.f32 %v6347_v28, %v3111_v34 }
 0x56e   : > { %v6378_v25 = vpop.f32.mrf.mxu1  ;;  %v3114_v36 = vpop.f32.mrf.mxu0 }
 0x56f   : > { %v3115_v37 = vadd.f32 %v3114_v36, %v6332_v20  ;;  %v3295_v29 = vpack.c.bf16 %v3257_v2, %v3255_v26  ;;  %v3217_v41 = vadd.f32 %v6344_v27, %v3113_v63  ;;  %v3258_v50 = vmax.f32 %v3216_v1, 0.0 }
 0x570   : > { %v6381_v33 = vpop.f32.mrf.mxu1  ;;  %v3116_v31 = vpop.f32.mrf.mxu0 }
 0x571   : > { %v3218_v22 = vadd.f32 %v6347_v28, %v3115_v37  ;;  %v3117_v43 = vadd.f32 %v3116_v31, %v6334_v30  ;;  %3560 = vmatprep.mubr.bf16.mxu1 %v3295_v29  ;;  %v3259_v8 = vmax.f32 %v3217_v41, 0.0 }
 0x572   : > { %v6387_v44 = vpop.f32.mrf.mxu1  ;;  %v3120_v7 = vpop.f32.mrf.mxu0  ;;  %3561 = vmatmul.mubr.bf16.gmra.mxu1 %v3294_v5 }
 0x573   : > { %v3219_v20 = vadd.f32 %v6344_v27, %v3117_v43  ;;  %v3260_v45 = vmax.f32 %v3218_v22, 0.0  ;;  %v3121_v30 = vadd.f32 %v3120_v7, %v6336_v21 }
 0x574   : > { %v6390_v39 = vpop.f32.mrf.mxu1  ;;  %v3122_v42 = vpop.f32.mrf.mxu0 }
 0x575   : > { %v3261_v47 = vmax.f32 %v3219_v20, 0.0  ;;  %v3123_v48 = vadd.f32 %v3122_v42, %v6341_v35  ;;  %v3296_v54 = vpack.c.bf16 %v3260_v45, %v3258_v50  ;;  %v3220_v35 = vadd.f32 %v6347_v28, %v3121_v30 }
 0x576   : > { %v6394_v9 = vpop.f32.mrf.mxu1  ;;  %v3124_v51 = vpop.f32.mrf.mxu0 }
 0x577   : > { %v3125_v52 = vadd.f32 %v3124_v51, %v6349_v38  ;;  %v3297_v53 = vpack.c.bf16 %v3261_v47, %v3259_v8  ;;  %v3221_v55 = vadd.f32 %v6344_v27, %v3123_v48  ;;  %v3262_v16 = vmax.f32 %v3220_v35, 0.0 }
 0x578   : > { %v6397_v12 = vpop.f32.mrf.mxu1  ;;  %v3126_v56 = vpop.f32.mrf.mxu0 }
 0x579   : > { %v3222_v58 = vadd.f32 %v6347_v28, %v3125_v52  ;;  %v3127_v0 = vadd.f32 %v3126_v56, %v6351_v40  ;;  %3570 = vmatprep.mubr.bf16.mxu1 %v3297_v53  ;;  %v3263_v62 = vmax.f32 %v3221_v55, 0.0 }
 0x57a   : > { %v6403_v21 = vpop.f32.mrf.mxu1  ;;  %v3130_v13 = vpop.f32.mrf.mxu0  ;;  %3571 = vmatmul.mubr.bf16.gmra.mxu1 %v3296_v54 }
 0x57b   : > { %v3223_v38 = vadd.f32 %v6344_v27, %v3127_v0  ;;  %v3264_v57 = vmax.f32 %v3222_v58, 0.0  ;;  %v3131_v40 = vadd.f32 %v3130_v13, %v6356_v46 }
 0x57c   : > { %v6406_v14 = vpop.f32.mrf.mxu1  ;;  %v3132_v18 = vpop.f32.mrf.mxu0 }
 0x57d   : > { %v3265_v59 = vmax.f32 %v3223_v38, 0.0  ;;  %v3133_v60 = vadd.f32 %v3132_v18, %v6359_v49  ;;  %v3298_v26 = vpack.c.bf16 %v3264_v57, %v3262_v16  ;;  %v3224_v49 = vadd.f32 %v6347_v28, %v3131_v40 }
 0x57e   : > { %v6410_v61 = vpop.f32.mrf.mxu1  ;;  %v3134_v24 = vpop.f32.mrf.mxu0 }
 0x57f   : > { %v3135_v17 = vadd.f32 %v3134_v24, %v6362_v11  ;;  %v3299_v23 = vpack.c.bf16 %v3265_v59, %v3263_v62  ;;  %v3225_v32 = vadd.f32 %v6344_v27, %v3133_v60  ;;  %v3266_v43 = vmax.f32 %v3224_v49, 0.0 }
 0x580   : > { %v6413_v2 = vpop.f32.mrf.mxu1  ;;  %v3136_v63 = vpop.f32.mrf.mxu0 }
 0x581   : > { %v3226_v3 = vadd.f32 %v6347_v28, %v3135_v17  ;;  %v3137_v34 = vadd.f32 %v3136_v63, %v6365_v10  ;;  %3580 = vmatprep.mubr.bf16.mxu1 %v3299_v23  ;;  %v3267_v31 = vmax.f32 %v3225_v32, 0.0 }
 0x582   : > { %v6419_v46 = vpop.f32.mrf.mxu1  ;;  %v3140_v36 = vpop.f32.mrf.mxu0  ;;  %3581 = vmatmul.mubr.bf16.gmra.mxu1 %v3298_v26 }
 0x583   : > { %v3227_v11 = vadd.f32 %v6344_v27, %v3137_v34  ;;  %v3268_v37 = vmax.f32 %v3226_v3, 0.0  ;;  %v3141_v10 = vadd.f32 %v3140_v36, %v6371_v15 }
 0x584   : > { %v6422_v29 = vpop.f32.mrf.mxu1  ;;  %v3142_v5 = vpop.f32.mrf.mxu0 }
 0x585   : > { %v3269_v41 = vmax.f32 %v3227_v11, 0.0  ;;  %v3143_v22 = vadd.f32 %v3142_v5, %v6374_v19  ;;  %v3300_v42 = vpack.c.bf16 %v3268_v37, %v3266_v43  ;;  %v3228_v19 = vadd.f32 %v6347_v28, %v3141_v10 }
 0x586   : > { %v6426_v1 = vpop.f32.mrf.mxu1  ;;  %v3144_v7 = vpop.f32.mrf.mxu0 }
 0x587   : > { %v3145_v20 = vadd.f32 %v3144_v7, %v6378_v25  ;;  %v3301_v45 = vpack.c.bf16 %v3269_v41, %v3267_v31  ;;  %v3229_v48 = vadd.f32 %v6344_v27, %v3143_v22  ;;  %v3270_v0 = vmax.f32 %v3228_v19, 0.0 }
 0x588   : > { %v6429_v8 = vpop.f32.mrf.mxu1  ;;  %v3146_v47 = vpop.f32.mrf.mxu0 }
 0x589   : > { %v3230_v50 = vadd.f32 %v6347_v28, %v3145_v20  ;;  %v3147_v30 = vadd.f32 %v3146_v47, %v6381_v33  ;;  %3590 = vmatprep.mubr.bf16.mxu1 %v3301_v45  ;;  %v3271_v56 = vmax.f32 %v3229_v48, 0.0 }
 0x58a   : > { %v6435_v15 = vpop.f32.mrf.mxu1  ;;  %v3150_v51 = vpop.f32.mrf.mxu0  ;;  %3591 = vmatmul.mubr.bf16.gmra.mxu1 %v3300_v42 }
 0x58b   : > { %v3231_v25 = vadd.f32 %v6344_v27, %v3147_v30  ;;  %v3272_v52 = vmax.f32 %v3230_v50, 0.0  ;;  %v3151_v33 = vadd.f32 %v3150_v51, %v6387_v44 }
 0x58c   : > { %v6438_v53 = vpop.f32.mrf.mxu1  ;;  %v3152_v54 = vpop.f32.mrf.mxu0 }
 0x58d   : > { %v3273_v55 = vmax.f32 %v3231_v25, 0.0  ;;  %v3153_v58 = vadd.f32 %v3152_v54, %v6390_v39  ;;  %v3302_v18 = vpack.c.bf16 %v3272_v52, %v3270_v0  ;;  %v3232_v39 = vadd.f32 %v6347_v28, %v3151_v33 }
 0x58e   : > { %v6442_v35 = vpop.f32.mrf.mxu1  ;;  %v3154_v13 = vpop.f32.mrf.mxu0 }
 0x58f   : > { %v3155_v38 = vadd.f32 %v3154_v13, %v6394_v9  ;;  %v3303_v57 = vpack.c.bf16 %v3273_v55, %v3271_v56  ;;  %v3233_v60 = vadd.f32 %v6344_v27, %v3153_v58  ;;  %v3274_v34 = vmax.f32 %v3232_v39, 0.0 }
 0x590   : > { %v6445_v62 = vpop.f32.mrf.mxu1  ;;  %v3156_v59 = vpop.f32.mrf.mxu0 }
 0x591   : > { %v3234_v16 = vadd.f32 %v6347_v28, %v3155_v38  ;;  %v3157_v40 = vadd.f32 %v3156_v59, %v6397_v12  ;;  %3600 = vmatprep.mubr.bf16.mxu1 %v3303_v57  ;;  %v3275_v63 = vmax.f32 %v3233_v60, 0.0 }
 0x592   : > { %v3160_v44 = vpop.f32.mrf.mxu0  ;;  %3601 = vmatmul.mubr.bf16.gmra.mxu1 %v3302_v18  ;;  %v6451_v24 = vpop.f32.mrf.mxu1 }
 0x593   : > { %v3235_v9 = vadd.f32 %v6344_v27, %v3157_v40  ;;  %v3276_v17 = vmax.f32 %v3234_v16, 0.0  ;;  %v3161_v12 = vadd.f32 %v3160_v44, %v6403_v21 }
 0x594   : > { %v3162_v23 = vpop.f32.mrf.mxu0  ;;  %v6454_v26 = vpop.f32.mrf.mxu1 }
 0x595   : > { %v3277_v32 = vmax.f32 %v3235_v9, 0.0  ;;  %v3163_v3 = vadd.f32 %v3162_v23, %v6406_v14  ;;  %v3304_v5 = vpack.c.bf16 %v3276_v17, %v3274_v34  ;;  %v3236_v14 = vadd.f32 %v6347_v28, %v3161_v12 }
 0x596   : > { %v3164_v49 = vpop.f32.mrf.mxu0  ;;  %v3042_v36 = vpop.f32.mrf.mxu1 }
 0x597   : > { %v3165_v11 = vadd.f32 %v3164_v49, %v6410_v61  ;;  %v3305_v37 = vpack.c.bf16 %v3277_v32, %v3275_v63  ;;  %v3237_v22 = vadd.f32 %v6344_v27, %v3163_v3  ;;  %v3278_v48 = vmax.f32 %v3236_v14, 0.0  ;;  %v5380_v49 = vld [vmem:[#allocation12 + $0x94] ss:$8 sps:$4 sm:$0xff]  }
 0x598   : > { %v3166_v31 = vpop.f32.mrf.mxu0  ;;  %v3043_v41 = vpop.f32.mrf.mxu1  ;;  %3955 = vmatprep.subr.bf16.mxu0 %v5380_v49  ;;  %v5386_v14 = vld [vmem:[%s6729_s18 + $0x70] sm:$0xff]  }
 0x599   : > { %v3238_v43 = vadd.f32 %v6347_v28, %v3165_v11  ;;  %v3167_v10 = vadd.f32 %v3166_v31, %v6413_v2  ;;  %3610 = vmatprep.mubr.bf16.mxu1 %v3305_v37  ;;  %v3279_v61 = vmax.f32 %v3237_v22, 0.0  ;;  %v5378_v11 = vld [vmem:[#allocation12 + $0x90] ss:$8 sps:$4 sm:$0xff]  }
 0x59a   : > { %v3170_v7 = vpop.f32.mrf.mxu0  ;;  %3611 = vmatmul.mubr.bf16.gmra.mxu1 %v3304_v5  ;;  %3956 = vmatpush2.bf16.msra.mxu0 %v5378_v11 }
 0x59b   : > { %v3239_v21 = vadd.f32 %v6344_v27, %v3167_v10  ;;  %v3280_v20 = vmax.f32 %v3238_v43, 0.0  ;;  %v3171_v50 = vadd.f32 %v3170_v7, %v6419_v46  ;;  %v5381_v43 = vld [vmem:[#allocation12 + $0x80] ss:$8 sps:$4 sm:$0xff]   ;;  %v5387_v7 = vld [vmem:[%s6729_s18 + $0x30] sm:$0xff]  }
 0x59c   : > { %v3172_v45 = vpop.f32.mrf.mxu0 }
 0x59d   : > { %v3281_v42 = vmax.f32 %v3239_v21, 0.0  ;;  %v3173_v47 = vadd.f32 %v3172_v45, %v6422_v29  ;;  %v3306_v51 = vpack.c.bf16 %v3280_v20, %v3278_v48  ;;  %v3240_v55 = vadd.f32 %v6347_v28, %v3171_v50  ;;  %v5388_v21 = vld [vmem:[%s6729_s18 + $0x68] sm:$0xff]   ;;  %v5390_v45 = vld [vmem:[%s6729_s18 + $0x60] sm:$0xff]   ;;  %v5394_v48 = vld [vmem:[%s6729_s18 + $0x50] sm:$0xff]  }
 0x59e   : > { %v3174_v30 = vpop.f32.mrf.mxu0  ;;  %v5389_v20 = vld [vmem:[%s6729_s18 + $0x28] sm:$0xff]   ;;  %v5395_v50 = vld [vmem:[%s6729_s18 + $0x10] sm:$0xff]  }
 0x59f   : > { %v3175_v19 = vadd.f32 %v3174_v30, %v6426_v1  ;;  %v3307_v2 = vpack.c.bf16 %v3281_v42, %v3279_v61  ;;  %v3241_v52 = vadd.f32 %v6344_v27, %v3173_v47  ;;  %v3282_v38 = vmax.f32 %v3240_v55, 0.0  ;;  %v5391_v61 = vld [vmem:[%s6729_s18 + $0x20] sm:$0xff]   ;;  %v5392_v42 = vld [vmem:[%s6729_s18 + $0x58] sm:$0xff]   ;;  %v5396_v30 = vld [vmem:[%s6729_s18 + $0x48] sm:$0xff]  }
 0x5a0   : > { %v3176_v25 = vpop.f32.mrf.mxu0  ;;  %v5393_v47 = vld [vmem:[%s6729_s18 + $0x18] sm:$0xff]  }
 0x5a1   : > { %v3242_v54 = vadd.f32 %v6347_v28, %v3175_v19  ;;  %v3177_v56 = vadd.f32 %v3176_v25, %v6429_v8  ;;  %3620 = vmatprep.mubr.bf16.mxu1 %v3307_v2  ;;  %v3283_v33 = vmax.f32 %v3241_v52, 0.0  ;;  %v5397_v19 = vld [vmem:[%s6729_s18 + $0x8] sm:$0xff]   ;;  %v3346_v2 = vld [vmem:[%s6726_s15] sm:$0x3] }
 0x5a2   : > { %v3180_v58 = vpop.f32.mrf.mxu0  ;;  %3621 = vmatmul.mubr.bf16.gmra.mxu1 %v3306_v51  ;;  %v6530_v25 = vrot.slane %v3346_v2, %v5917_v4  ;;  %v6533_v52 = vrot.slane %v3346_v2, %v5919_v6 }
 0x5a3   : > { %v3243_v29 = vadd.f32 %v6344_v27, %v3177_v56  ;;  %v3284_v46 = vmax.f32 %v3242_v54, 0.0  ;;  %v3181_v57 = vadd.f32 %v3180_v58, %v6435_v15 }
 0x5a4   : > { %v3182_v0 = vpop.f32.mrf.mxu0 }
 0x5a5   : > { %v3285_v1 = vmax.f32 %v3243_v29, 0.0  ;;  %v3183_v13 = vadd.f32 %v3182_v0, %v6438_v53  ;;  %v3308_v60 = vpack.c.bf16 %v3284_v46, %v3282_v38  ;;  %v3244_v9 = vadd.f32 %v6347_v28, %v3181_v57 }
 0x5a6   : > { %v3184_v18 = vpop.f32.mrf.mxu0 }
 0x5a7   : > { %v3185_v59 = vadd.f32 %v3184_v18, %v6442_v35  ;;  %v3309_v8 = vpack.c.bf16 %v3285_v1, %v3283_v33  ;;  %v3245_v40 = vadd.f32 %v6344_v27, %v3183_v13  ;;  %v3286_v34 = vmax.f32 %v3244_v9, 0.0 }
 0x5a8   : > { %v3186_v16 = vpop.f32.mrf.mxu0 }
 0x5a9   : > { %v3246_v39 = vadd.f32 %v6347_v28, %v3185_v59  ;;  %v3187_v44 = vadd.f32 %v3186_v16, %v6445_v62  ;;  %3630 = vmatprep.mubr.bf16.mxu1 %v3309_v8  ;;  %v3287_v63 = vmax.f32 %v3245_v40, 0.0 }
 0x5aa   : > { %v3190_v17 = vpop.f32.mrf.mxu0  ;;  %3631 = vmatmul.mubr.bf16.gmra.mxu1 %v3308_v60 }
 0x5ab   : > { %v3247_v53 = vadd.f32 %v6344_v27, %v3187_v44  ;;  %v3288_v15 = vmax.f32 %v3246_v39, 0.0  ;;  %v3191_v23 = vadd.f32 %v3190_v17, %v6451_v24  ;;  %v5383_v24 = vld [vmem:[#allocation12 + $0x84] ss:$8 sps:$4 sm:$0xff]  }
 0x5ac   : > { %v3192_v35 = vpop.f32.mrf.mxu0  ;;  %3957 = vmatprep.subr.bf16.mxu0 %v5383_v24 }
 0x5ad   : > { %v3289_v32 = vmax.f32 %v3247_v53, 0.0  ;;  %v3193_v3 = vadd.f32 %v3192_v35, %v6454_v26  ;;  %v3310_v37 = vpack.c.bf16 %v3288_v15, %v3286_v34  ;;  %v3248_v5 = vadd.f32 %v6347_v28, %v3191_v23  ;;  %3958 = vmatpush2.bf16.msra.mxu0 %v5381_v43  ;;  %v5385_v28 = vld [vmem:[%s6729_s18 + $0x38] sm:$0xff]  }
 0x5ae   : > { %v3194_v12 = vpop.f32.mrf.mxu0 }
 0x5af   : > { %v3249_v62 = vadd.f32 %v6344_v27, %v3193_v3  ;;  %v3311_v36 = vpack.c.bf16 %v3289_v32, %v3287_v63  ;;  %v3290_v26 = vmax.f32 %v3248_v5, 0.0  ;;  %v5384_v27 = vld [vmem:[%s6729_s18 + $0x78] sm:$0xff]  }
 0x5b0   : > { %v3195_v31 = vpop.f32.mrf.mxu0  ;;  %4837 = vmatprep.subr.bf16.mxu1 %v5384_v27 }
 0x5b1   : > { %v3291_v41 = vmax.f32 %v3249_v62, 0.0  ;;  %3640 = vmatprep.mubr.bf16.mxu1 %v3311_v36  ;;  %v3312_v10 = vpack.c.bf16 %v3290_v26, %v3290_v26  ;;  %4838 = vmatpush3.bf16.msra.mxu1 %v5385_v28 }
 0x5b2   : > { %3641 = vmatmul.mubr.bf16.gmra.mxu1 %v3310_v37  ;;  %4839 = vmatprep.subr.bf16.mxu1 %v5386_v14 }
 0x5b3   : > { %v3313_v22 = vpack.c.bf16 %v3291_v41, %v3291_v41 }
 0x5b5   : > { %3650 = vmatprep.mubr.bf16.mxu1 %v3313_v22  ;;  %4840 = vmatpush3.bf16.msra.mxu1 %v5387_v7 }
 0x5b6   : > { %4841 = vmatprep.subr.bf16.mxu1 %v5388_v21 }
 0x5b9   : > { %4842 = vmatpush3.bf16.msra.mxu1 %v5389_v20 }
 0x5ba   : > { %3651 = vmatmul.mubr.bf16.gmra.mxu1 %v3312_v10  ;;  %4843 = vmatprep.subr.bf16.mxu1 %v5390_v45 }
 0x5bd   : > { %4844 = vmatpush3.bf16.msra.mxu1 %v5391_v61 }
 0x5be   : > { %4845 = vmatprep.subr.bf16.mxu1 %v5392_v42 }
 0x5c1   : > { %4846 = vmatpush3.bf16.msra.mxu1 %v5393_v47 }
 0x5c2   : > { %4847 = vmatprep.subr.bf16.mxu1 %v5394_v48 }
 0x5c5   : > { %4848 = vmatpush3.bf16.msra.mxu1 %v5395_v50 }
 0x5c6   : > { %4849 = vmatprep.subr.bf16.mxu1 %v5396_v30 }
 0x5c9   : > { %4850 = vmatpush3.bf16.msra.mxu1 %v5397_v19 }
 0x62a   : > { %v3552_v51 = vpop.f32.mrf.mxu1 }
 0x62b   : > { %v3553_v29 = vadd.f32 %v3552_v51, %v6533_v52 }
 0x62c   : > { %v3554_v54 = vpop.f32.mrf.mxu1 }
 0x62d   : > { %v3555_v55 = vadd.f32 %v3554_v54, %v6530_v25  ;;  %v3659_v57 = vmax.f32 %v3553_v29, 0.0 }
 0x62e   : > { %v3556_v56 = vpop.f32.mrf.mxu1 }
 0x62f   : > { %v3557_v58 = vadd.f32 %v3556_v56, %v6533_v52  ;;  %v3660_v13 = vmax.f32 %v3555_v55, 0.0 }
 0x630   : > { %v3558_v46 = vpop.f32.mrf.mxu1 }
 0x631   : > { %v3559_v0 = vadd.f32 %v3558_v46, %v6530_v25  ;;  %v3661_v33 = vmax.f32 %v3557_v58, 0.0 }
 0x632   : > { %v3562_v1 = vpop.f32.mrf.mxu1 }
 0x633   : > { %v3662_v38 = vmax.f32 %v3559_v0, 0.0  ;;  %v3701_v8 = vpack.c.bf16 %v3661_v33, %v3659_v57  ;;  %v3563_v39 = vadd.f32 %v3562_v1, %v6533_v52 }
 0x634   : > { %v3564_v18 = vpop.f32.mrf.mxu1 }
 0x635   : > { %v3702_v59 = vpack.c.bf16 %v3662_v38, %v3660_v13  ;;  %v3565_v16 = vadd.f32 %v3564_v18, %v6530_v25  ;;  %v3663_v35 = vmax.f32 %v3563_v39, 0.0 }
 0x636   : > { %v3566_v60 = vpop.f32.mrf.mxu1 }
 0x637   : > { %v3567_v40 = vadd.f32 %v3566_v60, %v6533_v52  ;;  %3959 = vmatprep.mubr.bf16.mxu0 %v3702_v59  ;;  %v3664_v15 = vmax.f32 %v3565_v16, 0.0 }
 0x638   : > { %v3568_v44 = vpop.f32.mrf.mxu1  ;;  %3960 = vmatmul.mubr.bf16.vlgmr.msra.gmra.mxu0 %v3701_v8 }
 0x639   : > { %v3569_v9 = vadd.f32 %v3568_v44, %v6530_v25  ;;  %v3665_v17 = vmax.f32 %v3567_v40, 0.0 }
 0x63a   : > { %v3572_v53 = vpop.f32.mrf.mxu1 }
 0x63b   : > { %v3666_v23 = vmax.f32 %v3569_v9, 0.0  ;;  %v3703_v3 = vpack.c.bf16 %v3665_v17, %v3663_v35  ;;  %v3573_v62 = vadd.f32 %v3572_v53, %v6533_v52 }
 0x63c   : > { %v3574_v63 = vpop.f32.mrf.mxu1 }
 0x63d   : > { %v3704_v32 = vpack.c.bf16 %v3666_v23, %v3664_v15  ;;  %v3575_v12 = vadd.f32 %v3574_v63, %v6530_v25  ;;  %v3667_v24 = vmax.f32 %v3573_v62, 0.0 }
 0x63e   : > { %v3576_v34 = vpop.f32.mrf.mxu1 }
 0x63f   : > { %v3577_v49 = vadd.f32 %v3576_v34, %v6533_v52  ;;  %3969 = vmatprep.mubr.bf16.mxu0 %v3704_v32  ;;  %v3668_v31 = vmax.f32 %v3575_v12, 0.0 }
 0x640   : > { %v3578_v36 = vpop.f32.mrf.mxu1  ;;  %3970 = vmatmul.mubr.bf16.gmra.mxu0 %v3703_v3 }
 0x641   : > { %v3579_v11 = vadd.f32 %v3578_v36, %v6530_v25  ;;  %v3669_v37 = vmax.f32 %v3577_v49, 0.0 }
 0x642   : > { %v3582_v5 = vpop.f32.mrf.mxu1 }
 0x643   : > { %v3670_v41 = vmax.f32 %v3579_v11, 0.0  ;;  %v3705_v26 = vpack.c.bf16 %v3669_v37, %v3667_v24  ;;  %v3583_v14 = vadd.f32 %v3582_v5, %v6533_v52 }
 0x644   : > { %v3584_v22 = vpop.f32.mrf.mxu1 }
 0x645   : > { %v3706_v43 = vpack.c.bf16 %v3670_v41, %v3668_v31  ;;  %v3585_v27 = vadd.f32 %v3584_v22, %v6530_v25  ;;  %v3671_v47 = vmax.f32 %v3583_v14, 0.0 }
 0x646   : > { %v3586_v10 = vpop.f32.mrf.mxu1 }
 0x647   : > { %v3587_v28 = vadd.f32 %v3586_v10, %v6533_v52  ;;  %3979 = vmatprep.mubr.bf16.mxu0 %v3706_v43  ;;  %v3672_v61 = vmax.f32 %v3585_v27, 0.0 }
 0x648   : > { %v3588_v7 = vpop.f32.mrf.mxu1  ;;  %3980 = vmatmul.mubr.bf16.gmra.mxu0 %v3705_v26 }
 0x649   : > { %v3589_v21 = vadd.f32 %v3588_v7, %v6530_v25  ;;  %v3673_v20 = vmax.f32 %v3587_v28, 0.0 }
 0x64a   : > { %v3592_v45 = vpop.f32.mrf.mxu1 }
 0x64b   : > { %v3674_v42 = vmax.f32 %v3589_v21, 0.0  ;;  %v3707_v30 = vpack.c.bf16 %v3673_v20, %v3671_v47  ;;  %v3593_v54 = vadd.f32 %v3592_v45, %v6533_v52 }
 0x64c   : > { %v3594_v48 = vpop.f32.mrf.mxu1 }
 0x64d   : > { %v3708_v50 = vpack.c.bf16 %v3674_v42, %v3672_v61  ;;  %v3595_v2 = vadd.f32 %v3594_v48, %v6530_v25  ;;  %v3675_v33 = vmax.f32 %v3593_v54, 0.0 }
 0x64e   : > { %v3596_v19 = vpop.f32.mrf.mxu1 }
 0x64f   : > { %v3597_v51 = vadd.f32 %v3596_v19, %v6533_v52  ;;  %3989 = vmatprep.mubr.bf16.mxu0 %v3708_v50  ;;  %v3676_v46 = vmax.f32 %v3595_v2, 0.0 }
 0x650   : > { %v3598_v56 = vpop.f32.mrf.mxu1  ;;  %3990 = vmatmul.mubr.bf16.gmra.mxu0 %v3707_v30 }
 0x651   : > { %v3599_v55 = vadd.f32 %v3598_v56, %v6530_v25  ;;  %v3677_v58 = vmax.f32 %v3597_v51, 0.0 }
 0x652   : > { %v3602_v29 = vpop.f32.mrf.mxu1 }
 0x653   : > { %v3678_v0 = vmax.f32 %v3599_v55, 0.0  ;;  %v3709_v38 = vpack.c.bf16 %v3677_v58, %v3675_v33  ;;  %v3603_v8 = vadd.f32 %v3602_v29, %v6533_v52 }
 0x654   : > { %v3604_v1 = vpop.f32.mrf.mxu1 }
 0x655   : > { %v3710_v13 = vpack.c.bf16 %v3678_v0, %v3676_v46  ;;  %v3605_v18 = vadd.f32 %v3604_v1, %v6530_v25  ;;  %v3679_v17 = vmax.f32 %v3603_v8, 0.0 }
 0x656   : > { %v3606_v57 = vpop.f32.mrf.mxu1 }
 0x657   : > { %v3607_v59 = vadd.f32 %v3606_v57, %v6533_v52  ;;  %3999 = vmatprep.mubr.bf16.mxu0 %v3710_v13  ;;  %v3680_v44 = vmax.f32 %v3605_v18, 0.0 }
 0x658   : > { %v3608_v60 = vpop.f32.mrf.mxu1  ;;  %4000 = vmatmul.mubr.bf16.gmra.mxu0 %v3709_v38 }
 0x659   : > { %v3609_v16 = vadd.f32 %v3608_v60, %v6530_v25  ;;  %v3681_v40 = vmax.f32 %v3607_v59, 0.0 }
 0x65a   : > { %v3612_v39 = vpop.f32.mrf.mxu1 }
 0x65b   : > { %v3682_v9 = vmax.f32 %v3609_v16, 0.0  ;;  %v3711_v23 = vpack.c.bf16 %v3681_v40, %v3679_v17  ;;  %v3613_v3 = vadd.f32 %v3612_v39, %v6533_v52  ;;  %v5398_v17 = vld [vmem:[%s6729_s18 + $0x40] sm:$0xff]  }
 0x65c   : > { %v3614_v53 = vpop.f32.mrf.mxu1  ;;  %4851 = vmatprep.subr.bf16.mxu1 %v5398_v17 }
 0x65d   : > { %v3712_v15 = vpack.c.bf16 %v3682_v9, %v3680_v44  ;;  %v3615_v63 = vadd.f32 %v3614_v53, %v6530_v25  ;;  %v3683_v37 = vmax.f32 %v3613_v3, 0.0  ;;  %v5399_v53 = vld [vmem:[%s6729_s18] sm:$0xff]  }
 0x65e   : > { %v3616_v35 = vpop.f32.mrf.mxu1  ;;  %4852 = vmatpush3.bf16.msra.mxu1 %v5399_v53 }
 0x65f   : > { %v3617_v32 = vadd.f32 %v3616_v35, %v6533_v52  ;;  %4009 = vmatprep.mubr.bf16.mxu0 %v3712_v15  ;;  %v3684_v36 = vmax.f32 %v3615_v63, 0.0 }
 0x660   : > { %v3618_v34 = vpop.f32.mrf.mxu1  ;;  %4010 = vmatmul.mubr.bf16.gmra.mxu0 %v3711_v23 }
 0x661   : > { %v3619_v12 = vadd.f32 %v3618_v34, %v6530_v25  ;;  %v3685_v49 = vmax.f32 %v3617_v32, 0.0 }
 0x662   : > { %v3622_v62 = vpop.f32.mrf.mxu1 }
 0x663   : > { %v3686_v11 = vmax.f32 %v3619_v12, 0.0  ;;  %v3713_v41 = vpack.c.bf16 %v3685_v49, %v3683_v37  ;;  %v3623_v26 = vadd.f32 %v3622_v62, %v6533_v52  ;;  %v3755_v12 = vld [vmem:[%s6728_s17] sm:$0x3] }
 0x664   : > { %v3624_v5 = vpop.f32.mrf.mxu1  ;;  %v6587_v62 = vrot.slane %v3755_v12, %v5917_v4 }
 0x665   : > { %v3714_v31 = vpack.c.bf16 %v3686_v11, %v3684_v36  ;;  %v3625_v22 = vadd.f32 %v3624_v5, %v6530_v25  ;;  %v3687_v20 = vmax.f32 %v3623_v26, 0.0 }
 0x666   : > { %v3626_v24 = vpop.f32.mrf.mxu1 }
 0x667   : > { %v3627_v43 = vadd.f32 %v3626_v24, %v6533_v52  ;;  %4019 = vmatprep.mubr.bf16.mxu0 %v3714_v31  ;;  %v3688_v7 = vmax.f32 %v3625_v22, 0.0 }
 0x668   : > { %v3628_v10 = vpop.f32.mrf.mxu1  ;;  %4020 = vmatmul.mubr.bf16.gmra.mxu0 %v3713_v41 }
 0x669   : > { %v3629_v27 = vadd.f32 %v3628_v10, %v6530_v25  ;;  %v3689_v28 = vmax.f32 %v3627_v43, 0.0 }
 0x66a   : > { %v3632_v14 = vpop.f32.mrf.mxu1 }
 0x66b   : > { %v3690_v21 = vmax.f32 %v3629_v27, 0.0  ;;  %v3715_v42 = vpack.c.bf16 %v3689_v28, %v3687_v20  ;;  %v3633_v30 = vadd.f32 %v3632_v14, %v6533_v52 }
 0x66c   : > { %v3634_v45 = vpop.f32.mrf.mxu1 }
 0x66d   : > { %v3716_v61 = vpack.c.bf16 %v3690_v21, %v3688_v7  ;;  %v3635_v48 = vadd.f32 %v3634_v45, %v6530_v25  ;;  %v3691_v58 = vmax.f32 %v3633_v30, 0.0 }
 0x66e   : > { %v3636_v47 = vpop.f32.mrf.mxu1 }
 0x66f   : > { %v3637_v50 = vadd.f32 %v3636_v47, %v6533_v52  ;;  %4029 = vmatprep.mubr.bf16.mxu0 %v3716_v61  ;;  %v3692_v56 = vmax.f32 %v3635_v48, 0.0 }
 0x670   : > { %v3638_v19 = vpop.f32.mrf.mxu1  ;;  %4030 = vmatmul.mubr.bf16.gmra.mxu0 %v3715_v42 }
 0x671   : > { %v3639_v2 = vadd.f32 %v3638_v19, %v6530_v25  ;;  %v3693_v51 = vmax.f32 %v3637_v50, 0.0 }
 0x672   : > { %v3642_v54 = vpop.f32.mrf.mxu1 }
 0x673   : > { %v3694_v55 = vmax.f32 %v3639_v2, 0.0  ;;  %v3717_v0 = vpack.c.bf16 %v3693_v51, %v3691_v58  ;;  %v3643_v38 = vadd.f32 %v3642_v54, %v6533_v52 }
 0x674   : > { %v3644_v29 = vpop.f32.mrf.mxu1 }
 0x675   : > { %v3718_v46 = vpack.c.bf16 %v3694_v55, %v3692_v56  ;;  %v3645_v1 = vadd.f32 %v3644_v29, %v6530_v25  ;;  %v3695_v40 = vmax.f32 %v3643_v38, 0.0 }
 0x676   : > { %v3646_v33 = vpop.f32.mrf.mxu1 }
 0x677   : > { %v3647_v13 = vadd.f32 %v3646_v33, %v6533_v52  ;;  %4039 = vmatprep.mubr.bf16.mxu0 %v3718_v46  ;;  %v3696_v60 = vmax.f32 %v3645_v1, 0.0 }
 0x678   : > { %v3648_v57 = vpop.f32.mrf.mxu1  ;;  %4040 = vmatmul.mubr.bf16.gmra.mxu0 %v3717_v0 }
 0x679   : > { %v3649_v18 = vadd.f32 %v3648_v57, %v6530_v25  ;;  %v3697_v59 = vmax.f32 %v3647_v13, 0.0 }
 0x67a   : > { %v3652_v8 = vpop.f32.mrf.mxu1 }
 0x67b   : > { %v3698_v16 = vmax.f32 %v3649_v18, 0.0  ;;  %v3719_v15 = vpack.c.bf16 %v3697_v59, %v3695_v40  ;;  %v3653_v23 = vadd.f32 %v3652_v8, %v6533_v52  ;;  %v6590_v52 = vrot.slane %v3755_v12, %v5919_v6 }
 0x67c   : > { %v3654_v39 = vpop.f32.mrf.mxu1 }
 0x67d   : > { %v3720_v44 = vpack.c.bf16 %v3698_v16, %v3696_v60  ;;  %v3655_v9 = vadd.f32 %v3654_v39, %v6530_v25  ;;  %v3699_v25 = vmax.f32 %v3653_v23, 0.0 }
 0x67e   : > { %v3656_v35 = vpop.f32.mrf.mxu1 }
 0x67f   : > { %v3700_v63 = vmax.f32 %v3655_v9, 0.0  ;;  %4049 = vmatprep.mubr.bf16.mxu0 %v3720_v44  ;;  %v3721_v34 = vpack.c.bf16 %v3699_v25, %v3699_v25 }
 0x680   : > { %v3657_v32 = vpop.f32.mrf.mxu1  ;;  %4050 = vmatmul.mubr.bf16.gmra.mxu0 %v3719_v15 }
 0x681   : > { %v3722_v3 = vpack.c.bf16 %v3700_v63, %v3700_v63 }
 0x683   : > { %4059 = vmatprep.mubr.bf16.mxu0 %v3722_v3 }
 0x688   : > { %4060 = vmatmul.mubr.bf16.gmra.mxu0 %v3721_v34 }
 0x6f8   : > { %v3961_v49 = vpop.f32.mrf.mxu0 }
 0x6f9   : > { %v3962_v31 = vadd.f32 %v3961_v49, %v6590_v52 }
 0x6fa   : > { %v3963_v36 = vpop.f32.mrf.mxu0 }
 0x6fb   : > { %v3964_v37 = vadd.f32 %v3963_v36, %v6587_v62  ;;  %v4068_v4 = vmax.f32 %v3962_v31, 0.0 }
 0x6fc   : > { %v3965_v11 = vpop.f32.mrf.mxu0 }
 0x6fd   : > { %v3966_v5 = vadd.f32 %v3965_v11, %v6590_v52  ;;  %v4069_v26 = vmax.f32 %v3964_v37, 0.0 }
 0x6fe   : > { %v3967_v41 = vpop.f32.mrf.mxu0 }
 0x6ff   : > { %v3968_v24 = vadd.f32 %v3967_v41, %v6587_v62  ;;  %v4070_v22 = vmax.f32 %v3966_v5, 0.0 }
 0x700   : > { %v3971_v43 = vpop.f32.mrf.mxu0 }
 0x701   : > { %v4071_v10 = vmax.f32 %v3968_v24, 0.0  ;;  %v4110_v6 = vpack.c.bf16 %v4070_v22, %v4068_v4  ;;  %v3972_v20 = vadd.f32 %v3971_v43, %v6590_v52 }
 0x702   : > { %v3973_v27 = vpop.f32.mrf.mxu0 }
 0x703   : > { %v4111_v28 = vpack.c.bf16 %v4071_v10, %v4069_v26  ;;  %v3974_v7 = vadd.f32 %v3973_v27, %v6587_v62  ;;  %v4072_v30 = vmax.f32 %v3972_v20, 0.0 }
 0x704   : > { %v3975_v14 = vpop.f32.mrf.mxu0 }
 0x705   : > { %v3976_v21 = vadd.f32 %v3975_v14, %v6590_v52  ;;  %4299 = vmatprep.mubr.bf16.mxu1 %v4111_v28  ;;  %v4073_v48 = vmax.f32 %v3974_v7, 0.0 }
 0x706   : > { %v3977_v45 = vpop.f32.mrf.mxu0  ;;  %4300 = vmatmul.mubr.bf16.vlgmr.msra.gmra.mxu1 %v4110_v6 }
 0x707   : > { %v3978_v61 = vadd.f32 %v3977_v45, %v6587_v62  ;;  %v4074_v42 = vmax.f32 %v3976_v21, 0.0 }
 0x708   : > { %v3981_v47 = vpop.f32.mrf.mxu0 }
 0x709   : > { %v4075_v50 = vmax.f32 %v3978_v61, 0.0  ;;  %v4112_v51 = vpack.c.bf16 %v4074_v42, %v4072_v30  ;;  %v3982_v58 = vadd.f32 %v3981_v47, %v6590_v52 }
 0x70a   : > { %v3983_v19 = vpop.f32.mrf.mxu0 }
 0x70b   : > { %v4113_v2 = vpack.c.bf16 %v4075_v50, %v4073_v48  ;;  %v3984_v56 = vadd.f32 %v3983_v19, %v6587_v62  ;;  %v4076_v38 = vmax.f32 %v3982_v58, 0.0 }
 0x70c   : > { %v3985_v54 = vpop.f32.mrf.mxu0 }
 0x70d   : > { %v3986_v55 = vadd.f32 %v3985_v54, %v6590_v52  ;;  %4307 = vmatprep.mubr.bf16.mxu1 %v4113_v2  ;;  %v4077_v1 = vmax.f32 %v3984_v56, 0.0 }
 0x70e   : > { %v3987_v29 = vpop.f32.mrf.mxu0  ;;  %4308 = vmatmul.mubr.bf16.gmra.mxu1 %v4112_v51 }
 0x70f   : > { %v3988_v46 = vadd.f32 %v3987_v29, %v6587_v62  ;;  %v4078_v0 = vmax.f32 %v3986_v55, 0.0 }
 0x710   : > { %v3991_v33 = vpop.f32.mrf.mxu0 }
 0x711   : > { %v4079_v13 = vmax.f32 %v3988_v46, 0.0  ;;  %v4114_v59 = vpack.c.bf16 %v4078_v0, %v4076_v38  ;;  %v3992_v40 = vadd.f32 %v3991_v33, %v6590_v52 }
 0x712   : > { %v3993_v57 = vpop.f32.mrf.mxu0 }
 0x713   : > { %v4115_v18 = vpack.c.bf16 %v4079_v13, %v4077_v1  ;;  %v3994_v60 = vadd.f32 %v3993_v57, %v6587_v62  ;;  %v4080_v23 = vmax.f32 %v3992_v40, 0.0 }
 0x714   : > { %v3995_v8 = vpop.f32.mrf.mxu0 }
 0x715   : > { %v3996_v16 = vadd.f32 %v3995_v8, %v6590_v52  ;;  %4315 = vmatprep.mubr.bf16.mxu1 %v4115_v18  ;;  %v4081_v53 = vmax.f32 %v3994_v60, 0.0 }
 0x716   : > { %v3997_v39 = vpop.f32.mrf.mxu0  ;;  %4316 = vmatmul.mubr.bf16.gmra.mxu1 %v4114_v59 }
 0x717   : > { %v3998_v44 = vadd.f32 %v3997_v39, %v6587_v62  ;;  %v4082_v9 = vmax.f32 %v3996_v16, 0.0 }
 0x718   : > { %v4001_v17 = vpop.f32.mrf.mxu0 }
 0x719   : > { %v4083_v15 = vmax.f32 %v3998_v44, 0.0  ;;  %v4116_v32 = vpack.c.bf16 %v4082_v9, %v4080_v23  ;;  %v4002_v12 = vadd.f32 %v4001_v17, %v6590_v52 }
 0x71a   : > { %v4003_v35 = vpop.f32.mrf.mxu0 }
 0x71b   : > { %v4117_v63 = vpack.c.bf16 %v4083_v15, %v4081_v53  ;;  %v4004_v25 = vadd.f32 %v4003_v35, %v6587_v62  ;;  %v4084_v41 = vmax.f32 %v4002_v12, 0.0 }
 0x71c   : > { %v4005_v3 = vpop.f32.mrf.mxu0 }
 0x71d   : > { %v4006_v34 = vadd.f32 %v4005_v3, %v6590_v52  ;;  %4323 = vmatprep.mubr.bf16.mxu1 %v4117_v63  ;;  %v4085_v5 = vmax.f32 %v4004_v25, 0.0 }
 0x71e   : > { %v4007_v49 = vpop.f32.mrf.mxu0  ;;  %4324 = vmatmul.mubr.bf16.gmra.mxu1 %v4116_v32 }
 0x71f   : > { %v4008_v36 = vadd.f32 %v4007_v49, %v6587_v62  ;;  %v4086_v11 = vmax.f32 %v4006_v34, 0.0 }
 0x720   : > { %v4011_v37 = vpop.f32.mrf.mxu0 }
 0x721   : > { %v4087_v31 = vmax.f32 %v4008_v36, 0.0  ;;  %v4118_v43 = vpack.c.bf16 %v4086_v11, %v4084_v41  ;;  %v4012_v27 = vadd.f32 %v4011_v37, %v6590_v52 }
 0x722   : > { %v4013_v24 = vpop.f32.mrf.mxu0 }
 0x723   : > { %v4119_v22 = vpack.c.bf16 %v4087_v31, %v4085_v5  ;;  %v4014_v10 = vadd.f32 %v4013_v24, %v6587_v62  ;;  %v4088_v45 = vmax.f32 %v4012_v27, 0.0 }
 0x724   : > { %v4015_v26 = vpop.f32.mrf.mxu0 }
 0x725   : > { %v4016_v4 = vadd.f32 %v4015_v26, %v6590_v52  ;;  %4331 = vmatprep.mubr.bf16.mxu1 %v4119_v22  ;;  %v4089_v21 = vmax.f32 %v4014_v10, 0.0 }
 0x726   : > { %v4017_v28 = vpop.f32.mrf.mxu0  ;;  %4332 = vmatmul.mubr.bf16.gmra.mxu1 %v4118_v43 }
 0x727   : > { %v4018_v6 = vadd.f32 %v4017_v28, %v6587_v62  ;;  %v4090_v14 = vmax.f32 %v4016_v4, 0.0 }
 0x728   : > { %v4021_v7 = vpop.f32.mrf.mxu0 }
 0x729   : > { %v4091_v20 = vmax.f32 %v4018_v6, 0.0  ;;  %v4120_v47 = vpack.c.bf16 %v4090_v14, %v4088_v45  ;;  %v4022_v19 = vadd.f32 %v4021_v7, %v6590_v52 }
 0x72a   : > { %v4023_v61 = vpop.f32.mrf.mxu0 }
 0x72b   : > { %v4121_v42 = vpack.c.bf16 %v4091_v20, %v4089_v21  ;;  %v4024_v50 = vadd.f32 %v4023_v61, %v6587_v62  ;;  %v4092_v29 = vmax.f32 %v4022_v19, 0.0  ;;  %v6638_v19 = vld [vmem:[%s6730_s19] ss:$0 sm:$0xff] }
 0x72c   : > { %v4025_v48 = vpop.f32.mrf.mxu0 }
 0x72d   : > { %v4026_v30 = vadd.f32 %v4025_v48, %v6590_v52  ;;  %4339 = vmatprep.mubr.bf16.mxu1 %v4121_v42  ;;  %v4093_v55 = vmax.f32 %v4024_v50, 0.0 }
 0x72e   : > { %v4027_v2 = vpop.f32.mrf.mxu0  ;;  %4340 = vmatmul.mubr.bf16.gmra.mxu1 %v4120_v47 }
 0x72f   : > { %v4028_v51 = vadd.f32 %v4027_v2, %v6587_v62  ;;  %v4094_v54 = vmax.f32 %v4026_v30, 0.0 }
 0x730   : > { %v4031_v56 = vpop.f32.mrf.mxu0 }
 0x731   : > { %v4095_v58 = vmax.f32 %v4028_v51, 0.0  ;;  %v4122_v33 = vpack.c.bf16 %v4094_v54, %v4092_v29  ;;  %v4032_v57 = vadd.f32 %v4031_v56, %v6590_v52 }
 0x732   : > { %v4033_v46 = vpop.f32.mrf.mxu0 }
 0x733   : > { %v4123_v0 = vpack.c.bf16 %v4095_v58, %v4093_v55  ;;  %v4034_v13 = vadd.f32 %v4033_v46, %v6587_v62  ;;  %v4096_v39 = vmax.f32 %v4032_v57, 0.0 }
 0x734   : > { %v4035_v1 = vpop.f32.mrf.mxu0 }
 0x735   : > { %v4036_v38 = vadd.f32 %v4035_v1, %v6590_v52  ;;  %4347 = vmatprep.mubr.bf16.mxu1 %v4123_v0  ;;  %v4097_v16 = vmax.f32 %v4034_v13, 0.0 }
 0x736   : > { %v4037_v18 = vpop.f32.mrf.mxu0  ;;  %4348 = vmatmul.mubr.bf16.gmra.mxu1 %v4122_v33 }
 0x737   : > { %v4038_v59 = vadd.f32 %v4037_v18, %v6587_v62  ;;  %v4098_v8 = vmax.f32 %v4036_v38, 0.0 }
 0x738   : > { %v4041_v60 = vpop.f32.mrf.mxu0 }
 0x739   : > { %v4099_v40 = vmax.f32 %v4038_v59, 0.0  ;;  %v4124_v17 = vpack.c.bf16 %v4098_v8, %v4096_v39  ;;  %v4042_v35 = vadd.f32 %v4041_v60, %v6590_v52 }
 0x73a   : > { %v4043_v44 = vpop.f32.mrf.mxu0 }
 0x73b   : > { %v4125_v9 = vpack.c.bf16 %v4099_v40, %v4097_v16  ;;  %v4044_v15 = vadd.f32 %v4043_v44, %v6587_v62  ;;  %v4100_v49 = vmax.f32 %v4042_v35, 0.0 }
 0x73c   : > { %v4045_v53 = vpop.f32.mrf.mxu0 }
 0x73d   : > { %v4046_v23 = vadd.f32 %v4045_v53, %v6590_v52  ;;  %4355 = vmatprep.mubr.bf16.mxu1 %v4125_v9  ;;  %v4101_v34 = vmax.f32 %v4044_v15, 0.0 }
 0x73e   : > { %v4047_v63 = vpop.f32.mrf.mxu0  ;;  %4356 = vmatmul.mubr.bf16.gmra.mxu1 %v4124_v17 }
 0x73f   : > { %v4048_v32 = vadd.f32 %v4047_v63, %v6587_v62  ;;  %v4102_v3 = vmax.f32 %v4046_v23, 0.0 }
 0x740   : > { %v4051_v25 = vpop.f32.mrf.mxu0 }
 0x741   : > { %v4103_v12 = vmax.f32 %v4048_v32, 0.0  ;;  %v4126_v37 = vpack.c.bf16 %v4102_v3, %v4100_v49  ;;  %v4052_v24 = vadd.f32 %v4051_v25, %v6590_v52 }
 0x742   : > { %v4053_v36 = vpop.f32.mrf.mxu0 }
 0x743   : > { %v4127_v11 = vpack.c.bf16 %v4103_v12, %v4101_v34  ;;  %v4054_v31 = vadd.f32 %v4053_v36, %v6587_v62  ;;  %v4104_v28 = vmax.f32 %v4052_v24, 0.0 }
 0x744   : > { %v4055_v5 = vpop.f32.mrf.mxu0 }
 0x745   : > { %v4056_v41 = vadd.f32 %v4055_v5, %v6590_v52  ;;  %4363 = vmatprep.mubr.bf16.mxu1 %v4127_v11  ;;  %v4105_v4 = vmax.f32 %v4054_v31, 0.0 }
 0x746   : > { %v4057_v22 = vpop.f32.mrf.mxu0  ;;  %4364 = vmatmul.mubr.bf16.gmra.mxu1 %v4126_v37 }
 0x747   : > { %v4058_v43 = vadd.f32 %v4057_v22, %v6587_v62  ;;  %v4106_v26 = vmax.f32 %v4056_v41, 0.0 }
 0x748   : > { %v4061_v10 = vpop.f32.mrf.mxu0 }
 0x749   : > { %v4107_v27 = vmax.f32 %v4058_v43, 0.0  ;;  %v4128_v21 = vpack.c.bf16 %v4106_v26, %v4104_v28  ;;  %v4062_v20 = vadd.f32 %v4061_v10, %v6590_v52 }
 0x74a   : > { %v4063_v6 = vpop.f32.mrf.mxu0 }
 0x74b   : > { %v4129_v14 = vpack.c.bf16 %v4107_v27, %v4105_v4  ;;  %v4064_v7 = vadd.f32 %v4063_v6, %v6587_v62  ;;  %v4108_v48 = vmax.f32 %v4062_v20, 0.0 }
 0x74c   : > { %v4065_v45 = vpop.f32.mrf.mxu0 }
 0x74d   : > { %v4109_v61 = vmax.f32 %v4064_v7, 0.0  ;;  %4371 = vmatprep.mubr.bf16.mxu1 %v4129_v14  ;;  %v4130_v50 = vpack.c.bf16 %v4108_v48, %v4108_v48 }
 0x74e   : > { %v4066_v42 = vpop.f32.mrf.mxu0  ;;  %4372 = vmatmul.mubr.bf16.gmra.mxu1 %v4128_v21 }
 0x74f   : > { %v4131_v47 = vpack.c.bf16 %v4109_v61, %v4109_v61 }
 0x751   : > { %4379 = vmatprep.mubr.bf16.mxu1 %v4131_v47 }
 0x756   : > { %4380 = vmatmul.mubr.bf16.gmra.mxu1 %v4130_v50 }
 0x7c6   : > { %v4853_v30 = vpop.f32.mrf.mxu1 }
 0x7c8   : > { %v4854_v62 = vpop.f32.mrf.mxu1 }
 0x7c9   : > { %v4855_v2 = vadd.f32 %v4854_v62, %v4853_v30 }
 0x7ca   : > { %v4856_v52 = vpop.f32.mrf.mxu1 }
 0x7cb   : > { %v4302_v51 = vadd.f32 %v4855_v2, %v6638_v19 }
 0x7cc   : > { %v4857_v54 = vpop.f32.mrf.mxu1 }
 0x7cd   : > { %4388 = vst.msk [vmem:[%s6643_s21] sm:$0xff] %vm4387_vm2, %v4302_v51  ;;  %v4858_v56 = vadd.f32 %v4857_v54, %v4856_v52 }
 0x7ce   : > { %v4859_v55 = vpop.f32.mrf.mxu1 }
 0x7cf   : > { %v4305_v58 = vadd.f32 %v4858_v56, %v6638_v19 }
 0x7d0   : > { %v4860_v29 = vpop.f32.mrf.mxu1 }
 0x7d1   : > { %4389 = vst.msk [vmem:[%s6643_s21 + $0x8] sm:$0xff] %vm4387_vm2, %v4305_v58  ;;  %v4861_v46 = vadd.f32 %v4860_v29, %v4859_v55 }
 0x7d2   : > { %v4862_v0 = vpop.f32.mrf.mxu1 }
 0x7d3   : > { %v4310_v33 = vadd.f32 %v4861_v46, %v6638_v19 }
 0x7d4   : > { %v4863_v1 = vpop.f32.mrf.mxu1 }
 0x7d5   : > { %4390 = vst.msk [vmem:[%s6643_s21 + $0x10] sm:$0xff] %vm4387_vm2, %v4310_v33  ;;  %v4864_v13 = vadd.f32 %v4863_v1, %v4862_v0 }
 0x7d6   : > { %v4865_v38 = vpop.f32.mrf.mxu1 }
 0x7d7   : > { %v4313_v57 = vadd.f32 %v4864_v13, %v6638_v19 }
 0x7d8   : > { %v4866_v18 = vpop.f32.mrf.mxu1 }
 0x7d9   : > { %4391 = vst.msk [vmem:[%s6643_s21 + $0x18] sm:$0xff] %vm4387_vm2, %v4313_v57  ;;  %v4867_v59 = vadd.f32 %v4866_v18, %v4865_v38 }
 0x7da   : > { %v4868_v8 = vpop.f32.mrf.mxu1 }
 0x7db   : > { %v4318_v60 = vadd.f32 %v4867_v59, %v6638_v19 }
 0x7dc   : > { %v4869_v16 = vpop.f32.mrf.mxu1 }
 0x7dd   : > { %4392 = vst.msk [vmem:[%s6643_s21 + $0x20] sm:$0xff] %vm4387_vm2, %v4318_v60  ;;  %v4870_v40 = vadd.f32 %v4869_v16, %v4868_v8 }
 0x7de   : > { %v4871_v39 = vpop.f32.mrf.mxu1 }
 0x7df   : > { %v4321_v44 = vadd.f32 %v4870_v40, %v6638_v19 }
 0x7e0   : > { %v4872_v9 = vpop.f32.mrf.mxu1 }
 0x7e1   : > { %4393 = vst.msk [vmem:[%s6643_s21 + $0x28] sm:$0xff] %vm4387_vm2, %v4321_v44  ;;  %v4873_v17 = vadd.f32 %v4872_v9, %v4871_v39 }
 0x7e2   : > { %v4874_v53 = vpop.f32.mrf.mxu1 }
 0x7e3   : > { %v4326_v15 = vadd.f32 %v4873_v17, %v6638_v19 }
 0x7e4   : > { %v4875_v23 = vpop.f32.mrf.mxu1 }
 0x7e5   : > { %4394 = vst.msk [vmem:[%s6643_s21 + $0x30] sm:$0xff] %vm4387_vm2, %v4326_v15  ;;  %v4876_v35 = vadd.f32 %v4875_v23, %v4874_v53 }
 0x7e6   : > { %v4877_v63 = vpop.f32.mrf.mxu1 }
 0x7e7   : > { %v4329_v32 = vadd.f32 %v4876_v35, %v6638_v19 }
 0x7e8   : > { %v4878_v3 = vpop.f32.mrf.mxu1 }
 0x7e9   : > { %4395 = vst.msk [vmem:[%s6643_s21 + $0x38] sm:$0xff] %vm4387_vm2, %v4329_v32  ;;  %v4879_v25 = vadd.f32 %v4878_v3, %v4877_v63 }
 0x7ea   : > { %v4880_v34 = vpop.f32.mrf.mxu1 }
 0x7eb   : > { %v4334_v12 = vadd.f32 %v4879_v25, %v6638_v19 }
 0x7ec   : > { %v4881_v49 = vpop.f32.mrf.mxu1 }
 0x7ed   : > { %4396 = vst.msk [vmem:[%s6643_s21 + $0x40] sm:$0xff] %vm4387_vm2, %v4334_v12  ;;  %v4882_v36 = vadd.f32 %v4881_v49, %v4880_v34 }
 0x7ee   : > { %v4883_v11 = vpop.f32.mrf.mxu1 }
 0x7ef   : > { %v4337_v37 = vadd.f32 %v4882_v36, %v6638_v19 }
 0x7f0   : > { %v4884_v5 = vpop.f32.mrf.mxu1 }
 0x7f1   : > { %4397 = vst.msk [vmem:[%s6643_s21 + $0x48] sm:$0xff] %vm4387_vm2, %v4337_v37  ;;  %v4885_v31 = vadd.f32 %v4884_v5, %v4883_v11 }
 0x7f2   : > { %v4886_v41 = vpop.f32.mrf.mxu1 }
 0x7f3   : > { %v4342_v24 = vadd.f32 %v4885_v31, %v6638_v19 }
 0x7f4   : > { %v4887_v22 = vpop.f32.mrf.mxu1 }
 0x7f5   : > { %4398 = vst.msk [vmem:[%s6643_s21 + $0x50] sm:$0xff] %vm4387_vm2, %v4342_v24  ;;  %v4888_v43 = vadd.f32 %v4887_v22, %v4886_v41 }
 0x7f6   : > { %v4889_v26 = vpop.f32.mrf.mxu1 }
 0x7f7   : > { %v4345_v10 = vadd.f32 %v4888_v43, %v6638_v19 }
 0x7f8   : > { %v4890_v4 = vpop.f32.mrf.mxu1 }
 0x7f9   : > { %4399 = vst.msk [vmem:[%s6643_s21 + $0x58] sm:$0xff] %vm4387_vm2, %v4345_v10  ;;  %v4891_v27 = vadd.f32 %v4890_v4, %v4889_v26 }
 0x7fa   : > { %v4892_v28 = vpop.f32.mrf.mxu1 }
 0x7fb   : > { %v4350_v6 = vadd.f32 %v4891_v27, %v6638_v19 }
 0x7fc   : > { %v4893_v14 = vpop.f32.mrf.mxu1 }
 0x7fd   : > { %4400 = vst.msk [vmem:[%s6643_s21 + $0x60] sm:$0xff] %vm4387_vm2, %v4350_v6  ;;  %v4894_v7 = vadd.f32 %v4893_v14, %v4892_v28 }
 0x7fe   : > { %v4895_v21 = vpop.f32.mrf.mxu1 }
 0x7ff   : > { %v4353_v20 = vadd.f32 %v4894_v7, %v6638_v19 }
 0x800   : > { %v4896_v45 = vpop.f32.mrf.mxu1 }
 0x801   : > { %4401 = vst.msk [vmem:[%s6643_s21 + $0x68] sm:$0xff] %vm4387_vm2, %v4353_v20  ;;  %v4897_v61 = vadd.f32 %v4896_v45, %v4895_v21 }
 0x802   : > { %v4898_v42 = vpop.f32.mrf.mxu1 }
 0x803   : > { %v4358_v47 = vadd.f32 %v4897_v61, %v6638_v19 }
 0x804   : > { %v4899_v48 = vpop.f32.mrf.mxu1 }
 0x805   : > { %4402 = vst.msk [vmem:[%s6643_s21 + $0x70] sm:$0xff] %vm4387_vm2, %v4358_v47  ;;  %v4900_v50 = vadd.f32 %v4899_v48, %v4898_v42 }
 0x806   : > { %v4901_v30 = vpop.f32.mrf.mxu1 }
 0x807   : > { %v4361_v62 = vadd.f32 %v4900_v50, %v6638_v19 }
 0x808   : > { %v4902_v2 = vpop.f32.mrf.mxu1 }
 0x809   : > { %4403 = vst.msk [vmem:[%s6643_s21 + $0x78] sm:$0xff] %vm4387_vm2, %v4361_v62  ;;  %v4903_v52 = vadd.f32 %v4902_v2, %v4901_v30 }
 0x80a   : > { %v4904_v51 = vpop.f32.mrf.mxu1 }
 0x80b   : > { %v4366_v54 = vadd.f32 %v4903_v52, %v6638_v19 }
 0x80c   : > { %v4905_v56 = vpop.f32.mrf.mxu1 }
 0x80d   : > { %4404 = vst.msk [vmem:[%s6643_s21 + $0x80] sm:$0xff] %vm4387_vm2, %v4366_v54  ;;  %v4906_v55 = vadd.f32 %v4905_v56, %v4904_v51 }
 0x80e   : > { %v4907_v58 = vpop.f32.mrf.mxu1 }
 0x80f   : > { %v4369_v29 = vadd.f32 %v4906_v55, %v6638_v19 }
 0x810   : > { %v4908_v46 = vpop.f32.mrf.mxu1 }
 0x811   : > { %4405 = vst.msk [vmem:[%s6643_s21 + $0x88] sm:$0xff] %vm4387_vm2, %v4369_v29  ;;  %v4909_v0 = vadd.f32 %v4908_v46, %v4907_v58 }
 0x812   : > { %v4910_v33 = vpop.f32.mrf.mxu1 }
 0x813   : > { %v4374_v1 = vadd.f32 %v4909_v0, %v6638_v19 }
 0x814   : > { %v4911_v13 = vpop.f32.mrf.mxu1 }
 0x815   : > { %4406 = vst.msk [vmem:[%s6643_s21 + $0x90] sm:$0xff] %vm4387_vm2, %v4374_v1  ;;  %v4912_v38 = vadd.f32 %v4911_v13, %v4910_v33 }
 0x816   : > { %v4913_v57 = vpop.f32.mrf.mxu1 }
 0x817   : > { %v4377_v18 = vadd.f32 %v4912_v38, %v6638_v19 }
 0x818   : > { %v4914_v59 = vpop.f32.mrf.mxu1 }
 0x819   : > { %4407 = vst.msk [vmem:[%s6643_s21 + $0x98] sm:$0xff] %vm4387_vm2, %v4377_v18  ;;  %v4915_v8 = vadd.f32 %v4914_v59, %v4913_v57 }
 0x81a   : > { %v4916_v60 = vpop.f32.mrf.mxu1 }
 0x81b   : > { %v4382_v16 = vadd.f32 %v4915_v8, %v6638_v19 }
 0x81c   : > { %v4917_v40 = vpop.f32.mrf.mxu1 }
 0x81d   : > { %4408 = vst.msk [vmem:[%s6643_s21 + $0xa0] sm:$0xff] %vm4387_vm2, %v4382_v16 }
 0x81e PF: > { %s34_s1 = sadd.s32 1, %s5615_s1  }
 0x81f   : > { %p31_p2 = scmp.ge.s32.totalorder %s34_s1, 4  }
 0x821   :  { %33 = sbr.rel (!%p31_p2) target bundleno = 12 (0xc), region = 159 }
 0x826   :  { %4431 = vsyncpa [#allocation3], 1 }
 0x827   :  { %4433 = vsyncpa [#allocation3 + $0x1], 1 }
 0x828   :  { %4434 = vsyncpa [#allocation5], 1 }
 0x829   :  { %4435 = vsyncpa [#allocation8], 1 }
 0x82a   :  { %4436 = vsyncpa [#allocation11], 1 }

</bundles_post_ra>
